<compile_context>
chip_gen: v6e
topology: v6e:2x2x1
jax: 0.10.0
libtpu: 0.0.40
codegen_flags: <defaults>
</compile_context>

<pallas_src>
import jax
import jax.numpy as jnp
import numpy as np
from jax.experimental import pallas as pl
from jax.experimental.pallas import tpu as pltpu

# ----------------------- architecture constants ---------------------------
IN_CH = 1          # maze_dims[0]
IN_H = 16          # maze_dims[1]
X_ENC_CH = 4       # x encoder output channels
X_ENC_H = 8        # x encoder output spatial size
Z_DIM = 8
SEG_CONV_CH = 8    # z_seg_conv output channels
SEG_CONV_H = 4     # z_seg_conv output spatial size
SEG_FC_H = 32
OBJ_FC_H = 32
NUM_OBJS = 2
HW_ENC = X_ENC_H * X_ENC_H     # 64
HW_IN = IN_H * IN_H            # 256
PACK_W = 128                   # lane-dense packed per-object output width

PARAM_ORDER = (
    "m_xenc", "b_xenc",
    "m_sc_enc", "m_sc_agg", "b_sc",
    "w_segfc", "b_segfc",
    "w_segheads", "b_segheads",
    "w_seg2mask", "b_seg2mask",
    "m_smconv", "b_smconv",
    "w_objfc", "b_objfc",
    "w_objheads", "b_objheads",
    "w_obj2recon", "b_obj2recon",
    "m_up", "b_up",
    "w_rmean", "w_rlogcov", "b_rmean", "b_rlogcov",
)

# Matmul weights applied once per object (for the cost estimate).
_PER_OBJECT_W = frozenset({
    "m_sc_agg", "w_segfc", "w_segheads", "w_seg2mask",
    "m_smconv", "w_objfc", "w_objheads", "w_obj2recon",
})


# ------------------ host-side conv -> dense matrix lowering ----------------
def _conv2d_as_matrix(w, h_in, w_in, stride, pad):
    """Dense (IC*H*W, OC*OH*OW) matrix equal to NCHW-flattened Conv2d."""
    oc_n, ic_n, kh_n, kw_n = w.shape
    oh_n = (h_in + 2 * pad - kh_n) // stride + 1
    ow_n = (w_in + 2 * pad - kw_n) // stride + 1
    m = np.zeros((ic_n * h_in * w_in, oc_n * oh_n * ow_n), np.float32)
    for oc in range(oc_n):
        for ic in range(ic_n):
            for oh in range(oh_n):
                for ow in range(ow_n):
                    col = (oc * oh_n + oh) * ow_n + ow
                    for kh in range(kh_n):
                        ih = oh * stride + kh - pad
                        if ih < 0 or ih >= h_in:
                            continue
                        for kw in range(kw_n):
                            iw = ow * stride + kw - pad
                            if iw < 0 or iw >= w_in:
                                continue
                            m[(ic * h_in + ih) * w_in + iw, col] += w[oc, ic, kh, kw]
    return m


def _convT2d_as_matrix(w, h_in, w_in, stride, pad):
    """Dense (IC*H*W, OC*OH*OW) matrix equal to NCHW-flattened ConvTranspose2d."""
    ic_n, oc_n, kh_n, kw_n = w.shape
    oh_n = (h_in - 1) * stride - 2 * pad + kh_n
    ow_n = (w_in - 1) * stride - 2 * pad + kw_n
    m = np.zeros((ic_n * h_in * w_in, oc_n * oh_n * ow_n), np.float32)
    for ic in range(ic_n):
        for oc in range(oc_n):
            for ih in range(h_in):
                for iw in range(w_in):
                    row = (ic * h_in + ih) * w_in + iw
                    for kh in range(kh_n):
                        oh = ih * stride + kh - pad
                        if oh < 0 or oh >= oh_n:
                            continue
                        for kw in range(kw_n):
                            ow = iw * stride + kw - pad
                            if ow < 0 or ow >= ow_n:
                                continue
                            m[row, (oc * oh_n + oh) * ow_n + ow] += w[ic, oc, kh, kw]
    return m


# ------------------------------- parameters --------------------------------
def init_params(seed=0):
    rng = np.random.RandomState(seed)

    def conv_init(oc, ic, kh, kw):
        w = (rng.randn(oc, ic, kh, kw) / np.sqrt(ic * kh * kw)).astype(np.float32)
        b = (0.01 * rng.randn(oc)).astype(np.float32)
        return w, b

    def lin_init(fi, fo):
        w = (rng.randn(fi, fo) / np.sqrt(fi)).astype(np.float32)
        b = (0.01 * rng.randn(fo)).astype(np.float32)
        return w, b

    p = {}

    def put_w(name, mat):     # bf16 matmul weights (MXU operands)
        p[name] = jnp.asarray(np.asarray(mat, np.float32), jnp.bfloat16)

    def put_b(name, vec):     # f32 row vectors (VPU epilogue operands)
        p[name] = jnp.asarray(np.asarray(vec, np.float32).reshape(1, -1), jnp.float32)

    # x_encoder: Conv2d(1 -> 4, 3, stride=2, padding=1) + ReLU   (16 -> 8)
    w, b = conv_init(X_ENC_CH, IN_CH, 3, 3)
    put_w("m_xenc", _conv2d_as_matrix(w, IN_H, IN_H, 2, 1))              # (256, 256)
    put_b("b_xenc", np.repeat(b, HW_ENC))

    # z_seg_conv_seq: Conv2d(5 -> 8, 3, stride=2, padding=1) + ReLU (8 -> 4)
    # split by input channel: the enc part is loop-invariant, the agg part is not.
    w, b = conv_init(SEG_CONV_CH, X_ENC_CH + 1, 3, 3)
    m = _conv2d_as_matrix(w, X_ENC_H, X_ENC_H, 2, 1)                     # (5*64, 8*16)
    put_w("m_sc_enc", m[:X_ENC_CH * HW_ENC])                             # (256, 128)
    put_w("m_sc_agg", m[X_ENC_CH * HW_ENC:])                             # (64, 128)
    put_b("b_sc", np.repeat(b, SEG_CONV_H * SEG_CONV_H))

    # z_seg_fc_seq: Linear(8*4*4 -> 32) + ReLU
    w, b = lin_init(SEG_CONV_CH * SEG_CONV_H * SEG_CONV_H, SEG_FC_H)
    put_w("w_segfc", w); put_b("b_segfc", b)

    # z_seg_mean_fc | z_seg_log_cov_fc fused into one (32, 16) head
    wm_seg, bm_seg = lin_init(SEG_FC_H, Z_DIM)
    wl_seg, bl_seg = lin_init(SEG_FC_H, Z_DIM)
    put_w("w_segheads", np.concatenate([wm_seg, wl_seg], axis=1))
    put_b("b_segheads", np.concatenate([bm_seg, bl_seg]))

    # z_seg_mask_fc_seq: Linear(Z_DIM -> 4*8*8) + ReLU, fused with the mean head:
    #   relu((h @ wm + bm) @ w_smfc + b_smfc) == relu(h @ (wm @ w_smfc) + (bm @ w_smfc + b_smfc))
    w_smfc, b_smfc = lin_init(Z_DIM, X_ENC_CH * HW_ENC)
    put_w("w_seg2mask", wm_seg @ w_smfc)                                 # (32, 256)
    put_b("b_seg2mask", bm_seg @ w_smfc + b_smfc)

    # z_seg_mask_conv: Conv2d(4 -> 1, 3, stride=1, padding=1)
    # (z_seg_mask_upconv_seq in the reference is dead code -- overwritten -- skipped.)
    w, b = conv_init(1, X_ENC_CH, 3, 3)
    put_w("m_smconv", _conv2d_as_matrix(w, X_ENC_H, X_ENC_H, 1, 1))      # (256, 64)
    put_b("b_smconv", np.repeat(b, HW_ENC))

    # z_obj_fc_seq: Linear(4*8*8 -> 32) + ReLU
    w, b = lin_init(X_ENC_CH * HW_ENC, OBJ_FC_H)
    put_w("w_objfc", w); put_b("b_objfc", b)

    # z_obj_mean_fc | z_obj_log_cov_fc fused head
    wm_obj, bm_obj = lin_init(OBJ_FC_H, Z_DIM)
    wl_obj, bl_obj = lin_init(OBJ_FC_H, Z_DIM)
    put_w("w_objheads", np.concatenate([wm_obj, wl_obj], axis=1))
    put_b("b_objheads", np.concatenate([bm_obj, bl_obj]))

    # z_obj_recon_fc_seq: Linear(Z_DIM -> 4*8*8) + ReLU, fused with the mean head.
    w_orfc, b_orfc = lin_init(Z_DIM, X_ENC_CH * HW_ENC)
    put_w("w_obj2recon", wm_obj @ w_orfc)                                # (32, 256)
    put_b("b_obj2recon", bm_obj @ w_orfc + b_orfc)

    # recon_upconv_seq: ConvTranspose2d(4 -> 4, 4, stride=2, padding=1) + ReLU (8 -> 16)
    w = (rng.randn(X_ENC_CH, X_ENC_CH, 4, 4) / np.sqrt(X_ENC_CH * 16)).astype(np.float32)
    b = (0.01 * rng.randn(X_ENC_CH)).astype(np.float32)
    put_w("m_up", _convT2d_as_matrix(w, X_ENC_H, X_ENC_H, 2, 1))         # (256, 1024)
    put_b("b_up", np.repeat(b, HW_IN))

    # recon_mean_conv / recon_log_cov_conv (1x1 convs) as channel-replicated
    # f32 weight vectors for a pure-VPU weighted sum (no dense matrix).
    wm, bm = conv_init(1, X_ENC_CH, 1, 1)
    wl, bl = conv_init(1, X_ENC_CH, 1, 1)
    put_b("w_rmean", np.repeat(wm[0, :, 0, 0], HW_IN))                   # (1, 1024)
    put_b("w_rlogcov", np.repeat(wl[0, :, 0, 0], HW_IN))                 # (1, 1024)
    put_b("b_rmean", np.full((HW_IN,), bm[0], np.float32))               # (1, 256)
    put_b("b_rlogcov", np.full((HW_IN,), bl[0], np.float32))             # (1, 256)

    return p


# ------------------------------ fused kernel --------------------------------
def _fused_forward_kernel(
    # inputs (order = [img, num] + PARAM_ORDER)
    img_ref, num_ref,
    m_xenc, b_xenc,
    m_sc_enc, m_sc_agg, b_sc,
    w_segfc, b_segfc,
    w_segheads, b_segheads,
    w_seg2mask, b_seg2mask,
    m_smconv, b_smconv,
    w_objfc, b_objfc,
    w_objheads, b_objheads,
    w_obj2recon, b_obj2recon,
    m_up, b_up,
    w_rmean, w_rlogcov, b_rmean, b_rlogcov,
    # outputs
    pack_ref, recon_mean_ref, recon_logcov_ref,
):
    f32 = jnp.float32
    bf16 = jnp.bfloat16
    B = img_ref.shape[0]

    def mm(x, w_ref, b_ref=None, act=None):
        # bf16 operands on the MXU, f32 accumulation, f32 epilogue (v5e-safe).
        y = jnp.dot(x.astype(bf16), w_ref[...], preferred_element_type=f32)
        if b_ref is not None:
            y = y + b_ref[...]
        if act == "relu":
            y = jnp.maximum(y, 0.0)
        elif act == "sigmoid":
            y = jax.nn.sigmoid(y)
        return y

    # x_encoder as one (256, 256) matmul; output is NCHW-flat (4, 8, 8).
    enc = mm(img_ref[...], m_xenc, b_xenc, "relu")            # (B, 256)
    # Loop-invariant (enc-channel) half of the seg conv + its bias -- hoisted.
    seg_from_enc = mm(enc, m_sc_enc) + b_sc[...]              # (B, 128)

    num = num_ref[...]                                        # (B, NUM_OBJS)
    inter = jnp.zeros((B, X_ENC_CH * HW_ENC), f32)            # inter_recon_tensor
    pad = jnp.zeros((B, PACK_W - 4 * Z_DIM - HW_ENC), f32)    # (B, 32) lane padding
    agg = None                                                # enc_mask_aggregate (zero at i=0)

    for i in range(NUM_OBJS):                                 # statically unrolled
        # z_seg_conv_seq(cat([enc, agg], 1)) + ReLU.  i==0: agg == 0, skip its matmul.
        if i == 0:
            h = jnp.maximum(seg_from_enc, 0.0)                # (B, 128)
        else:
            h = jnp.maximum(seg_from_enc + mm(agg, m_sc_agg), 0.0)
        h = mm(h, w_segfc, b_segfc, "relu")                   # (B, 32)

        # Independent heads off the same 32-wide hidden (no serial head->fc hop):
        z_seg = mm(h, w_segheads, b_segheads)                 # (B, 16) = [mean | logcov]
        hm = mm(h, w_seg2mask, b_seg2mask, "relu")            # (B, 256) fused mean->mask-fc
        # z_seg_mask_conv (3x3, s1, p1) + sigmoid.  (upconv branch is dead code.)
        mask = jax.nn.sigmoid(mm(hm, m_smconv, b_smconv))     # (B, 64)
        mask_c = jnp.concatenate([mask] * X_ENC_CH, axis=-1)  # (B, 256) channel-bcast

        h2 = mm(mask_c * enc, w_objfc, b_objfc, "relu")       # (B, 32)
        z_obj = mm(h2, w_objheads, b_objheads)                # (B, 16) = [mean | logcov]
        hr = mm(h2, w_obj2recon, b_obj2recon, "relu")         # (B, 256) fused mean->recon-fc

        inter = inter + num[:, i:i + 1] * (hr * mask_c)
        agg = mask if i == 0 else jnp.maximum(agg, mask)

        # One lane-dense 128-wide row store per object (no masked partial stores).
        pack_ref[i] = jnp.concatenate([z_obj, z_seg, mask, pad], axis=-1)

    # recon_upconv_seq (ConvTranspose 4->4, 4x4, s2, p1) + ReLU as (256, 1024) matmul.
    h = mm(inter, m_up, b_up, "relu")                         # (B, 1024)

    # recon_mean_conv / recon_log_cov_conv (1x1) as a VPU per-channel weighted sum
    # (replaces the former 99.6%-zero (1024, 512) matmul / 1 MiB weight DMA).
    hm = h * w_rmean[...]                                     # (B, 1024)
    hl = h * w_rlogcov[...]
    r_mean = (hm[:, 0 * HW_IN:1 * HW_IN] + hm[:, 1 * HW_IN:2 * HW_IN]
              + hm[:, 2 * HW_IN:3 * HW_IN] + hm[:, 3 * HW_IN:4 * HW_IN]) + b_rmean[...]
    r_lc = (hl[:, 0 * HW_IN:1 * HW_IN] + hl[:, 1 * HW_IN:2 * HW_IN]
            + hl[:, 2 * HW_IN:3 * HW_IN] + hl[:, 3 * HW_IN:4 * HW_IN]) + b_rlogcov[...]
    recon_mean_ref[...] = jax.nn.sigmoid(r_mean)
    recon_logcov_ref[...] = r_lc


# ------------------------------- forward -----------------------------------
def attentive_vae_forward(params, img_batch, num_batch):
    """img_batch: (B, 1, 16, 16); num_batch: (B, NUM_OBJS, 1, 1, 1)."""
    B = img_batch.shape[0]
    img_flat = img_batch.reshape(B, IN_CH * HW_IN).astype(jnp.float32)
    num_flat = num_batch.reshape(B, NUM_OBJS).astype(jnp.float32)

    # Batch tiling: one tile at small B (== previous gridless behavior), 256-row
    # tiles at large B (multiple of 8 -> valid blocks; keeps per-tile activations
    # well under v7x's 64 MiB VMEM and lets v7x shard tiles across both TCs).
    TB = B if B <= 512 else 256
    Bp = ((B + TB - 1) // TB) * TB
    if Bp != B:
        img_flat = jnp.pad(img_flat, ((0, Bp - B), (0, 0)))
        num_flat = jnp.pad(num_flat, ((0, Bp - B), (0, 0)))
    grid = (Bp // TB,)

    args = [img_flat, num_flat] + [params[k] for k in PARAM_ORDER]

    resident_2d = lambda i: (0, 0)   # weights stay VMEM-resident across batch tiles
    in_specs = (
        [pl.BlockSpec((TB, IN_CH * HW_IN), lambda i: (i, 0)),
         pl.BlockSpec((TB, NUM_OBJS), lambda i: (i, 0))]
        + [pl.BlockSpec(tuple(params[k].shape), resident_2d) for k in PARAM_ORDER]
    )
    out_specs = (
        pl.BlockSpec((NUM_OBJS, TB, PACK_W), lambda i: (0, i, 0)),
        pl.BlockSpec((TB, HW_IN), lambda i: (i, 0)),
        pl.BlockSpec((TB, HW_IN), lambda i: (i, 0)),
    )
    out_shape = (
        jax.ShapeDtypeStruct((NUM_OBJS, Bp, PACK_W), jnp.float32),  # [z_obj|z_seg|mask|pad]
        jax.ShapeDtypeStruct((Bp, HW_IN), jnp.float32),             # recon mean (flat 16x16)
        jax.ShapeDtypeStruct((Bp, HW_IN), jnp.float32),             # recon log cov
    )

    # Advisory cost estimate (MXU MACs + sigmoid transcendentals + weight/IO bytes).
    macs_per_row = 0
    weight_bytes = 0
    for k in PARAM_ORDER:
        shp = params[k].shape
        weight_bytes += int(np.prod(shp)) * params[k].dtype.itemsize
        if params[k].dtype.itemsize == 2:   # bf16 matmul weights
            macs_per_row += (NUM_OBJS if k in _PER_OBJECT_W else 1) * shp[0] * shp[1]
    cost = pl.CostEstimate(
        flops=int(2 * Bp * macs_per_row + 16 * Bp * X_ENC_CH * HW_IN),
        transcendentals=int(Bp * (NUM_OBJS * HW_ENC + HW_IN)),
        bytes_accessed=int(weight_bytes + img_flat.size * 4 + num_flat.size * 4
                           + (NUM_OBJS * Bp * PACK_W + 2 * Bp * HW_IN) * 4),
    )

    pack, rm, rlc = pl.pallas_call(
        _fused_forward_kernel,
        grid=grid,
        out_shape=out_shape,
        in_specs=in_specs,
        out_specs=out_specs,
        compiler_params=pltpu.CompilerParams(dimension_semantics=("parallel",)),
        cost_estimate=cost,
    )(*args)

    obj_means = [pack[i, :B, 0:Z_DIM] for i in range(NUM_OBJS)]
    obj_log_covs = [pack[i, :B, Z_DIM:2 * Z_DIM] for i in range(NUM_OBJS)]
    seg_means = [pack[i, :B, 2 * Z_DIM:3 * Z_DIM] for i in range(NUM_OBJS)]
    seg_log_covs = [pack[i, :B, 3 * Z_DIM:4 * Z_DIM] for i in range(NUM_OBJS)]
    masks = [pack[i, :B, 4 * Z_DIM:4 * Z_DIM + HW_ENC].reshape(B, 1, X_ENC_H, X_ENC_H)
             for i in range(NUM_OBJS)]
    recon_mean = rm[:B].reshape(B, 1, IN_H, IN_H)
    recon_log_cov = rlc[:B].reshape(B, 1, IN_H, IN_H)
    return obj_means, obj_log_covs, seg_means, seg_log_covs, masks, recon_mean, recon_log_cov


# --------------------------------- main -------------------------------------
if __name__ == "__main__":
    key = jax.random.PRNGKey(0)
    k_img, k_num = jax.random.split(key)
    B = 2
    img_batch = jax.random.uniform(k_img, (B, IN_CH, IN_H, IN_H), jnp.float32)
    # num_batch[:, i] broadcasts against (B, C, H, W) exactly as in the reference.
    num_batch = jax.random.uniform(k_num, (B, NUM_OBJS, 1, 1, 1), jnp.float32)
    params = init_params(0)

    fwd = jax.jit(attentive_vae_forward)
    outs = fwd(params, img_batch, num_batch)
    outs = jax.tree_util.tree_map(jax.block_until_ready, outs)

    (obj_means, obj_log_covs, seg_means, seg_log_covs, masks,
     recon_mean, recon_log_cov) = outs
    assert obj_means[0].shape == (B, Z_DIM)
    assert obj_log_covs[0].shape == (B, Z_DIM)
    assert seg_means[1].shape == (B, Z_DIM)
    assert seg_log_covs[1].shape == (B, Z_DIM)
    assert masks[0].shape == (B, 1, X_ENC_H, X_ENC_H)
    assert recon_mean.shape == (B, 1, IN_H, IN_H)
    assert recon_log_cov.shape == (B, 1, IN_H, IN_H)
    for t in (recon_mean, recon_log_cov, obj_means[0], obj_log_covs[1],
              seg_means[0], seg_log_covs[1], masks[0], masks[1]):
        assert bool(jnp.all(jnp.isfinite(t)))
    print("KERNEL_OK")
</pallas_src>

<mosaic_0001>
module attributes {stable_mosaic.version = 11 : i64} {
  func.func @_fused_forward_kernel(%arg0: i32, %arg1: memref<2x256xf32, #tpu.memory_space<vmem>>, %arg2: memref<2x2xf32, #tpu.memory_space<vmem>>, %arg3: memref<256x256xbf16, #tpu.memory_space<vmem>>, %arg4: memref<1x256xf32, #tpu.memory_space<vmem>>, %arg5: memref<256x128xbf16, #tpu.memory_space<vmem>>, %arg6: memref<64x128xbf16, #tpu.memory_space<vmem>>, %arg7: memref<1x128xf32, #tpu.memory_space<vmem>>, %arg8: memref<128x32xbf16, #tpu.memory_space<vmem>>, %arg9: memref<1x32xf32, #tpu.memory_space<vmem>>, %arg10: memref<32x16xbf16, #tpu.memory_space<vmem>>, %arg11: memref<1x16xf32, #tpu.memory_space<vmem>>, %arg12: memref<32x256xbf16, #tpu.memory_space<vmem>>, %arg13: memref<1x256xf32, #tpu.memory_space<vmem>>, %arg14: memref<256x64xbf16, #tpu.memory_space<vmem>>, %arg15: memref<1x64xf32, #tpu.memory_space<vmem>>, %arg16: memref<256x32xbf16, #tpu.memory_space<vmem>>, %arg17: memref<1x32xf32, #tpu.memory_space<vmem>>, %arg18: memref<32x16xbf16, #tpu.memory_space<vmem>>, %arg19: memref<1x16xf32, #tpu.memory_space<vmem>>, %arg20: memref<32x256xbf16, #tpu.memory_space<vmem>>, %arg21: memref<1x256xf32, #tpu.memory_space<vmem>>, %arg22: memref<256x1024xbf16, #tpu.memory_space<vmem>>, %arg23: memref<1x1024xf32, #tpu.memory_space<vmem>>, %arg24: memref<1x1024xf32, #tpu.memory_space<vmem>>, %arg25: memref<1x1024xf32, #tpu.memory_space<vmem>>, %arg26: memref<1x256xf32, #tpu.memory_space<vmem>>, %arg27: memref<1x256xf32, #tpu.memory_space<vmem>>, %arg28: memref<2x2x128xf32, #tpu.memory_space<vmem>>, %arg29: memref<2x256xf32, #tpu.memory_space<vmem>>, %arg30: memref<2x256xf32, #tpu.memory_space<vmem>>) attributes {dimension_semantics = [#tpu.dimension_semantics<parallel>], iteration_bounds = array<i64: 1>, scalar_prefetch = 0 : i64, scratch_operands = 0 : i64, tpu.core_type = #tpu.core_type<tc>, window_params = [{transform_indices = @transform_0, window_bounds = array<i64: 2, 256>}, {transform_indices = @transform_1, window_bounds = array<i64: 2, 2>}, {pipeline_mode = #tpu.pipeline_mode<synchronous>, transform_indices = @transform_2, window_bounds = array<i64: 256, 256>}, {pipeline_mode = #tpu.pipeline_mode<synchronous>, transform_indices = @transform_3, window_bounds = array<i64: 1, 256>}, {pipeline_mode = #tpu.pipeline_mode<synchronous>, transform_indices = @transform_4, window_bounds = array<i64: 256, 128>}, {pipeline_mode = #tpu.pipeline_mode<synchronous>, transform_indices = @transform_5, window_bounds = array<i64: 64, 128>}, {pipeline_mode = #tpu.pipeline_mode<synchronous>, transform_indices = @transform_6, window_bounds = array<i64: 1, 128>}, {pipeline_mode = #tpu.pipeline_mode<synchronous>, transform_indices = @transform_7, window_bounds = array<i64: 128, 32>}, {pipeline_mode = #tpu.pipeline_mode<synchronous>, transform_indices = @transform_8, window_bounds = array<i64: 1, 32>}, {pipeline_mode = #tpu.pipeline_mode<synchronous>, transform_indices = @transform_9, window_bounds = array<i64: 32, 16>}, {pipeline_mode = #tpu.pipeline_mode<synchronous>, transform_indices = @transform_10, window_bounds = array<i64: 1, 16>}, {pipeline_mode = #tpu.pipeline_mode<synchronous>, transform_indices = @transform_11, window_bounds = array<i64: 32, 256>}, {pipeline_mode = #tpu.pipeline_mode<synchronous>, transform_indices = @transform_12, window_bounds = array<i64: 1, 256>}, {pipeline_mode = #tpu.pipeline_mode<synchronous>, transform_indices = @transform_13, window_bounds = array<i64: 256, 64>}, {pipeline_mode = #tpu.pipeline_mode<synchronous>, transform_indices = @transform_14, window_bounds = array<i64: 1, 64>}, {pipeline_mode = #tpu.pipeline_mode<synchronous>, transform_indices = @transform_15, window_bounds = array<i64: 256, 32>}, {pipeline_mode = #tpu.pipeline_mode<synchronous>, transform_indices = @transform_16, window_bounds = array<i64: 1, 32>}, {pipeline_mode = #tpu.pipeline_mode<synchronous>, transform_indices = @transform_17, window_bounds = array<i64: 32, 16>}, {pipeline_mode = #tpu.pipeline_mode<synchronous>, transform_indices = @transform_18, window_bounds = array<i64: 1, 16>}, {pipeline_mode = #tpu.pipeline_mode<synchronous>, transform_indices = @transform_19, window_bounds = array<i64: 32, 256>}, {pipeline_mode = #tpu.pipeline_mode<synchronous>, transform_indices = @transform_20, window_bounds = array<i64: 1, 256>}, {pipeline_mode = #tpu.pipeline_mode<synchronous>, transform_indices = @transform_21, window_bounds = array<i64: 256, 1024>}, {pipeline_mode = #tpu.pipeline_mode<synchronous>, transform_indices = @transform_22, window_bounds = array<i64: 1, 1024>}, {pipeline_mode = #tpu.pipeline_mode<synchronous>, transform_indices = @transform_23, window_bounds = array<i64: 1, 1024>}, {pipeline_mode = #tpu.pipeline_mode<synchronous>, transform_indices = @transform_24, window_bounds = array<i64: 1, 1024>}, {pipeline_mode = #tpu.pipeline_mode<synchronous>, transform_indices = @transform_25, window_bounds = array<i64: 1, 256>}, {pipeline_mode = #tpu.pipeline_mode<synchronous>, transform_indices = @transform_26, window_bounds = array<i64: 1, 256>}, {transform_indices = @transform_27, window_bounds = array<i64: 2, 2, 128>}, {transform_indices = @transform_28, window_bounds = array<i64: 2, 256>}, {transform_indices = @transform_29, window_bounds = array<i64: 2, 256>}]} {
    %c0 = arith.constant 0 : index
    %c0_0 = arith.constant 0 : index
    %0 = vector.load %arg1[%c0, %c0_0] : memref<2x256xf32, #tpu.memory_space<vmem>>, vector<2x256xf32>
    %1 = arith.truncf %0 : vector<2x256xf32> to vector<2x256xbf16>
    %c0_1 = arith.constant 0 : index
    %c0_2 = arith.constant 0 : index
    %2 = vector.load %arg3[%c0_1, %c0_2] : memref<256x256xbf16, #tpu.memory_space<vmem>>, vector<256x256xbf16>
    %cst = arith.constant dense<0.000000e+00> : vector<2x256xf32>
    %3 = tpu.matmul %1, %2, %cst {dimension_numbers = #tpu.dot_dimension_numbers<[1], [0], [0], [1], [0, 0, 1, 1], [], []>} : vector<2x256xbf16>, vector<256x256xbf16>, vector<2x256xf32> -> vector<2x256xf32>
    %c0_3 = arith.constant 0 : index
    %c0_4 = arith.constant 0 : index
    %4 = vector.load %arg4[%c0_3, %c0_4] : memref<1x256xf32, #tpu.memory_space<vmem>>, vector<1x256xf32>
    %5 = vector.broadcast %4 : vector<1x256xf32> to vector<2x256xf32>
    %6 = arith.addf %3, %5 : vector<2x256xf32>
    %cst_5 = arith.constant 0.000000e+00 : f32
    %7 = vector.broadcast %cst_5 : f32 to vector<2x256xf32>
    %8 = arith.maximumf %6, %7 : vector<2x256xf32>
    %9 = arith.truncf %8 : vector<2x256xf32> to vector<2x256xbf16>
    %c0_6 = arith.constant 0 : index
    %c0_7 = arith.constant 0 : index
    %10 = vector.load %arg5[%c0_6, %c0_7] : memref<256x128xbf16, #tpu.memory_space<vmem>>, vector<256x128xbf16>
    %cst_8 = arith.constant dense<0.000000e+00> : vector<2x128xf32>
    %11 = tpu.matmul %9, %10, %cst_8 {dimension_numbers = #tpu.dot_dimension_numbers<[1], [0], [0], [1], [0, 0, 1, 1], [], []>} : vector<2x256xbf16>, vector<256x128xbf16>, vector<2x128xf32> -> vector<2x128xf32>
    %c0_9 = arith.constant 0 : index
    %c0_10 = arith.constant 0 : index
    %12 = vector.load %arg7[%c0_9, %c0_10] : memref<1x128xf32, #tpu.memory_space<vmem>>, vector<1x128xf32>
    %13 = vector.broadcast %12 : vector<1x128xf32> to vector<2x128xf32>
    %14 = arith.addf %11, %13 : vector<2x128xf32>
    %c0_11 = arith.constant 0 : index
    %c0_12 = arith.constant 0 : index
    %15 = vector.load %arg2[%c0_11, %c0_12] : memref<2x2xf32, #tpu.memory_space<vmem>>, vector<2x2xf32>
    %cst_13 = arith.constant 0.000000e+00 : f32
    %16 = vector.broadcast %cst_13 : f32 to vector<2x256xf32>
    %cst_14 = arith.constant 0.000000e+00 : f32
    %17 = vector.broadcast %cst_14 : f32 to vector<2x32xf32>
    %cst_15 = arith.constant 0.000000e+00 : f32
    %18 = vector.broadcast %cst_15 : f32 to vector<2x128xf32>
    %19 = arith.maximumf %14, %18 : vector<2x128xf32>
    %20 = arith.truncf %19 : vector<2x128xf32> to vector<2x128xbf16>
    %c0_16 = arith.constant 0 : index
    %c0_17 = arith.constant 0 : index
    %21 = vector.load %arg8[%c0_16, %c0_17] : memref<128x32xbf16, #tpu.memory_space<vmem>>, vector<128x32xbf16>
    %cst_18 = arith.constant dense<0.000000e+00> : vector<2x32xf32>
    %22 = tpu.matmul %20, %21, %cst_18 {dimension_numbers = #tpu.dot_dimension_numbers<[1], [0], [0], [1], [0, 0, 1, 1], [], []>} : vector<2x128xbf16>, vector<128x32xbf16>, vector<2x32xf32> -> vector<2x32xf32>
    %c0_19 = arith.constant 0 : index
    %c0_20 = arith.constant 0 : index
    %23 = vector.load %arg9[%c0_19, %c0_20] : memref<1x32xf32, #tpu.memory_space<vmem>>, vector<1x32xf32>
    %24 = vector.broadcast %23 : vector<1x32xf32> to vector<2x32xf32>
    %25 = arith.addf %22, %24 : vector<2x32xf32>
    %cst_21 = arith.constant 0.000000e+00 : f32
    %26 = vector.broadcast %cst_21 : f32 to vector<2x32xf32>
    %27 = arith.maximumf %25, %26 : vector<2x32xf32>
    %28 = arith.truncf %27 : vector<2x32xf32> to vector<2x32xbf16>
    %c0_22 = arith.constant 0 : index
    %c0_23 = arith.constant 0 : index
    %29 = vector.load %arg10[%c0_22, %c0_23] : memref<32x16xbf16, #tpu.memory_space<vmem>>, vector<32x16xbf16>
    %cst_24 = arith.constant dense<0.000000e+00> : vector<2x16xf32>
    %30 = tpu.matmul %28, %29, %cst_24 {dimension_numbers = #tpu.dot_dimension_numbers<[1], [0], [0], [1], [0, 0, 1, 1], [], []>} : vector<2x32xbf16>, vector<32x16xbf16>, vector<2x16xf32> -> vector<2x16xf32>
    %c0_25 = arith.constant 0 : index
    %c0_26 = arith.constant 0 : index
    %31 = vector.load %arg11[%c0_25, %c0_26] : memref<1x16xf32, #tpu.memory_space<vmem>>, vector<1x16xf32>
    %32 = vector.broadcast %31 : vector<1x16xf32> to vector<2x16xf32>
    %33 = arith.addf %30, %32 : vector<2x16xf32>
    %34 = arith.truncf %27 : vector<2x32xf32> to vector<2x32xbf16>
    %c0_27 = arith.constant 0 : index
    %c0_28 = arith.constant 0 : index
    %35 = vector.load %arg12[%c0_27, %c0_28] : memref<32x256xbf16, #tpu.memory_space<vmem>>, vector<32x256xbf16>
    %cst_29 = arith.constant dense<0.000000e+00> : vector<2x256xf32>
    %36 = tpu.matmul %34, %35, %cst_29 {dimension_numbers = #tpu.dot_dimension_numbers<[1], [0], [0], [1], [0, 0, 1, 1], [], []>} : vector<2x32xbf16>, vector<32x256xbf16>, vector<2x256xf32> -> vector<2x256xf32>
    %c0_30 = arith.constant 0 : index
    %c0_31 = arith.constant 0 : index
    %37 = vector.load %arg13[%c0_30, %c0_31] : memref<1x256xf32, #tpu.memory_space<vmem>>, vector<1x256xf32>
    %38 = vector.broadcast %37 : vector<1x256xf32> to vector<2x256xf32>
    %39 = arith.addf %36, %38 : vector<2x256xf32>
    %cst_32 = arith.constant 0.000000e+00 : f32
    %40 = vector.broadcast %cst_32 : f32 to vector<2x256xf32>
    %41 = arith.maximumf %39, %40 : vector<2x256xf32>
    %42 = arith.truncf %41 : vector<2x256xf32> to vector<2x256xbf16>
    %c0_33 = arith.constant 0 : index
    %c0_34 = arith.constant 0 : index
    %43 = vector.load %arg14[%c0_33, %c0_34] : memref<256x64xbf16, #tpu.memory_space<vmem>>, vector<256x64xbf16>
    %cst_35 = arith.constant dense<0.000000e+00> : vector<2x64xf32>
    %44 = tpu.matmul %42, %43, %cst_35 {dimension_numbers = #tpu.dot_dimension_numbers<[1], [0], [0], [1], [0, 0, 1, 1], [], []>} : vector<2x256xbf16>, vector<256x64xbf16>, vector<2x64xf32> -> vector<2x64xf32>
    %c0_36 = arith.constant 0 : index
    %c0_37 = arith.constant 0 : index
    %45 = vector.load %arg15[%c0_36, %c0_37] : memref<1x64xf32, #tpu.memory_space<vmem>>, vector<1x64xf32>
    %46 = vector.broadcast %45 : vector<1x64xf32> to vector<2x64xf32>
    %47 = arith.addf %44, %46 : vector<2x64xf32>
    %48 = arith.negf %47 : vector<2x64xf32>
    %49 = math.exp %48 : vector<2x64xf32>
    %cst_38 = arith.constant 1.000000e+00 : f32
    %50 = vector.broadcast %cst_38 : f32 to vector<2x64xf32>
    %51 = arith.addf %50, %49 : vector<2x64xf32>
    %52 = arith.divf %50, %51 : vector<2x64xf32>
    %53 = tpu.concatenate %52, %52, %52, %52 in 1 : vector<2x64xf32>, vector<2x64xf32>, vector<2x64xf32>, vector<2x64xf32> -> vector<2x256xf32>
    %54 = arith.mulf %53, %8 : vector<2x256xf32>
    %55 = arith.truncf %54 : vector<2x256xf32> to vector<2x256xbf16>
    %c0_39 = arith.constant 0 : index
    %c0_40 = arith.constant 0 : index
    %56 = vector.load %arg16[%c0_39, %c0_40] : memref<256x32xbf16, #tpu.memory_space<vmem>>, vector<256x32xbf16>
    %cst_41 = arith.constant dense<0.000000e+00> : vector<2x32xf32>
    %57 = tpu.matmul %55, %56, %cst_41 {dimension_numbers = #tpu.dot_dimension_numbers<[1], [0], [0], [1], [0, 0, 1, 1], [], []>} : vector<2x256xbf16>, vector<256x32xbf16>, vector<2x32xf32> -> vector<2x32xf32>
    %c0_42 = arith.constant 0 : index
    %c0_43 = arith.constant 0 : index
    %58 = vector.load %arg17[%c0_42, %c0_43] : memref<1x32xf32, #tpu.memory_space<vmem>>, vector<1x32xf32>
    %59 = vector.broadcast %58 : vector<1x32xf32> to vector<2x32xf32>
    %60 = arith.addf %57, %59 : vector<2x32xf32>
    %cst_44 = arith.constant 0.000000e+00 : f32
    %61 = vector.broadcast %cst_44 : f32 to vector<2x32xf32>
    %62 = arith.maximumf %60, %61 : vector<2x32xf32>
    %63 = arith.truncf %62 : vector<2x32xf32> to vector<2x32xbf16>
    %c0_45 = arith.constant 0 : index
    %c0_46 = arith.constant 0 : index
    %64 = vector.load %arg18[%c0_45, %c0_46] : memref<32x16xbf16, #tpu.memory_space<vmem>>, vector<32x16xbf16>
    %cst_47 = arith.constant dense<0.000000e+00> : vector<2x16xf32>
    %65 = tpu.matmul %63, %64, %cst_47 {dimension_numbers = #tpu.dot_dimension_numbers<[1], [0], [0], [1], [0, 0, 1, 1], [], []>} : vector<2x32xbf16>, vector<32x16xbf16>, vector<2x16xf32> -> vector<2x16xf32>
    %c0_48 = arith.constant 0 : index
    %c0_49 = arith.constant 0 : index
    %66 = vector.load %arg19[%c0_48, %c0_49] : memref<1x16xf32, #tpu.memory_space<vmem>>, vector<1x16xf32>
    %67 = vector.broadcast %66 : vector<1x16xf32> to vector<2x16xf32>
    %68 = arith.addf %65, %67 : vector<2x16xf32>
    %69 = arith.truncf %62 : vector<2x32xf32> to vector<2x32xbf16>
    %c0_50 = arith.constant 0 : index
    %c0_51 = arith.constant 0 : index
    %70 = vector.load %arg20[%c0_50, %c0_51] : memref<32x256xbf16, #tpu.memory_space<vmem>>, vector<32x256xbf16>
    %cst_52 = arith.constant dense<0.000000e+00> : vector<2x256xf32>
    %71 = tpu.matmul %69, %70, %cst_52 {dimension_numbers = #tpu.dot_dimension_numbers<[1], [0], [0], [1], [0, 0, 1, 1], [], []>} : vector<2x32xbf16>, vector<32x256xbf16>, vector<2x256xf32> -> vector<2x256xf32>
    %c0_53 = arith.constant 0 : index
    %c0_54 = arith.constant 0 : index
    %72 = vector.load %arg21[%c0_53, %c0_54] : memref<1x256xf32, #tpu.memory_space<vmem>>, vector<1x256xf32>
    %73 = vector.broadcast %72 : vector<1x256xf32> to vector<2x256xf32>
    %74 = arith.addf %71, %73 : vector<2x256xf32>
    %cst_55 = arith.constant 0.000000e+00 : f32
    %75 = vector.broadcast %cst_55 : f32 to vector<2x256xf32>
    %76 = arith.maximumf %74, %75 : vector<2x256xf32>
    %77 = vector.extract_strided_slice %15 {offsets = [0, 0], sizes = [2, 1], strides = [1, 1]} : vector<2x2xf32> to vector<2x1xf32>
    %78 = arith.mulf %76, %53 : vector<2x256xf32>
    %79 = vector.broadcast %77 : vector<2x1xf32> to vector<2x256xf32>
    %80 = arith.mulf %79, %78 : vector<2x256xf32>
    %81 = arith.addf %16, %80 : vector<2x256xf32>
    %82 = tpu.concatenate %68, %33, %52, %17 in 1 : vector<2x16xf32>, vector<2x16xf32>, vector<2x64xf32>, vector<2x32xf32> -> vector<2x128xf32>
    %c0_56 = arith.constant 0 : index
    %c0_57 = arith.constant 0 : index
    %c0_58 = arith.constant 0 : index
    %83 = vector.load %arg28[%c0_56, %c0_57, %c0_58] : memref<2x2x128xf32, #tpu.memory_space<vmem>>, vector<1x2x128xf32>
    %84 = vector.shape_cast %83 : vector<1x2x128xf32> to vector<2x128xf32>
    %85 = vector.shape_cast %82 : vector<2x128xf32> to vector<1x2x128xf32>
    tpu.vector_store %arg28[%c0_56, %c0_57, %c0_58], %85 {strides = array<i32>} : memref<2x2x128xf32, #tpu.memory_space<vmem>>, vector<1x2x128xf32>,
    %86 = arith.truncf %52 : vector<2x64xf32> to vector<2x64xbf16>
    %c0_59 = arith.constant 0 : index
    %c0_60 = arith.constant 0 : index
    %87 = vector.load %arg6[%c0_59, %c0_60] : memref<64x128xbf16, #tpu.memory_space<vmem>>, vector<64x128xbf16>
    %cst_61 = arith.constant dense<0.000000e+00> : vector<2x128xf32>
    %88 = tpu.matmul %86, %87, %cst_61 {dimension_numbers = #tpu.dot_dimension_numbers<[1], [0], [0], [1], [0, 0, 1, 1], [], []>} : vector<2x64xbf16>, vector<64x128xbf16>, vector<2x128xf32> -> vector<2x128xf32>
    %89 = arith.addf %14, %88 : vector<2x128xf32>
    %cst_62 = arith.constant 0.000000e+00 : f32
    %90 = vector.broadcast %cst_62 : f32 to vector<2x128xf32>
    %91 = arith.maximumf %89, %90 : vector<2x128xf32>
    %92 = arith.truncf %91 : vector<2x128xf32> to vector<2x128xbf16>
    %c0_63 = arith.constant 0 : index
    %c0_64 = arith.constant 0 : index
    %93 = vector.load %arg8[%c0_63, %c0_64] : memref<128x32xbf16, #tpu.memory_space<vmem>>, vector<128x32xbf16>
    %cst_65 = arith.constant dense<0.000000e+00> : vector<2x32xf32>
    %94 = tpu.matmul %92, %93, %cst_65 {dimension_numbers = #tpu.dot_dimension_numbers<[1], [0], [0], [1], [0, 0, 1, 1], [], []>} : vector<2x128xbf16>, vector<128x32xbf16>, vector<2x32xf32> -> vector<2x32xf32>
    %c0_66 = arith.constant 0 : index
    %c0_67 = arith.constant 0 : index
    %95 = vector.load %arg9[%c0_66, %c0_67] : memref<1x32xf32, #tpu.memory_space<vmem>>, vector<1x32xf32>
    %96 = vector.broadcast %95 : vector<1x32xf32> to vector<2x32xf32>
    %97 = arith.addf %94, %96 : vector<2x32xf32>
    %cst_68 = arith.constant 0.000000e+00 : f32
    %98 = vector.broadcast %cst_68 : f32 to vector<2x32xf32>
    %99 = arith.maximumf %97, %98 : vector<2x32xf32>
    %100 = arith.truncf %99 : vector<2x32xf32> to vector<2x32xbf16>
    %c0_69 = arith.constant 0 : index
    %c0_70 = arith.constant 0 : index
    %101 = vector.load %arg10[%c0_69, %c0_70] : memref<32x16xbf16, #tpu.memory_space<vmem>>, vector<32x16xbf16>
    %cst_71 = arith.constant dense<0.000000e+00> : vector<2x16xf32>
    %102 = tpu.matmul %100, %101, %cst_71 {dimension_numbers = #tpu.dot_dimension_numbers<[1], [0], [0], [1], [0, 0, 1, 1], [], []>} : vector<2x32xbf16>, vector<32x16xbf16>, vector<2x16xf32> -> vector<2x16xf32>
    %c0_72 = arith.constant 0 : index
    %c0_73 = arith.constant 0 : index
    %103 = vector.load %arg11[%c0_72, %c0_73] : memref<1x16xf32, #tpu.memory_space<vmem>>, vector<1x16xf32>
    %104 = vector.broadcast %103 : vector<1x16xf32> to vector<2x16xf32>
    %105 = arith.addf %102, %104 : vector<2x16xf32>
    %106 = arith.truncf %99 : vector<2x32xf32> to vector<2x32xbf16>
    %c0_74 = arith.constant 0 : index
    %c0_75 = arith.constant 0 : index
    %107 = vector.load %arg12[%c0_74, %c0_75] : memref<32x256xbf16, #tpu.memory_space<vmem>>, vector<32x256xbf16>
    %cst_76 = arith.constant dense<0.000000e+00> : vector<2x256xf32>
    %108 = tpu.matmul %106, %107, %cst_76 {dimension_numbers = #tpu.dot_dimension_numbers<[1], [0], [0], [1], [0, 0, 1, 1], [], []>} : vector<2x32xbf16>, vector<32x256xbf16>, vector<2x256xf32> -> vector<2x256xf32>
    %c0_77 = arith.constant 0 : index
    %c0_78 = arith.constant 0 : index
    %109 = vector.load %arg13[%c0_77, %c0_78] : memref<1x256xf32, #tpu.memory_space<vmem>>, vector<1x256xf32>
    %110 = vector.broadcast %109 : vector<1x256xf32> to vector<2x256xf32>
    %111 = arith.addf %108, %110 : vector<2x256xf32>
    %cst_79 = arith.constant 0.000000e+00 : f32
    %112 = vector.broadcast %cst_79 : f32 to vector<2x256xf32>
    %113 = arith.maximumf %111, %112 : vector<2x256xf32>
    %114 = arith.truncf %113 : vector<2x256xf32> to vector<2x256xbf16>
    %c0_80 = arith.constant 0 : index
    %c0_81 = arith.constant 0 : index
    %115 = vector.load %arg14[%c0_80, %c0_81] : memref<256x64xbf16, #tpu.memory_space<vmem>>, vector<256x64xbf16>
    %cst_82 = arith.constant dense<0.000000e+00> : vector<2x64xf32>
    %116 = tpu.matmul %114, %115, %cst_82 {dimension_numbers = #tpu.dot_dimension_numbers<[1], [0], [0], [1], [0, 0, 1, 1], [], []>} : vector<2x256xbf16>, vector<256x64xbf16>, vector<2x64xf32> -> vector<2x64xf32>
    %c0_83 = arith.constant 0 : index
    %c0_84 = arith.constant 0 : index
    %117 = vector.load %arg15[%c0_83, %c0_84] : memref<1x64xf32, #tpu.memory_space<vmem>>, vector<1x64xf32>
    %118 = vector.broadcast %117 : vector<1x64xf32> to vector<2x64xf32>
    %119 = arith.addf %116, %118 : vector<2x64xf32>
    %120 = arith.negf %119 : vector<2x64xf32>
    %121 = math.exp %120 : vector<2x64xf32>
    %cst_85 = arith.constant 1.000000e+00 : f32
    %122 = vector.broadcast %cst_85 : f32 to vector<2x64xf32>
    %123 = arith.addf %122, %121 : vector<2x64xf32>
    %124 = arith.divf %122, %123 : vector<2x64xf32>
    %125 = tpu.concatenate %124, %124, %124, %124 in 1 : vector<2x64xf32>, vector<2x64xf32>, vector<2x64xf32>, vector<2x64xf32> -> vector<2x256xf32>
    %126 = arith.mulf %125, %8 : vector<2x256xf32>
    %127 = arith.truncf %126 : vector<2x256xf32> to vector<2x256xbf16>
    %c0_86 = arith.constant 0 : index
    %c0_87 = arith.constant 0 : index
    %128 = vector.load %arg16[%c0_86, %c0_87] : memref<256x32xbf16, #tpu.memory_space<vmem>>, vector<256x32xbf16>
    %cst_88 = arith.constant dense<0.000000e+00> : vector<2x32xf32>
    %129 = tpu.matmul %127, %128, %cst_88 {dimension_numbers = #tpu.dot_dimension_numbers<[1], [0], [0], [1], [0, 0, 1, 1], [], []>} : vector<2x256xbf16>, vector<256x32xbf16>, vector<2x32xf32> -> vector<2x32xf32>
    %c0_89 = arith.constant 0 : index
    %c0_90 = arith.constant 0 : index
    %130 = vector.load %arg17[%c0_89, %c0_90] : memref<1x32xf32, #tpu.memory_space<vmem>>, vector<1x32xf32>
    %131 = vector.broadcast %130 : vector<1x32xf32> to vector<2x32xf32>
    %132 = arith.addf %129, %131 : vector<2x32xf32>
    %cst_91 = arith.constant 0.000000e+00 : f32
    %133 = vector.broadcast %cst_91 : f32 to vector<2x32xf32>
    %134 = arith.maximumf %132, %133 : vector<2x32xf32>
    %135 = arith.truncf %134 : vector<2x32xf32> to vector<2x32xbf16>
    %c0_92 = arith.constant 0 : index
    %c0_93 = arith.constant 0 : index
    %136 = vector.load %arg18[%c0_92, %c0_93] : memref<32x16xbf16, #tpu.memory_space<vmem>>, vector<32x16xbf16>
    %cst_94 = arith.constant dense<0.000000e+00> : vector<2x16xf32>
    %137 = tpu.matmul %135, %136, %cst_94 {dimension_numbers = #tpu.dot_dimension_numbers<[1], [0], [0], [1], [0, 0, 1, 1], [], []>} : vector<2x32xbf16>, vector<32x16xbf16>, vector<2x16xf32> -> vector<2x16xf32>
    %c0_95 = arith.constant 0 : index
    %c0_96 = arith.constant 0 : index
    %138 = vector.load %arg19[%c0_95, %c0_96] : memref<1x16xf32, #tpu.memory_space<vmem>>, vector<1x16xf32>
    %139 = vector.broadcast %138 : vector<1x16xf32> to vector<2x16xf32>
    %140 = arith.addf %137, %139 : vector<2x16xf32>
    %141 = arith.truncf %134 : vector<2x32xf32> to vector<2x32xbf16>
    %c0_97 = arith.constant 0 : index
    %c0_98 = arith.constant 0 : index
    %142 = vector.load %arg20[%c0_97, %c0_98] : memref<32x256xbf16, #tpu.memory_space<vmem>>, vector<32x256xbf16>
    %cst_99 = arith.constant dense<0.000000e+00> : vector<2x256xf32>
    %143 = tpu.matmul %141, %142, %cst_99 {dimension_numbers = #tpu.dot_dimension_numbers<[1], [0], [0], [1], [0, 0, 1, 1], [], []>} : vector<2x32xbf16>, vector<32x256xbf16>, vector<2x256xf32> -> vector<2x256xf32>
    %c0_100 = arith.constant 0 : index
    %c0_101 = arith.constant 0 : index
    %144 = vector.load %arg21[%c0_100, %c0_101] : memref<1x256xf32, #tpu.memory_space<vmem>>, vector<1x256xf32>
    %145 = vector.broadcast %144 : vector<1x256xf32> to vector<2x256xf32>
    %146 = arith.addf %143, %145 : vector<2x256xf32>
    %cst_102 = arith.constant 0.000000e+00 : f32
    %147 = vector.broadcast %cst_102 : f32 to vector<2x256xf32>
    %148 = arith.maximumf %146, %147 : vector<2x256xf32>
    %149 = vector.extract_strided_slice %15 {offsets = [0, 1], sizes = [2, 1], strides = [1, 1]} : vector<2x2xf32> to vector<2x1xf32>
    %150 = arith.mulf %148, %125 : vector<2x256xf32>
    %151 = vector.broadcast %149 : vector<2x1xf32> to vector<2x256xf32>
    %152 = arith.mulf %151, %150 : vector<2x256xf32>
    %153 = arith.addf %81, %152 : vector<2x256xf32>
    %154 = tpu.concatenate %140, %105, %124, %17 in 1 : vector<2x16xf32>, vector<2x16xf32>, vector<2x64xf32>, vector<2x32xf32> -> vector<2x128xf32>
    %c1 = arith.constant 1 : index
    %c0_103 = arith.constant 0 : index
    %c0_104 = arith.constant 0 : index
    %155 = vector.load %arg28[%c1, %c0_103, %c0_104] : memref<2x2x128xf32, #tpu.memory_space<vmem>>, vector<1x2x128xf32>
    %156 = vector.shape_cast %155 : vector<1x2x128xf32> to vector<2x128xf32>
    %157 = vector.shape_cast %154 : vector<2x128xf32> to vector<1x2x128xf32>
    tpu.vector_store %arg28[%c1, %c0_103, %c0_104], %157 {strides = array<i32>} : memref<2x2x128xf32, #tpu.memory_space<vmem>>, vector<1x2x128xf32>,
    %158 = arith.truncf %153 : vector<2x256xf32> to vector<2x256xbf16>
    %c0_105 = arith.constant 0 : index
    %c0_106 = arith.constant 0 : index
    %159 = vector.load %arg22[%c0_105, %c0_106] : memref<256x1024xbf16, #tpu.memory_space<vmem>>, vector<256x1024xbf16>
    %cst_107 = arith.constant dense<0.000000e+00> : vector<2x1024xf32>
    %160 = tpu.matmul %158, %159, %cst_107 {dimension_numbers = #tpu.dot_dimension_numbers<[1], [0], [0], [1], [0, 0, 1, 1], [], []>} : vector<2x256xbf16>, vector<256x1024xbf16>, vector<2x1024xf32> -> vector<2x1024xf32>
    %c0_108 = arith.constant 0 : index
    %c0_109 = arith.constant 0 : index
    %161 = vector.load %arg23[%c0_108, %c0_109] : memref<1x1024xf32, #tpu.memory_space<vmem>>, vector<1x1024xf32>
    %162 = vector.broadcast %161 : vector<1x1024xf32> to vector<2x1024xf32>
    %163 = arith.addf %160, %162 : vector<2x1024xf32>
    %cst_110 = arith.constant 0.000000e+00 : f32
    %164 = vector.broadcast %cst_110 : f32 to vector<2x1024xf32>
    %165 = arith.maximumf %163, %164 : vector<2x1024xf32>
    %c0_111 = arith.constant 0 : index
    %c0_112 = arith.constant 0 : index
    %166 = vector.load %arg24[%c0_111, %c0_112] : memref<1x1024xf32, #tpu.memory_space<vmem>>, vector<1x1024xf32>
    %167 = vector.broadcast %166 : vector<1x1024xf32> to vector<2x1024xf32>
    %168 = arith.mulf %165, %167 : vector<2x1024xf32>
    %c0_113 = arith.constant 0 : index
    %c0_114 = arith.constant 0 : index
    %169 = vector.load %arg25[%c0_113, %c0_114] : memref<1x1024xf32, #tpu.memory_space<vmem>>, vector<1x1024xf32>
    %170 = vector.broadcast %169 : vector<1x1024xf32> to vector<2x1024xf32>
    %171 = arith.mulf %165, %170 : vector<2x1024xf32>
    %172 = vector.extract_strided_slice %168 {offsets = [0, 0], sizes = [2, 256], strides = [1, 1]} : vector<2x1024xf32> to vector<2x256xf32>
    %173 = vector.extract_strided_slice %168 {offsets = [0, 256], sizes = [2, 256], strides = [1, 1]} : vector<2x1024xf32> to vector<2x256xf32>
    %174 = arith.addf %172, %173 : vector<2x256xf32>
    %175 = vector.extract_strided_slice %168 {offsets = [0, 512], sizes = [2, 256], strides = [1, 1]} : vector<2x1024xf32> to vector<2x256xf32>
    %176 = arith.addf %174, %175 : vector<2x256xf32>
    %177 = vector.extract_strided_slice %168 {offsets = [0, 768], sizes = [2, 256], strides = [1, 1]} : vector<2x1024xf32> to vector<2x256xf32>
    %178 = arith.addf %176, %177 : vector<2x256xf32>
    %c0_115 = arith.constant 0 : index
    %c0_116 = arith.constant 0 : index
    %179 = vector.load %arg26[%c0_115, %c0_116] : memref<1x256xf32, #tpu.memory_space<vmem>>, vector<1x256xf32>
    %180 = vector.broadcast %179 : vector<1x256xf32> to vector<2x256xf32>
    %181 = arith.addf %178, %180 : vector<2x256xf32>
    %182 = vector.extract_strided_slice %171 {offsets = [0, 0], sizes = [2, 256], strides = [1, 1]} : vector<2x1024xf32> to vector<2x256xf32>
    %183 = vector.extract_strided_slice %171 {offsets = [0, 256], sizes = [2, 256], strides = [1, 1]} : vector<2x1024xf32> to vector<2x256xf32>
    %184 = arith.addf %182, %183 : vector<2x256xf32>
    %185 = vector.extract_strided_slice %171 {offsets = [0, 512], sizes = [2, 256], strides = [1, 1]} : vector<2x1024xf32> to vector<2x256xf32>
    %186 = arith.addf %184, %185 : vector<2x256xf32>
    %187 = vector.extract_strided_slice %171 {offsets = [0, 768], sizes = [2, 256], strides = [1, 1]} : vector<2x1024xf32> to vector<2x256xf32>
    %188 = arith.addf %186, %187 : vector<2x256xf32>
    %c0_117 = arith.constant 0 : index
    %c0_118 = arith.constant 0 : index
    %189 = vector.load %arg27[%c0_117, %c0_118] : memref<1x256xf32, #tpu.memory_space<vmem>>, vector<1x256xf32>
    %190 = vector.broadcast %189 : vector<1x256xf32> to vector<2x256xf32>
    %191 = arith.addf %188, %190 : vector<2x256xf32>
    %192 = arith.negf %181 : vector<2x256xf32>
    %193 = math.exp %192 : vector<2x256xf32>
    %cst_119 = arith.constant 1.000000e+00 : f32
    %194 = vector.broadcast %cst_119 : f32 to vector<2x256xf32>
    %195 = arith.addf %194, %193 : vector<2x256xf32>
    %196 = arith.divf %194, %195 : vector<2x256xf32>
    %c0_120 = arith.constant 0 : index
    %c0_121 = arith.constant 0 : index
    %197 = vector.load %arg29[%c0_120, %c0_121] : memref<2x256xf32, #tpu.memory_space<vmem>>, vector<2x256xf32>
    tpu.vector_store %arg29[%c0_120, %c0_121], %196 {strides = array<i32>} : memref<2x256xf32, #tpu.memory_space<vmem>>, vector<2x256xf32>,
    %c0_122 = arith.constant 0 : index
    %c0_123 = arith.constant 0 : index
    %198 = vector.load %arg30[%c0_122, %c0_123] : memref<2x256xf32, #tpu.memory_space<vmem>>, vector<2x256xf32>
    tpu.vector_store %arg30[%c0_122, %c0_123], %191 {strides = array<i32>} : memref<2x256xf32, #tpu.memory_space<vmem>>, vector<2x256xf32>,
    return
  }
  func.func @transform_0(%arg0: i32) -> (i32, i32) {
    %c0_i32 = arith.constant 0 : i32
    %c0_i32_0 = arith.constant 0 : i32
    return %arg0, %c0_i32 : i32, i32
  }
  func.func @transform_1(%arg0: i32) -> (i32, i32) {
    %c0_i32 = arith.constant 0 : i32
    %c0_i32_0 = arith.constant 0 : i32
    return %arg0, %c0_i32 : i32, i32
  }
  func.func @transform_2(%arg0: i32) -> (i32, i32) {
    %c0_i32 = arith.constant 0 : i32
    %c0_i32_0 = arith.constant 0 : i32
    %c0_i32_1 = arith.constant 0 : i32
    return %c0_i32, %c0_i32_0 : i32, i32
  }
  func.func @transform_3(%arg0: i32) -> (i32, i32) {
    %c0_i32 = arith.constant 0 : i32
    %c0_i32_0 = arith.constant 0 : i32
    %c0_i32_1 = arith.constant 0 : i32
    return %c0_i32, %c0_i32_0 : i32, i32
  }
  func.func @transform_4(%arg0: i32) -> (i32, i32) {
    %c0_i32 = arith.constant 0 : i32
    %c0_i32_0 = arith.constant 0 : i32
    %c0_i32_1 = arith.constant 0 : i32
    return %c0_i32, %c0_i32_0 : i32, i32
  }
  func.func @transform_5(%arg0: i32) -> (i32, i32) {
    %c0_i32 = arith.constant 0 : i32
    %c0_i32_0 = arith.constant 0 : i32
    %c0_i32_1 = arith.constant 0 : i32
    return %c0_i32, %c0_i32_0 : i32, i32
  }
  func.func @transform_6(%arg0: i32) -> (i32, i32) {
    %c0_i32 = arith.constant 0 : i32
    %c0_i32_0 = arith.constant 0 : i32
    %c0_i32_1 = arith.constant 0 : i32
    return %c0_i32, %c0_i32_0 : i32, i32
  }
  func.func @transform_7(%arg0: i32) -> (i32, i32) {
    %c0_i32 = arith.constant 0 : i32
    %c0_i32_0 = arith.constant 0 : i32
    %c0_i32_1 = arith.constant 0 : i32
    return %c0_i32, %c0_i32_0 : i32, i32
  }
  func.func @transform_8(%arg0: i32) -> (i32, i32) {
    %c0_i32 = arith.constant 0 : i32
    %c0_i32_0 = arith.constant 0 : i32
    %c0_i32_1 = arith.constant 0 : i32
    return %c0_i32, %c0_i32_0 : i32, i32
  }
  func.func @transform_9(%arg0: i32) -> (i32, i32) {
    %c0_i32 = arith.constant 0 : i32
    %c0_i32_0 = arith.constant 0 : i32
    %c0_i32_1 = arith.constant 0 : i32
    return %c0_i32, %c0_i32_0 : i32, i32
  }
  func.func @transform_10(%arg0: i32) -> (i32, i32) {
    %c0_i32 = arith.constant 0 : i32
    %c0_i32_0 = arith.constant 0 : i32
    %c0_i32_1 = arith.constant 0 : i32
    return %c0_i32, %c0_i32_0 : i32, i32
  }
  func.func @transform_11(%arg0: i32) -> (i32, i32) {
    %c0_i32 = arith.constant 0 : i32
    %c0_i32_0 = arith.constant 0 : i32
    %c0_i32_1 = arith.constant 0 : i32
    return %c0_i32, %c0_i32_0 : i32, i32
  }
  func.func @transform_12(%arg0: i32) -> (i32, i32) {
    %c0_i32 = arith.constant 0 : i32
    %c0_i32_0 = arith.constant 0 : i32
    %c0_i32_1 = arith.constant 0 : i32
    return %c0_i32, %c0_i32_0 : i32, i32
  }
  func.func @transform_13(%arg0: i32) -> (i32, i32) {
    %c0_i32 = arith.constant 0 : i32
    %c0_i32_0 = arith.constant 0 : i32
    %c0_i32_1 = arith.constant 0 : i32
    return %c0_i32, %c0_i32_0 : i32, i32
  }
  func.func @transform_14(%arg0: i32) -> (i32, i32) {
    %c0_i32 = arith.constant 0 : i32
    %c0_i32_0 = arith.constant 0 : i32
    %c0_i32_1 = arith.constant 0 : i32
    return %c0_i32, %c0_i32_0 : i32, i32
  }
  func.func @transform_15(%arg0: i32) -> (i32, i32) {
    %c0_i32 = arith.constant 0 : i32
    %c0_i32_0 = arith.constant 0 : i32
    %c0_i32_1 = arith.constant 0 : i32
    return %c0_i32, %c0_i32_0 : i32, i32
  }
  func.func @transform_16(%arg0: i32) -> (i32, i32) {
    %c0_i32 = arith.constant 0 : i32
    %c0_i32_0 = arith.constant 0 : i32
    %c0_i32_1 = arith.constant 0 : i32
    return %c0_i32, %c0_i32_0 : i32, i32
  }
  func.func @transform_17(%arg0: i32) -> (i32, i32) {
    %c0_i32 = arith.constant 0 : i32
    %c0_i32_0 = arith.constant 0 : i32
    %c0_i32_1 = arith.constant 0 : i32
    return %c0_i32, %c0_i32_0 : i32, i32
  }
  func.func @transform_18(%arg0: i32) -> (i32, i32) {
    %c0_i32 = arith.constant 0 : i32
    %c0_i32_0 = arith.constant 0 : i32
    %c0_i32_1 = arith.constant 0 : i32
    return %c0_i32, %c0_i32_0 : i32, i32
  }
  func.func @transform_19(%arg0: i32) -> (i32, i32) {
    %c0_i32 = arith.constant 0 : i32
    %c0_i32_0 = arith.constant 0 : i32
    %c0_i32_1 = arith.constant 0 : i32
    return %c0_i32, %c0_i32_0 : i32, i32
  }
  func.func @transform_20(%arg0: i32) -> (i32, i32) {
    %c0_i32 = arith.constant 0 : i32
    %c0_i32_0 = arith.constant 0 : i32
    %c0_i32_1 = arith.constant 0 : i32
    return %c0_i32, %c0_i32_0 : i32, i32
  }
  func.func @transform_21(%arg0: i32) -> (i32, i32) {
    %c0_i32 = arith.constant 0 : i32
    %c0_i32_0 = arith.constant 0 : i32
    %c0_i32_1 = arith.constant 0 : i32
    return %c0_i32, %c0_i32_0 : i32, i32
  }
  func.func @transform_22(%arg0: i32) -> (i32, i32) {
    %c0_i32 = arith.constant 0 : i32
    %c0_i32_0 = arith.constant 0 : i32
    %c0_i32_1 = arith.constant 0 : i32
    return %c0_i32, %c0_i32_0 : i32, i32
  }
  func.func @transform_23(%arg0: i32) -> (i32, i32) {
    %c0_i32 = arith.constant 0 : i32
    %c0_i32_0 = arith.constant 0 : i32
    %c0_i32_1 = arith.constant 0 : i32
    return %c0_i32, %c0_i32_0 : i32, i32
  }
  func.func @transform_24(%arg0: i32) -> (i32, i32) {
    %c0_i32 = arith.constant 0 : i32
    %c0_i32_0 = arith.constant 0 : i32
    %c0_i32_1 = arith.constant 0 : i32
    return %c0_i32, %c0_i32_0 : i32, i32
  }
  func.func @transform_25(%arg0: i32) -> (i32, i32) {
    %c0_i32 = arith.constant 0 : i32
    %c0_i32_0 = arith.constant 0 : i32
    %c0_i32_1 = arith.constant 0 : i32
    return %c0_i32, %c0_i32_0 : i32, i32
  }
  func.func @transform_26(%arg0: i32) -> (i32, i32) {
    %c0_i32 = arith.constant 0 : i32
    %c0_i32_0 = arith.constant 0 : i32
    %c0_i32_1 = arith.constant 0 : i32
    return %c0_i32, %c0_i32_0 : i32, i32
  }
  func.func @transform_27(%arg0: i32) -> (i32, i32, i32) {
    %c0_i32 = arith.constant 0 : i32
    %c0_i32_0 = arith.constant 0 : i32
    %c0_i32_1 = arith.constant 0 : i32
    return %c0_i32, %arg0, %c0_i32_0 : i32, i32, i32
  }
  func.func @transform_28(%arg0: i32) -> (i32, i32) {
    %c0_i32 = arith.constant 0 : i32
    %c0_i32_0 = arith.constant 0 : i32
    return %arg0, %c0_i32 : i32, i32
  }
  func.func @transform_29(%arg0: i32) -> (i32, i32) {
    %c0_i32 = arith.constant 0 : i32
    %c0_i32_0 = arith.constant 0 : i32
    return %arg0, %c0_i32 : i32, i32
  }
}

</mosaic_0001>

<bundles_post_ra>
// kernel: squeeze.19
= control target key start
LH: loop header
LB: loop body
LE: loop exit
PB: predicated region body
PF: predicated region fallthrough
CT: control target
= control target key end

     0   :  { %s125_s0 = inlined_call_operand.vmem [shape: f32[1,2,64], index: 0, kind: input, shape index: {}]   ;;  %s126_s1 = inlined_call_operand.hbm [shape: f32[2,1,8,8], index: 1, kind: output, shape index: {}]  }
   0x1   :  { %v6_v0 = vld [vmem:[%s125_s0] sm:$0x3] }
   0x2   :  { %7 = vst [vmem:[#allocation2] sm:$0x3] %v6_v0 }
   0x3   :  { %2 = vsyncpa [#allocation1], 0  ;;  %s93_s0 = smov 120   ;;  %s94_s8 = smov 104   ;;  %vm9_vm0 = vcmask 64512  }
   0x4   :  { %s95_s9 = smov 112   ;;  %s96_s10 = smov 96  }
   0x5   :  { %s97_s11 = smov 88   ;;  %s98_s12 = smov 80  }
   0x6   :  { %s99_s13 = smov 72   ;;  %s100_s14 = smov [#allocation0]  }
   0x7   :  { %s57_s15 = sshll.u32 %s100_s14, 4  ;;  %s58_s15 = int_to_ptr.vmem [resolvable:$true] %s57_s15 }
   0x8   :  { %s71_s16 = scalar_lea.vmem %s58_s15, 256  ;;  %p76_p1 = scmp.lt.s32.totalorder %s58_s15, %s58_s15 }
   0x9   :  { %v11_v1 = vld [vmem:[#allocation2] sm:$0x3]   ;;  %p72_p0 = scmp.ne.s32.totalorder %s58_s15, %s71_s16  ;;  %p77_p2 = scmp.lt.s32.totalorder %s71_s16, %s71_s16 }
   0xa   :  { %v23_v2 = vld [vmem:[#allocation2] sm:$0x3]   ;;  %12 = vrot.lane.b32.xlu0 %v11_v1, %s93_s0 }
   0xb   :  { %24 = vrot.lane.b32.xlu1 %v23_v2, %s94_s8  ;;  %v17_v3 = vld [vmem:[#allocation2] sm:$0x3]   ;;  %p78_p3 = por %p77_p2, %p76_p1 }
   0xc   :  { %v29_v4 = vld [vmem:[#allocation2] sm:$0x3]  }
   0xd   :  { %v8_v5 = vld [vmem:[#allocation2] sm:$0x3]   ;;  %p79_p4 = pnand %p78_p3, %p72_p0 }
   0xe   :  { %10 = vst.msk [vmem:[#allocation0] ss:$8 sm:$0x3] %vm9_vm0, %v8_v5   ;;  %18 = vrot.lane.b32.xlu0 %v17_v3, %s95_s9  ;;  %v35_v6 = vld [vmem:[#allocation2] sm:$0x3]  }
   0xf   :  { %30 = vrot.lane.b32.xlu1 %v29_v4, %s96_s10  ;;  %v41_v7 = vld [vmem:[#allocation2] sm:$0x3]  }
  0x10   :  { %v47_v8 = vld [vmem:[#allocation2] sm:$0x3]  }
  0x12   :  { %36 = vrot.lane.b32.xlu0 %v35_v6, %s97_s11 }
  0x13   :  { %42 = vrot.lane.b32.xlu1 %v41_v7, %s98_s12 }
  0x16   :  { %48 = vrot.lane.b32.xlu0 %v47_v8, %s99_s13 }
  0x7c   :  { %v13_v9 = vpop.permute.xlu0 %12  }
  0x7d   :  { %v25_v10 = vpop.permute.xlu1 %24   ;;  %16 = vst.msk [vmem:[#allocation0 + $0x1] ss:$8 sm:$0x3] %vm9_vm0, %v13_v9  }
  0x7e   :  { %28 = vst.msk [vmem:[#allocation0 + $0x3] ss:$8 sm:$0x3] %vm9_vm0, %v25_v10  }
  0x80   :  { %v19_v11 = vpop.permute.xlu0 %18  }
  0x81   :  { %v31_v12 = vpop.permute.xlu1 %30   ;;  %22 = vst.msk [vmem:[#allocation0 + $0x2] ss:$8 sm:$0x3] %vm9_vm0, %v19_v11  }
  0x82   :  { %34 = vst.msk [vmem:[#allocation0 + $0x4] ss:$8 sm:$0x3] %vm9_vm0, %v31_v12  }
  0x84   :  { %v37_v13 = vpop.permute.xlu0 %36  }
  0x85   :  { %v43_v14 = vpop.permute.xlu1 %42   ;;  %40 = vst.msk [vmem:[#allocation0 + $0x5] ss:$8 sm:$0x3] %vm9_vm0, %v37_v13  }
  0x86   :  { %46 = vst.msk [vmem:[#allocation0 + $0x6] ss:$8 sm:$0x3] %vm9_vm0, %v43_v14  }
  0x88   :  { %v49_v15 = vpop.permute.xlu0 %48  }
  0x89   :  { %52 = vst.msk [vmem:[#allocation0 + $0x7] ss:$8 sm:$0x3] %vm9_vm0, %v49_v15  }
  0x8a   :  { %82 = shalt.err (!%p79_p4)
}
  0x8b   :  { %60 = dma.vmem_to_hbm [thread:$0]  %s58_s15, 256, %s126_s1, [#allocation1]  }
  0x8c   :  { %91 = dma.done.wait [#allocation1], 256  }
  0x8d   :  { %92 = vsyncadd [#allocation1], 4294967040 }
  0x8e   :  { %62 = vsyncpa [#allocation1], 1 }

// kernel: attentive_vae_forward.1
= control target key start
LH: loop header
LB: loop body
LE: loop exit
PB: predicated region body
PF: predicated region fallthrough
CT: control target
= control target key end

     0   :  { %s4754_s6 = smov 1   ;;  %s4755_s10 = smov 2   ;;  %s5399_s0 = inlined_call_operand.smem [shape: u32[30], index: -1, kind: input, shape index: {}] }
   0x1   :  { %s4817_s5 = sld [smem:[%s5399_s0]]   ;;  %s4756_s14 = smov 3  }
   0x2   :  { %s4822_s9 = sld [smem:[%s5399_s0 + %s4754_s6]]   ;;  %s4757_s18 = smov 4  }
   0x3   :  { %s4827_s13 = sld [smem:[%s5399_s0 + %s4755_s10]]   ;;  %s4758_s22 = smov 5  }
   0x4   :  { %s4832_s17 = sld [smem:[%s5399_s0 + %s4756_s14]]   ;;  %s4759_s26 = smov 6  }
   0x5   :  { %s4837_s21 = sld [smem:[%s5399_s0 + %s4757_s18]]   ;;  %s4760_s30 = smov 7  }
   0x6   :  { %s4842_s25 = sld [smem:[%s5399_s0 + %s4758_s22]]   ;;  %s4761_s4 = smov 8  }
   0x7   :  { %5408 = sst [smem:[#allocation36_spill]] %s4817_s5  ;;  %s4762_s10 = smov 9  }
   0x8   :  { %5409 = sst [smem:[#allocation37_spill]] %s4822_s9  ;;  %s4763_s15 = smov 10  }
   0x9   :  { %5410 = sst [smem:[#allocation38_spill]] %s4827_s13  ;;  %s4764_s20 = smov 11  }
   0xa   :  { %s4847_s29 = sld [smem:[%s5399_s0 + %s4759_s26]]   ;;  %s4765_s26 = smov 12  }
   0xb   :  { %5411 = sst [smem:[#allocation39_spill]] %s4837_s21  ;;  %s4766_s1 = smov 13  }
   0xc   :  { %5412 = sst [smem:[#allocation40_spill]] %s4842_s25  ;;  %s4767_s7 = smov 14  }
   0xd   :  { %s4852_s3 = sld [smem:[%s5399_s0 + %s4760_s30]]   ;;  %s4769_s22 = smov 16  }
   0xe   :  { %s4857_s8 = sld [smem:[%s5399_s0 + %s4761_s4]]   ;;  %s4770_s28 = smov 17  }
   0xf   :  { %s4862_s14 = sld [smem:[%s5399_s0 + %s4762_s10]]  }
  0x10   :  { %s4867_s19 = sld [smem:[%s5399_s0 + %s4763_s15]]   ;;  %s4768_s15 = smov 15  }
  0x11   :  { %s4872_s24 = sld [smem:[%s5399_s0 + %s4764_s20]]  }
  0x12   :  { %s4877_s30 = sld [smem:[%s5399_s0 + %s4765_s26]]  }
  0x13   :  { %5413 = sst [smem:[#allocation41_spill]] %s4852_s3 }
  0x14   :  { %s4882_s6 = sld [smem:[%s5399_s0 + %s4766_s1]]  }
  0x15   :  { %5414 = sst [smem:[#allocation42_spill]] %s4862_s14 }
  0x16   :  { %5415 = sst [smem:[#allocation43_spill]] %s4867_s19 }
  0x17   :  { %s4887_s12 = sld [smem:[%s5399_s0 + %s4767_s7]]   ;;  %s4771_s7 = smov 18  }
  0x18   :  { %s4892_s20 = sld [smem:[%s5399_s0 + %s4768_s15]]   ;;  %s4772_s15 = smov 19  }
  0x19   :  { %s4897_s27 = sld [smem:[%s5399_s0 + %s4769_s22]]   ;;  %s4773_s22 = smov 20  }
  0x1a   :  { %5416 = sst [smem:[#allocation44_spill]] %s4882_s6 }
  0x1b   :  { %s4902_s4 = sld [smem:[%s5399_s0 + %s4770_s28]]   ;;  %s4774_s28 = smov 21  }
  0x1c   :  { %s4907_s19 = sld [smem:[%s5399_s0 + %s4771_s7]]   ;;  %s4775_s7 = smov 22  }
  0x1d   :  { %s4912_s25 = sld [smem:[%s5399_s0 + %s4772_s15]]   ;;  %s4776_s15 = smov 23  }
  0x1e   :  { %5417 = sst [smem:[#allocation45_spill]] %s4892_s20 }
  0x1f   :  { %s4917_s9 = sld [smem:[%s5399_s0 + %s4773_s22]]   ;;  %s4777_s22 = smov 24  }
  0x20   :  { %s4927_s20 = sld [smem:[%s5399_s0 + %s4775_s7]]   ;;  %s4779_s7 = smov 26  }
  0x21   :  { %5418 = sst [smem:[#allocation46_spill]] %s4902_s4 }
  0x22   :  { %s4922_s4 = sld [smem:[%s5399_s0 + %s4774_s28]]   ;;  %s4778_s28 = smov 25  }
  0x23   :  { %s4932_s6 = sld [smem:[%s5399_s0 + %s4776_s15]]   ;;  %s4780_s15 = smov 27  }
  0x24   :  { %s4937_s14 = sld [smem:[%s5399_s0 + %s4777_s22]]   ;;  %s4781_s22 = smov 28  }
  0x25   :  { %s4942_s3 = sld [smem:[%s5399_s0 + %s4778_s28]]   ;;  %s4782_s28 = smov 29  }
  0x26   :  { %s4947_s21 = sld [smem:[%s5399_s0 + %s4779_s7]]  }
  0x27   :  { %s4952_s5 = sld [smem:[%s5399_s0 + %s4780_s15]]  }
  0x28   :  { %s4957_s13 = sld [smem:[%s5399_s0 + %s4781_s22]]  }
  0x2b   :  { %5419 = sst [smem:[#allocation47_spill]] %s4942_s3 }
  0x2c   :  { %s4962_s3 = sld [smem:[%s5399_s0 + %s4782_s28]]  }
  0x2d   :  { %65 = vsyncpa [#allocation3], 0 }
  0x2e   :  { %66 = vsyncpa [#allocation5], 0 }
  0x2f   :  { %67 = vsyncpa [#allocation8], 0 }
  0x30   :  { %68 = vsyncpa [#allocation11], 0 }
  0x31   :  { %69 = vsyncpa [#allocation14], 0 }
  0x32   :  { %70 = vsyncpa [#allocation17], 0 }
  0x33   :  { %71 = vsyncpa [#allocation20], 0 }
  0x34   :  { %72 = vsyncpa [#allocation23], 0 }
  0x35   :  { %73 = vsyncpa [#allocation26], 0  ;;  %s4783_s7 = smov [#allocation4]   ;;  %s4784_s11 = smov [#allocation7]  }
  0x36   :  { %s100_s10 = sshll.u32 %s4783_s7, 4  ;;  %s125_s15 = sshll.u32 %s4784_s11, 4  ;;  %s101_s10 = int_to_ptr.vmem [resolvable:$true] %s100_s10  ;;  %s126_s15 = int_to_ptr.vmem [resolvable:$true] %s125_s15 }
  0x37   :  { %s4424_s16 = scalar_lea.vmem %s101_s10, 16  ;;  %s4428_s18 = scalar_lea.vmem %s101_s10, 32 }
  0x38   :  { %p4425_p0 = scmp.ne.s32.totalorder %s101_s10, %s4424_s16  ;;  %p4429_p1 = scmp.lt.s32.totalorder %s101_s10, %s101_s10 }
  0x39   :  { %p4430_p2 = scmp.lt.s32.totalorder %s4428_s18, %s4424_s16 }
  0x3b   :  { %p4431_p3 = por %p4430_p2, %p4429_p1 }
  0x3d   :  { %p4432_p4 = pnand %p4431_p3, %p4425_p0 }
  0x3f   :  { %4435 = shalt.err (!%p4432_p4)
}
  0x40   :  { %103 = dma.hbm_to_vmem [thread:$0]  %s4847_s29, 16, %s101_s10, [#allocation5]  }
  0x41   :  { %s4444_s0 = scalar_lea.vmem %s126_s15, 512  ;;  %p4449_p6 = scmp.lt.s32.totalorder %s126_s15, %s126_s15 }
  0x42   :  { %p4445_p5 = scmp.ne.s32.totalorder %s126_s15, %s4444_s0  ;;  %p4450_p7 = scmp.lt.s32.totalorder %s4444_s0, %s4444_s0 }
  0x44   :  { %p4451_p8 = por %p4450_p7, %p4449_p6 }
  0x46   :  { %p4452_p9 = pnand %p4451_p8, %p4445_p5 }
  0x48   :  { %4455 = shalt.err (!%p4452_p9)
}
  0x49   :  { %s4785_s22 = smov 128   ;;  %s4786_s23 = smov 8  }
  0x4a   :  { %131 = dma.hbm_to_vmem [thread:$0]  %s4872_s24, 512, %s126_s15, [#allocation8], %s4785_s22, %s4785_s22, %s4786_s23  }
  0x4b   :  { %s4787_s26 = smov [#allocation10]   ;;  %s4788_s1 = smov [#allocation13]  }
  0x4c   :  { %s150_s28 = sshll.u32 %s4787_s26, 4  ;;  %s174_s2 = sshll.u32 %s4788_s1, 4  ;;  %s151_s28 = int_to_ptr.vmem [resolvable:$true] %s150_s28  ;;  %s175_s2 = int_to_ptr.vmem [resolvable:$true] %s174_s2 }
  0x4d   :  { %s4464_s29 = scalar_lea.vmem %s151_s28, 16  ;;  %s4468_s7 = scalar_lea.vmem %s151_s28, 32 }
  0x4e   :  { %p4465_p10 = scmp.ne.s32.totalorder %s151_s28, %s4464_s29  ;;  %p4469_p11 = scmp.lt.s32.totalorder %s151_s28, %s151_s28 }
  0x4f   :  { %p4470_p12 = scmp.lt.s32.totalorder %s4468_s7, %s4464_s29 }
  0x51   :  { %p4471_p13 = por %p4470_p12, %p4469_p11 }
  0x53   :  { %p4472_p0 = pnand %p4471_p13, %p4465_p10 }
  0x55   :  { %4475 = shalt.err (!%p4472_p0)
}
  0x56   :  { %153 = dma.hbm_to_vmem [thread:$0]  %s4887_s12, 16, %s151_s28, [#allocation11]  }
  0x57   :  { %s4484_s10 = scalar_lea.vmem %s175_s2, 16  ;;  %s4488_s11 = scalar_lea.vmem %s175_s2, 32 }
  0x58   :  { %p4485_p1 = scmp.ne.s32.totalorder %s175_s2, %s4484_s10  ;;  %p4489_p2 = scmp.lt.s32.totalorder %s175_s2, %s175_s2 }
  0x59   :  { %p4490_p3 = scmp.lt.s32.totalorder %s4488_s11, %s4484_s10 }
  0x5b   :  { %p4491_p4 = por %p4490_p3, %p4489_p2 }
  0x5d   :  { %p4492_p5 = pnand %p4491_p4, %p4485_p1 }
  0x5f   :  { %4495 = shalt.err (!%p4492_p5)
}
  0x60   :  { %177 = dma.hbm_to_vmem [thread:$0]  %s4907_s19, 16, %s175_s2, [#allocation14]  }
  0x61   :  { %s4789_s24 = smov [#allocation16]   ;;  %s4790_s16 = smov [#allocation19]  }
  0x62   :  { %s196_s15 = sshll.u32 %s4789_s24, 4  ;;  %s218_s18 = sshll.u32 %s4790_s16, 4  ;;  %s197_s15 = int_to_ptr.vmem [resolvable:$true] %s196_s15  ;;  %s219_s18 = int_to_ptr.vmem [resolvable:$true] %s218_s18 }
  0x63   :  { %s4504_s0 = scalar_lea.vmem %s197_s15, 32  ;;  %p4509_p7 = scmp.lt.s32.totalorder %s197_s15, %s197_s15 }
  0x64   :  { %p4505_p6 = scmp.ne.s32.totalorder %s197_s15, %s4504_s0  ;;  %p4510_p8 = scmp.lt.s32.totalorder %s4504_s0, %s4504_s0 }
  0x66   :  { %p4511_p9 = por %p4510_p8, %p4509_p7 }
  0x68   :  { %p4512_p10 = pnand %p4511_p9, %p4505_p6 }
  0x6a   :  { %4515 = shalt.err (!%p4512_p10)
}
  0x6b   :  { %199 = dma.hbm_to_vmem [thread:$0]  %s4917_s9, 32, %s197_s15, [#allocation17]  }
  0x6c   :  { %s4524_s12 = scalar_lea.vmem %s219_s18, 128  ;;  %p4529_p12 = scmp.lt.s32.totalorder %s219_s18, %s219_s18 }
  0x6d   :  { %p4525_p11 = scmp.ne.s32.totalorder %s219_s18, %s4524_s12  ;;  %p4530_p13 = scmp.lt.s32.totalorder %s4524_s12, %s4524_s12 }
  0x6f   :  { %p4531_p0 = por %p4530_p13, %p4529_p12 }
  0x71   :  { %p4532_p1 = pnand %p4531_p0, %p4525_p11 }
  0x73   :  { %4535 = shalt.err (!%p4532_p1)
}
  0x74   :  { %221 = dma.hbm_to_vmem [thread:$0]  %s4927_s20, 128, %s219_s18, [#allocation20]  }
  0x75   :  { %s4791_s19 = smov [#allocation22]   ;;  %s4792_s28 = smov [#allocation2]  }
  0x76   :  { %s238_s26 = sshll.u32 %s4791_s19, 4  ;;  %s86_s1 = sshll.u32 %s4792_s28, 4  ;;  %s239_s26 = int_to_ptr.vmem [resolvable:$true] %s238_s26  ;;  %s87_s1 = int_to_ptr.vmem [resolvable:$true] %s86_s1 }
  0x77   :  { %s4544_s2 = scalar_lea.vmem %s239_s26, 128  ;;  %p4549_p3 = scmp.lt.s32.totalorder %s239_s26, %s239_s26 }
  0x78   :  { %p4545_p2 = scmp.ne.s32.totalorder %s239_s26, %s4544_s2  ;;  %p4550_p4 = scmp.lt.s32.totalorder %s4544_s2, %s4544_s2 }
  0x7a   :  { %p4551_p5 = por %p4550_p4, %p4549_p3 }
  0x7c   :  { %p4552_p6 = pnand %p4551_p5, %p4545_p2 }
  0x7e   :  { %4555 = shalt.err (!%p4552_p6)
}
  0x7f   :  { %241 = dma.hbm_to_vmem [thread:$0]  %s4937_s14, 128, %s239_s26, [#allocation23]  }
  0x80   :  { %s4564_s9 = scalar_lea.vmem %s87_s1, 32  ;;  %p4569_p8 = scmp.lt.s32.totalorder %s87_s1, %s87_s1 }
  0x81   :  { %p4565_p7 = scmp.ne.s32.totalorder %s87_s1, %s4564_s9  ;;  %p4570_p9 = scmp.lt.s32.totalorder %s4564_s9, %s4564_s9 }
  0x83   :  { %p4571_p10 = por %p4570_p9, %p4569_p8 }
  0x85   :  { %p4572_p11 = pnand %p4571_p10, %p4565_p7 }
  0x87   :  { %4575 = shalt.err (!%p4572_p11)
}
  0x88   :  { %89 = dma.hbm_to_vmem [thread:$0]  %s4832_s17, 32, %s87_s1, [#allocation3]  }
  0x89   :  { %s4793_s20 = smov [#allocation6]   ;;  %s4794_s7 = smov [#allocation9]  }
  0x8a   :  { %s112_s29 = sshll.u32 %s4793_s20, 4  ;;  %s138_s10 = sshll.u32 %s4794_s7, 4  ;;  %s113_s29 = int_to_ptr.vmem [resolvable:$true] %s112_s29  ;;  %s139_s10 = int_to_ptr.vmem [resolvable:$true] %s138_s10 }
  0x8b   :  { %s4584_s11 = scalar_lea.vmem %s113_s29, 16  ;;  %s4588_s24 = scalar_lea.vmem %s113_s29, 32 }
  0x8c   :  { %p4585_p12 = scmp.ne.s32.totalorder %s113_s29, %s4584_s11  ;;  %p4589_p13 = scmp.lt.s32.totalorder %s113_s29, %s113_s29 }
  0x8d   :  { %p4590_p0 = scmp.lt.s32.totalorder %s4588_s24, %s4584_s11 }
  0x8f   :  { %p4591_p1 = por %p4590_p0, %p4589_p13 }
  0x91   :  { %p4592_p2 = pnand %p4591_p1, %p4585_p12 }
  0x93   :  { %4595 = shalt.err (!%p4592_p2)
}
  0x94   :  { %115 = dma.hbm_to_vmem [thread:$0]  %s4857_s8, 16, %s113_s29, [#allocation5]  }
  0x95   :  { %s4604_s14 = scalar_lea.vmem %s139_s10, 32  ;;  %p4609_p4 = scmp.lt.s32.totalorder %s139_s10, %s139_s10 }
  0x96   :  { %p4605_p3 = scmp.ne.s32.totalorder %s139_s10, %s4604_s14  ;;  %p4610_p5 = scmp.lt.s32.totalorder %s4604_s14, %s4604_s14 }
  0x98   :  { %p4611_p6 = por %p4610_p5, %p4609_p4 }
  0x9a   :  { %p4612_p7 = pnand %p4611_p6, %p4605_p3 }
  0x9c   :  { %4615 = shalt.err (!%p4612_p7)
}
  0x9d   :  { %141 = dma.hbm_to_vmem [thread:$0]  %s4877_s30, 32, %s139_s10, [#allocation8]  }
  0x9e   :  { %s4795_s17 = smov [#allocation12]   ;;  %s4796_s16 = smov [#allocation15]  }
  0x9f   :  { %s162_s15 = sshll.u32 %s4795_s17, 4  ;;  %s183_s18 = sshll.u32 %s4796_s16, 4  ;;  %s163_s15 = int_to_ptr.vmem [resolvable:$true] %s162_s15  ;;  %s184_s18 = int_to_ptr.vmem [resolvable:$true] %s183_s18 }
  0xa0   :  { %s4624_s0 = scalar_lea.vmem %s163_s15, 16  ;;  %s4628_s12 = scalar_lea.vmem %s163_s15, 32 }
  0xa1   :  { %p4625_p8 = scmp.ne.s32.totalorder %s163_s15, %s4624_s0  ;;  %p4629_p9 = scmp.lt.s32.totalorder %s163_s15, %s163_s15 }
  0xa2   :  { %p4630_p10 = scmp.lt.s32.totalorder %s4628_s12, %s4624_s0 }
  0xa4   :  { %p4631_p11 = por %p4630_p10, %p4629_p9 }
  0xa6   :  { %p4632_p12 = pnand %p4631_p11, %p4625_p8 }
  0xa8   :  { %4635 = shalt.err (!%p4632_p12)
}
  0xa9   :  { %165 = dma.hbm_to_vmem [thread:$0]  %s4897_s27, 16, %s163_s15, [#allocation11]  }
  0xaa   :  { %s4644_s8 = scalar_lea.vmem %s184_s18, 512  ;;  %p4649_p0 = scmp.lt.s32.totalorder %s184_s18, %s184_s18 }
  0xab   :  { %p4645_p13 = scmp.ne.s32.totalorder %s184_s18, %s4644_s8  ;;  %p4650_p1 = scmp.lt.s32.totalorder %s4644_s8, %s4644_s8 }
  0xad   :  { %p4651_p2 = por %p4650_p1, %p4649_p0 }
  0xaf   :  { %p4652_p3 = pnand %p4651_p2, %p4645_p13 }
  0xb1   :  { %4655 = shalt.err (!%p4652_p3)
}
  0xb2   :  { %189 = dma.hbm_to_vmem [thread:$0]  %s4912_s25, 512, %s184_s18, [#allocation14], %s4785_s22, %s4785_s22, %s4786_s23  }
  0xb3   :  { %s4797_s30 = smov [#allocation18]  }
  0xb4   :  { %s205_s19 = sshll.u32 %s4797_s30, 4  ;;  %s206_s19 = int_to_ptr.vmem [resolvable:$true] %s205_s19 }
  0xb5   :  { %s4664_s26 = scalar_lea.vmem %s206_s19, 16384  ;;  %p4669_p5 = scmp.lt.s32.totalorder %s206_s19, %s206_s19 }
  0xb6   :  { %p4665_p4 = scmp.ne.s32.totalorder %s206_s19, %s4664_s26  ;;  %p4670_p6 = scmp.lt.s32.totalorder %s4664_s26, %s4664_s26 }
  0xb8   :  { %p4671_p7 = por %p4670_p6, %p4669_p5 }
  0xba   :  { %p4672_p8 = pnand %p4671_p7, %p4665_p4 }
  0xbc   :  { %4675 = shalt.err (!%p4672_p8)
}
  0xbd   :  { %s4798_s27 = smov 512   ;;  %s4799_s28 = smov 32  }
  0xbe   :  { %211 = dma.hbm_to_vmem [thread:$0]  %s4922_s4, 16384, %s206_s19, [#allocation17], %s4798_s27, %s4798_s27, %s4799_s28  }
  0xbf   :  { %s4800_s1 = smov [#allocation21]   ;;  %s4801_s9 = smov [#allocation24]  }
  0xc0   :  { %s228_s2 = sshll.u32 %s4800_s1, 4  ;;  %s248_s25 = sshll.u32 %s4801_s9, 4  ;;  %s229_s2 = int_to_ptr.vmem [resolvable:$true] %s228_s2  ;;  %s249_s25 = int_to_ptr.vmem [resolvable:$true] %s248_s25 }
  0xc1   :  { %s4684_s22 = scalar_lea.vmem %s229_s2, 128  ;;  %p4689_p10 = scmp.lt.s32.totalorder %s229_s2, %s229_s2 }
  0xc2   :  { %p4685_p9 = scmp.ne.s32.totalorder %s229_s2, %s4684_s22  ;;  %p4690_p11 = scmp.lt.s32.totalorder %s4684_s22, %s4684_s22 }
  0xc4   :  { %p4691_p12 = por %p4690_p11, %p4689_p10 }
  0xc6   :  { %p4692_p13 = pnand %p4691_p12, %p4685_p9 }
  0xc8   :  { %4695 = shalt.err (!%p4692_p13)
}
  0xc9   :  { %231 = dma.hbm_to_vmem [thread:$0]  %s4932_s6, 128, %s229_s2, [#allocation20]  }
  0xca   :  { %s4704_s23 = scalar_lea.vmem %s249_s25, 32  ;;  %p4709_p1 = scmp.lt.s32.totalorder %s249_s25, %s249_s25 }
  0xcb   :  { %p4705_p0 = scmp.ne.s32.totalorder %s249_s25, %s4704_s23  ;;  %p4710_p2 = scmp.lt.s32.totalorder %s4704_s23, %s4704_s23 }
  0xcd   :  { %p4711_p3 = por %p4710_p2, %p4709_p1 }
  0xcf   :  { %p4712_p4 = pnand %p4711_p3, %p4705_p0 }
  0xd1   :  { %4715 = shalt.err (!%p4712_p4)
}
  0xd2   :  { %s5420_s4 = sld [smem:[#allocation47_spill]]  ;;  %s4802_s20 = smov [#allocation25]  }
  0xd3   :  { %s258_s29 = sshll.u32 %s4802_s20, 4  ;;  %s259_s29 = int_to_ptr.vmem [resolvable:$true] %s258_s29 }
  0xd4   :  { %s4724_s7 = scalar_lea.vmem %s259_s29, 32  ;;  %p4729_p6 = scmp.lt.s32.totalorder %s259_s29, %s259_s29 }
  0xd5   :  { %p4725_p5 = scmp.ne.s32.totalorder %s259_s29, %s4724_s7  ;;  %p4730_p7 = scmp.lt.s32.totalorder %s4724_s7, %s4724_s7 }
  0xd7   :  { %p4731_p8 = por %p4730_p7, %p4729_p6 }
  0xd8   :  { %251 = dma.hbm_to_vmem [thread:$0]  %s5420_s4, 32, %s249_s25, [#allocation23]  }
  0xd9   :  { %p4732_p9 = pnand %p4731_p8, %p4725_p5 }
  0xdb   :  { %4735 = shalt.err (!%p4732_p9)
}
  0xdc   :  { %261 = dma.hbm_to_vmem [thread:$0]  %s4947_s21, 32, %s259_s29, [#allocation26]  }
  0xdd   :  { %4736 = dma.done.wait [#allocation3], 32  }
  0xde   :  { %4737 = vsyncadd [#allocation3], 4294967264 }
  0xdf   :  { %4738 = dma.done.wait [#allocation5], 32  }
  0xe0   :  { %4739 = vsyncadd [#allocation5], 4294967264 }
  0xe1   :  { %4740 = dma.done.wait [#allocation8], 544  }
  0xe2   :  { %4741 = vsyncadd [#allocation8], 4294966752 }
  0xe3   :  { %4742 = dma.done.wait [#allocation11], 32  }
  0xe4   :  { %4743 = vsyncadd [#allocation11], 4294967264 }
  0xe5   :  { %4744 = dma.done.wait [#allocation14], 528  }
  0xe6   :  { %4745 = vsyncadd [#allocation14], 4294966768 }
  0xe7   :  { %4746 = dma.done.wait [#allocation17], 16416  }
  0xe8   :  { %4747 = vsyncadd [#allocation17], 4294950880 }
  0xe9   :  { %4748 = dma.done.wait [#allocation20], 256  }
  0xea   :  { %4749 = vsyncadd [#allocation20], 4294967040 }
  0xeb   :  { %4750 = dma.done.wait [#allocation23], 160  }
  0xec   :  { %4751 = vsyncadd [#allocation23], 4294967136 }
  0xed   :  { %4752 = dma.done.wait [#allocation26], 32  }
  0xee   :  { %4753 = vsyncadd [#allocation26], 4294967264  ;;  %s5421_s6 = sld [smem:[#allocation38_spill]]  ;;  %v4803_v52 = vmov 0.0   ;;  %v359_v53 = vlaneseq  ;;  %v357_v56 = vld [vmem:[#allocation2] sm:$0x3] }
  0xef   :  { %s5422_s21 = sld [smem:[#allocation36_spill]]  ;;  %vm4804_vm0 = vmmov 0   ;;  %vm888_vm1 = vcmask 261120   ;;  %s4806_s16 = smov 64   ;;  %vm1198_vm2 = vcmask 523264   ;;  %vm1544_vm3 = vcmask 130048  }
  0xf0   :  { %s5423_s10 = sld [smem:[#allocation39_spill]]  ;;  %v5044_v54 = vshrl.u32 %v359_v53, 7  ;;  %s4808_s8 = smov 16   ;;  %vm1547_vm4 = vcmask 785408  }
  0xf1   :  { %s5424_s11 = sld [smem:[#allocation41_spill]] }
  0xf2   :  { %v5047_v55 = vsub.s32 0, %v5044_v54  ;;  %v5050_v57 = vsub.s32 1, %v5044_v54  ;;  %s5425_s24 = sld [smem:[#allocation42_spill]] }
  0xf3   :  { %s5426_s14 = sld [smem:[#allocation44_spill]] }
  0xf4   :  { %v4232_v0 = vld [vmem:[%s5421_s6 + $0x74] ss:$8 sps:$4 sm:$0xff]   ;;  %v4234_v1 = vld [vmem:[%s5421_s6 + $0x70] ss:$8 sps:$4 sm:$0xff]   ;;  %v4235_v2 = vld [vmem:[%s5421_s6 + $0x64] ss:$8 sps:$4 sm:$0xff]   ;;  %v362_v58 = vrot.slane %v357_v56, %v5047_v55  ;;  %v366_v59 = vrot.slane %v357_v56, %v5050_v57 }
  0xf5   :  { %529 = vmatprep.subr.bf16.mxu0 %v4232_v0  ;;  %v4237_v3 = vld [vmem:[%s5421_s6 + $0x60] ss:$8 sps:$4 sm:$0xff]   ;;  %v4238_v4 = vld [vmem:[%s5421_s6 + $0x54] ss:$8 sps:$4 sm:$0xff]   ;;  %v4240_v5 = vld [vmem:[%s5421_s6 + $0x50] ss:$8 sps:$4 sm:$0xff]  }
  0xf6   :  { %530 = vmatpush1.bf16.msra.mxu0 %v4234_v1  ;;  %v4241_v6 = vld [vmem:[%s5421_s6 + $0x44] ss:$8 sps:$4 sm:$0xff]   ;;  %v4243_v7 = vld [vmem:[%s5421_s6 + $0x40] ss:$8 sps:$4 sm:$0xff]   ;;  %v4244_v8 = vld [vmem:[%s5421_s6 + $0x34] ss:$8 sps:$4 sm:$0xff]  }
  0xf7   :  { %531 = vmatprep.subr.bf16.mxu0 %v4235_v2  ;;  %v4246_v9 = vld [vmem:[%s5421_s6 + $0x30] ss:$8 sps:$4 sm:$0xff]   ;;  %v4247_v10 = vld [vmem:[%s5421_s6 + $0x24] ss:$8 sps:$4 sm:$0xff]   ;;  %v4249_v11 = vld [vmem:[%s5421_s6 + $0x20] ss:$8 sps:$4 sm:$0xff]  }
  0xf8   :  { %v4250_v12 = vld [vmem:[%s5421_s6 + $0x14] ss:$8 sps:$4 sm:$0xff]   ;;  %v4252_v13 = vld [vmem:[%s5421_s6 + $0x10] ss:$8 sps:$4 sm:$0xff]   ;;  %v4253_v15 = vld [vmem:[%s5421_s6 + $0x4] ss:$8 sps:$4 sm:$0xff]  }
  0xf9   :  { %v5002_v14 = vld.sshfl [vmem:[%s5422_s21] sm:$0x33 pattern:$0x76325410]  ;;  %v4280_v17 = vld [vmem:[%s5423_s10 + $0x78] sm:$0xff]   ;;  %v4282_v20 = vld [vmem:[%s5423_s10 + $0x70] sm:$0xff]  }
  0xfa   :  { %532 = vmatpush1.bf16.msra.mxu0 %v4237_v3  ;;  %v320_v16 = vcombine.high %v5002_v14, %v5002_v14  ;;  %v4281_v18 = vld [vmem:[%s5423_s10 + $0x38] sm:$0xff]   ;;  %3945 = vmatprep.subr.bf16.mxu1 %v4280_v17  ;;  %v4283_v21 = vld [vmem:[%s5423_s10 + $0x30] sm:$0xff]   ;;  %v4284_v22 = vld [vmem:[%s5423_s10 + $0x68] sm:$0xff]   ;;  %v323_v47 = vpack.c.bf16 %v5002_v14, %v5002_v14  ;;  %s5427_s17 = sld [smem:[#allocation45_spill]] }
  0xfb   :  { %533 = vmatprep.subr.bf16.mxu0 %v4238_v4  ;;  %3946 = vmatpush3.bf16.msra.mxu1 %v4281_v18  ;;  %v4255_v23 = vld [vmem:[%s5421_s6] ss:$8 sps:$4 sm:$0xff]   ;;  %v4256_v24 = vld [vmem:[%s5421_s6 + $0xf4] ss:$8 sps:$4 sm:$0xff]   ;;  %v4258_v27 = vld [vmem:[%s5421_s6 + $0xf0] ss:$8 sps:$4 sm:$0xff]  }
  0xfc   :  { %v324_v19 = vpack.c.bf16 %v320_v16, %v320_v16  ;;  %3947 = vmatprep.subr.bf16.mxu1 %v4282_v20  ;;  %v4285_v25 = vld [vmem:[%s5423_s10 + $0x28] sm:$0xff]   ;;  %v4286_v26 = vld [vmem:[%s5423_s10 + $0x60] sm:$0xff]   ;;  %v4262_v31 = vld [vmem:[%s5421_s6 + $0xd4] ss:$8 sps:$4 sm:$0xff]   ;;  %s5428_s15 = sld [smem:[#allocation46_spill]] }
  0xfd   :  { %v4259_v28 = vld [vmem:[%s5421_s6 + $0xe4] ss:$8 sps:$4 sm:$0xff]   ;;  %v4261_v29 = vld [vmem:[%s5421_s6 + $0xe0] ss:$8 sps:$4 sm:$0xff]   ;;  %v4288_v32 = vld [vmem:[%s5423_s10 + $0x58] sm:$0xff]   ;;  %s5429_s18 = sld [smem:[#allocation37_spill]] }
  0xfe   :  { %534 = vmatpush1.bf16.msra.mxu0 %v4240_v5  ;;  %561 = vmatprep.mubr.bf16.mxu0 %v324_v19  ;;  %v4287_v30 = vld [vmem:[%s5423_s10 + $0x20] sm:$0xff]   ;;  %v4289_v33 = vld [vmem:[%s5423_s10 + $0x18] sm:$0xff]   ;;  %v4290_v34 = vld [vmem:[%s5423_s10 + $0x50] sm:$0xff]   ;;  %s5430_s0 = sld [smem:[#allocation40_spill]] }
  0xff   :  { %535 = vmatprep.subr.bf16.mxu0 %v4241_v6  ;;  %3948 = vmatpush3.bf16.msra.mxu1 %v4283_v21  ;;  %v4264_v35 = vld [vmem:[%s5421_s6 + $0xd0] ss:$8 sps:$4 sm:$0xff]   ;;  %v4265_v36 = vld [vmem:[%s5421_s6 + $0xc4] ss:$8 sps:$4 sm:$0xff]   ;;  %v4267_v38 = vld [vmem:[%s5421_s6 + $0xc0] ss:$8 sps:$4 sm:$0xff]  }
 0x100   :  { %3949 = vmatprep.subr.bf16.mxu1 %v4284_v22  ;;  %v4291_v37 = vld [vmem:[%s5423_s10 + $0x10] sm:$0xff]   ;;  %v4271_v41 = vld [vmem:[%s5421_s6 + $0xa4] ss:$8 sps:$4 sm:$0xff]   ;;  %v4273_v42 = vld [vmem:[%s5421_s6 + $0xa0] ss:$8 sps:$4 sm:$0xff]   ;;  %s5431_s12 = sld [smem:[#allocation43_spill]] }
 0x101   :  { %v4268_v39 = vld [vmem:[%s5421_s6 + $0xb4] ss:$8 sps:$4 sm:$0xff]   ;;  %v4270_v40 = vld [vmem:[%s5421_s6 + $0xb0] ss:$8 sps:$4 sm:$0xff]   ;;  %v4277_v45 = vld [vmem:[%s5421_s6 + $0x84] ss:$8 sps:$4 sm:$0xff]  }
 0x102   :  { %536 = vmatpush1.bf16.msra.mxu0 %v4243_v7  ;;  %v4274_v43 = vld [vmem:[%s5421_s6 + $0x94] ss:$8 sps:$4 sm:$0xff]   ;;  %v4276_v44 = vld [vmem:[%s5421_s6 + $0x90] ss:$8 sps:$4 sm:$0xff]   ;;  %v4279_v46 = vld [vmem:[%s5421_s6 + $0x80] ss:$8 sps:$4 sm:$0xff]  }
 0x103   :  { %537 = vmatprep.subr.bf16.mxu0 %v4244_v8  ;;  %3950 = vmatpush3.bf16.msra.mxu1 %v4285_v25  ;;  %v4292_v48 = vld [vmem:[%s5423_s10 + $0x48] sm:$0xff]   ;;  %v4294_v50 = vld [vmem:[%s5423_s10 + $0x40] sm:$0xff]   ;;  %v4296_v5 = vld [vmem:[%s5424_s11 + $0x38] sm:$0xff]  }
 0x104   :  { %3951 = vmatprep.subr.bf16.mxu1 %v4286_v26  ;;  %v4293_v49 = vld [vmem:[%s5423_s10 + $0x8] sm:$0xff]   ;;  %v4295_v51 = vld [vmem:[%s5423_s10] sm:$0xff]   ;;  %v4297_v7 = vld [vmem:[%s5424_s11 + $0x30] sm:$0xff]  }
 0x105   :  { %v4298_v8 = vld [vmem:[%s5424_s11 + $0x28] sm:$0xff]   ;;  %v5081_v14 = vld [vmem:[#allocation7 + $0x14] ss:$8 sps:$4 sm:$0xff]  }
 0x106   :  { %538 = vmatpush1.bf16.msra.mxu0 %v4246_v9  ;;  %v4299_v9 = vld [vmem:[%s5424_s11 + $0x20] sm:$0xff]   ;;  %v4307_v25 = vld [vmem:[%s5425_s24 + $0x8] sm:$0xff]  }
 0x107   :  { %539 = vmatprep.subr.bf16.mxu0 %v4247_v10  ;;  %3952 = vmatpush3.bf16.msra.mxu1 %v4287_v30  ;;  %v4300_v10 = vld [vmem:[%s5424_s11 + $0x18] sm:$0xff]   ;;  %v3666_v16 = vld [vmem:[#allocation4] ss:$0 sm:$0xff]  ;;  %v5091_v26 = vld [vmem:[#allocation7 + $0x4] ss:$8 sps:$4 sm:$0xff]  }
 0x108   :  { %3953 = vmatprep.subr.bf16.mxu1 %v4288_v32  ;;  %v4312_v30 = vld [vmem:[%s5426_s14 + $0x78] sm:$0xff]   ;;  %v4326_v53 = vld [vmem:[%s5426_s14 + $0x40] sm:$0xff]  }
 0x109   :  { %v4327_v56 = vld [vmem:[%s5426_s14] sm:$0xff]  }
 0x10a   :  { %540 = vmatpush1.bf16.msra.mxu0 %v4249_v11  ;;  %v4301_v11 = vld [vmem:[%s5424_s11 + $0x10] sm:$0xff]  }
 0x10b   :  { %541 = vmatprep.subr.bf16.mxu0 %v4250_v12  ;;  %3954 = vmatpush3.bf16.msra.mxu1 %v4289_v33  ;;  %v4302_v12 = vld [vmem:[%s5424_s11 + $0x8] sm:$0xff]  }
 0x10c   :  { %3955 = vmatprep.subr.bf16.mxu1 %v4290_v34 }
 0x10e   :  { %542 = vmatpush1.bf16.msra.mxu0 %v4252_v13  ;;  %v4303_v13 = vld [vmem:[%s5424_s11] sm:$0xff]  }
 0x10f   :  { %543 = vmatprep.subr.bf16.mxu0 %v4253_v15  ;;  %3956 = vmatpush3.bf16.msra.mxu1 %v4291_v37  ;;  %v4313_v37 = vld [vmem:[%s5426_s14 + $0x38] sm:$0xff]  }
 0x110   :  { %3957 = vmatprep.subr.bf16.mxu1 %v4292_v48  ;;  %v4322_v48 = vld [vmem:[%s5426_s14 + $0x50] sm:$0xff]  }
 0x112   :  { %544 = vmatpush1.bf16.msra.mxu0 %v4255_v23  ;;  %v5087_v23 = vld [vmem:[#allocation7 + $0x10] ss:$8 sps:$4 sm:$0xff]  }
 0x113   :  { %545 = vmatprep.subr.bf16.mxu0 %v4256_v24  ;;  %3958 = vmatpush3.bf16.msra.mxu1 %v4293_v49  ;;  %v4323_v49 = vld [vmem:[%s5426_s14 + $0x10] sm:$0xff]  }
 0x114   :  { %3959 = vmatprep.subr.bf16.mxu1 %v4294_v50  ;;  %v4324_v50 = vld [vmem:[%s5426_s14 + $0x48] sm:$0xff]  }
 0x116   :  { %546 = vmatpush2.bf16.msra.mxu0 %v4258_v27  ;;  %v5094_v27 = vld [vmem:[#allocation7] ss:$8 sps:$4 sm:$0xff]  }
 0x117   :  { %547 = vmatprep.subr.bf16.mxu0 %v4259_v28  ;;  %3960 = vmatpush3.bf16.msra.mxu1 %v4295_v51  ;;  %v4311_v28 = vld [vmem:[%s5425_s24] sm:$0xff]   ;;  %v4325_v51 = vld [vmem:[%s5426_s14 + $0x8] sm:$0xff]  }
 0x118   :  { %4090 = vmatprep.subr.bf16.mxu1 %v4803_v52 }
 0x11a   :  { %548 = vmatpush2.bf16.msra.mxu0 %v4261_v29  ;;  %v4805_v29 = vmov 0  }
 0x11b   :  { %549 = vmatprep.subr.bf16.mxu0 %v4262_v31  ;;  %4229 = vset.pattern.permute.xlu1 %v4805_v29  ;;  %v5102_v31 = vld [vmem:[#allocation6] ss:$0 sm:$0xff] }
 0x11e   :  { %550 = vmatpush2.bf16.msra.mxu0 %v4264_v35 }
 0x11f   :  { %551 = vmatprep.subr.bf16.mxu0 %v4265_v36 }
 0x122   :  { %552 = vmatpush2.bf16.msra.mxu0 %v4267_v38 }
 0x123   :  { %553 = vmatprep.subr.bf16.mxu0 %v4268_v39  ;;  %v4314_v39 = vld [vmem:[%s5426_s14 + $0x70] sm:$0xff]  }
 0x126   :  { %554 = vmatpush2.bf16.msra.mxu0 %v4270_v40 }
 0x127   :  { %555 = vmatprep.subr.bf16.mxu0 %v4271_v41  ;;  %v4315_v41 = vld [vmem:[%s5426_s14 + $0x30] sm:$0xff]  }
 0x12a   :  { %556 = vmatpush2.bf16.msra.mxu0 %v4273_v42  ;;  %v4316_v42 = vld [vmem:[%s5426_s14 + $0x68] sm:$0xff]  }
 0x12b   :  { %557 = vmatprep.subr.bf16.mxu0 %v4274_v43  ;;  %v4317_v43 = vld [vmem:[%s5426_s14 + $0x28] sm:$0xff]  }
 0x12e   :  { %558 = vmatpush2.bf16.msra.mxu0 %v4276_v44  ;;  %v4318_v44 = vld [vmem:[%s5426_s14 + $0x60] sm:$0xff]  }
 0x12f   :  { %559 = vmatprep.subr.bf16.mxu0 %v4277_v45  ;;  %v4319_v45 = vld [vmem:[%s5426_s14 + $0x20] sm:$0xff]  }
 0x132   :  { %560 = vmatpush2.bf16.msra.mxu0 %v4279_v46  ;;  %v4320_v46 = vld [vmem:[%s5426_s14 + $0x58] sm:$0xff]  }
 0x133   :  { %4110 = vmatprep.subr.bf16.mxu0 %v4803_v52 }
 0x135   :  { %562 = vmatmul.mubr.bf16.vlgmr.msra.gmra.mxu0 %v323_v47  ;;  %v4321_v47 = vld [vmem:[%s5426_s14 + $0x18] sm:$0xff]  }
 0x136   :  { %4114 = vmatprep.mubr.msk.bf16.mxu0 %vm4804_vm0, %v4803_v52  ;;  %4111 = vmatpush3.bf16.msra.mxu0 %v4307_v25  ;;  %v4337_v25 = vld [vmem:[%s5427_s17 + $0x18] sm:$0xff]  }
 0x137   :  { %4112 = vmatprep.subr.bf16.mxu0 %v4803_v52 }
 0x13a   :  { %4113 = vmatpush3.bf16.msra.mxu0 %v4311_v28  ;;  %v4338_v28 = vld [vmem:[%s5427_s17 + $0x50] sm:$0xff]  }
 0x13b   :  { %3979 = vmatprep.subr.bf16.mxu0 %v4312_v30  ;;  %v4339_v30 = vld [vmem:[%s5427_s17 + $0x10] sm:$0xff]  }
 0x1f5   :  { %v563_v60 = vpop.f32.mrf.mxu0 }
 0x1f6   :  { %v564_v61 = vadd.f32 %v563_v60, %v362_v58  ;;  %v936_v58 = vld [vmem:[#allocation9] sm:$0x3] }
 0x1f7   :  { %v565_v62 = vpop.f32.mrf.mxu0  ;;  %v945_v60 = vrot.slane %v936_v58, %v5050_v57 }
 0x1f8   :  { %v566_v63 = vadd.f32 %v565_v62, %v366_v59  ;;  %v5054_v0 = vmax.f32 %v564_v61, 0.0  ;;  %v941_v59 = vrot.slane %v936_v58, %v5047_v55  ;;  %v5162_v58 = vld [vmem:[#allocation15 + $0x14] ss:$8 sps:$4 sm:$0xff]  }
 0x1f9   :  { %v567_v1 = vpop.f32.mrf.mxu0 }
 0x1fa   :  { %v5056_v2 = vmax.f32 %v566_v63, 0.0  ;;  %v572_v6 = vpack.c.bf16 %v5054_v0, %v5054_v0 }
 0x1fb   :  { %v568_v3 = vpop.f32.mrf.mxu0 }
 0x1fc   :  { %v573_v4 = vpack.c.bf16 %v5056_v2, %v5056_v2 }
 0x1fe   :  { %741 = vmatprep.mubr.bf16.mxu1 %v573_v4 }
 0x1ff   :  { %742 = vmatmul.mubr.bf16.vlgmr.msra.gmra.mxu1 %v572_v6 }
 0x200   :  { %4091 = vmatpush3.bf16.msra.mxu1 %v4296_v5  ;;  %4106 = vmatprep.mubr.msk.bf16.mxu1 %vm4804_vm0, %v4803_v52 }
 0x201   :  { %4092 = vmatprep.subr.bf16.mxu1 %v4803_v52 }
 0x204   :  { %4093 = vmatpush3.bf16.msra.mxu1 %v4297_v7 }
 0x205   :  { %4094 = vmatprep.subr.bf16.mxu1 %v4803_v52 }
 0x208   :  { %4095 = vmatpush3.bf16.msra.mxu1 %v4298_v8 }
 0x209   :  { %4096 = vmatprep.subr.bf16.mxu1 %v4803_v52 }
 0x20c   :  { %4097 = vmatpush3.bf16.msra.mxu1 %v4299_v9 }
 0x20d   :  { %4098 = vmatprep.subr.bf16.mxu1 %v4803_v52 }
 0x210   :  { %4099 = vmatpush3.bf16.msra.mxu1 %v4300_v10 }
 0x211   :  { %4100 = vmatprep.subr.bf16.mxu1 %v4803_v52 }
 0x214   :  { %4101 = vmatpush3.bf16.msra.mxu1 %v4301_v11 }
 0x215   :  { %4102 = vmatprep.subr.bf16.mxu1 %v4803_v52 }
 0x218   :  { %4103 = vmatpush3.bf16.msra.mxu1 %v4302_v12 }
 0x219   :  { %4104 = vmatprep.subr.bf16.mxu1 %v4803_v52 }
 0x21c   :  { %4105 = vmatpush3.bf16.msra.mxu1 %v4303_v13  ;;  %v4328_v13 = vld [vmem:[%s5427_s17 + $0x78] sm:$0xff]  }
 0x21d   :  { %980 = vmatprep.subr.bf16.mxu1 %v5081_v14 }
 0x2bf   :  { %v3961_v15 = vpop.f32.mrf.mxu1 }
 0x2c1   :  { %v3962_v17 = vpop.f32.mrf.mxu1 }
 0x2c2   :  { %v3963_v18 = vadd.f32 %v3962_v17, %v3961_v15  ;;  %v4329_v15 = vld [vmem:[%s5427_s17 + $0x38] sm:$0xff]   ;;  %v4331_v17 = vld [vmem:[%s5427_s17 + $0x30] sm:$0xff]  }
 0x2c3   :  { %v3964_v19 = vpop.f32.mrf.mxu1 }
 0x2c4   :  { %v5084_v20 = vadd.f32 %v3963_v18, %v3666_v16  ;;  %v4330_v16 = vld [vmem:[%s5427_s17 + $0x70] sm:$0xff]   ;;  %v4332_v18 = vld [vmem:[%s5427_s17 + $0x68] sm:$0xff]  }
 0x2c5   :  { %v3965_v21 = vpop.f32.mrf.mxu1  ;;  %v4333_v19 = vld [vmem:[%s5427_s17 + $0x28] sm:$0xff]  }
 0x2c6   :  { %v750_v22 = vmax.f32 %v5084_v20, 0.0  ;;  %v4334_v21 = vld [vmem:[%s5427_s17 + $0x60] sm:$0xff]  }
 0x2c8   :  { %v751_v24 = vpack.c.bf16 %v750_v22, %v750_v22  ;;  %v4335_v22 = vld [vmem:[%s5427_s17 + $0x20] sm:$0xff]  }
 0x2ca   :  { %4107 = vmatmul.mubr.bf16.vlgmr.msra.gmra.mxu1 %v751_v24  ;;  %v4336_v24 = vld [vmem:[%s5427_s17 + $0x58] sm:$0xff]  }
 0x2cb   :  { %981 = vmatpush1.bf16.msra.mxu1 %v5087_v23  ;;  %1000 = vmatprep.mubr.bf16.mxu1 %v4805_v29 }
 0x2cc   :  { %982 = vmatprep.subr.bf16.mxu1 %v5091_v26 }
 0x2cf   :  { %983 = vmatpush1.bf16.msra.mxu1 %v5094_v27 }
 0x2d0   :  { %4001 = vmatprep.subr.bf16.mxu1 %v4328_v13  ;;  %v4356_v13 = vld [vmem:[%s5424_s11 + $0x38] sm:$0xff]  }
 0x38a   :  { %v857_v32 = vpop.f32.mrf.mxu1 }
 0x38b   :  { %v858_v33 = vadd.f32 %v5102_v31, %v857_v32  ;;  %v4340_v32 = vld [vmem:[%s5427_s17 + $0x48] sm:$0xff]  }
 0x38c   :  { %v4108_v34 = vpop.f32.mrf.mxu1 }
 0x38d   :  { %v863_v35 = vmax.f32 %v858_v33, 0.0  ;;  %v4341_v33 = vld [vmem:[%s5427_s17 + $0x8] sm:$0xff]  }
 0x38e   :  { %v860_v36 = vpop.f32.mrf.mxu1 }
 0x38f   :  { %v864_v38 = vpack.c.bf16 %v863_v35, %v863_v35  ;;  %v5143_v35 = vld [vmem:[#allocation10] ss:$0 sm:$0xff] }
 0x390   :  { %v4109_v40 = vpop.f32.mrf.mxu1 }
 0x391   :  { %4115 = vmatmul.mubr.msk.bf16.vlgmr.msra.gmra.mxu0 %vm888_vm1, %v864_v38  ;;  %3700 = vmatmul.mubr.msk.bf16.vlgmr.msra.gmra.mxu1 %vm888_vm1, %v864_v38 }
 0x392   :  { %3980 = vmatpush3.bf16.msra.mxu0 %v4313_v37  ;;  %4002 = vmatpush3.bf16.msra.mxu1 %v4329_v15  ;;  %v4353_v15 = vld [vmem:[%s5430_s0 + $0x10] sm:$0xff]  }
 0x393   :  { %3981 = vmatprep.subr.bf16.mxu0 %v4314_v39  ;;  %4003 = vmatprep.subr.bf16.mxu1 %v4330_v16  ;;  %v4357_v16 = vld [vmem:[%s5424_s11 + $0x30] sm:$0xff]  }
 0x396   :  { %3982 = vmatpush3.bf16.msra.mxu0 %v4315_v41  ;;  %4004 = vmatpush3.bf16.msra.mxu1 %v4331_v17  ;;  %v4354_v17 = vld [vmem:[%s5430_s0 + $0x8] sm:$0xff]  }
 0x397   :  { %3983 = vmatprep.subr.bf16.mxu0 %v4316_v42  ;;  %4005 = vmatprep.subr.bf16.mxu1 %v4332_v18  ;;  %v4358_v18 = vld [vmem:[%s5424_s11 + $0x28] sm:$0xff]  }
 0x39a   :  { %3984 = vmatpush3.bf16.msra.mxu0 %v4317_v43  ;;  %4006 = vmatpush3.bf16.msra.mxu1 %v4333_v19  ;;  %v4355_v19 = vld [vmem:[%s5430_s0] sm:$0xff]  }
 0x39b   :  { %3985 = vmatprep.subr.bf16.mxu0 %v4318_v44  ;;  %4007 = vmatprep.subr.bf16.mxu1 %v4334_v21  ;;  %v4342_v44 = vld [vmem:[%s5427_s17 + $0x40] sm:$0xff]  }
 0x39e   :  { %3986 = vmatpush3.bf16.msra.mxu0 %v4319_v45  ;;  %4008 = vmatpush3.bf16.msra.mxu1 %v4335_v22  ;;  %v4343_v45 = vld [vmem:[%s5427_s17] sm:$0xff]  }
 0x39f   :  { %3987 = vmatprep.subr.bf16.mxu0 %v4320_v46  ;;  %4009 = vmatprep.subr.bf16.mxu1 %v4336_v24  ;;  %v4359_v22 = vld [vmem:[%s5424_s11 + $0x20] sm:$0xff]   ;;  %v4360_v24 = vld [vmem:[%s5424_s11 + $0x18] sm:$0xff]  }
 0x3a2   :  { %3988 = vmatpush3.bf16.msra.mxu0 %v4321_v47  ;;  %4010 = vmatpush3.bf16.msra.mxu1 %v4337_v25  ;;  %v4361_v25 = vld [vmem:[%s5424_s11 + $0x10] sm:$0xff]  }
 0x3a3   :  { %3989 = vmatprep.subr.bf16.mxu0 %v4322_v48  ;;  %4011 = vmatprep.subr.bf16.mxu1 %v4338_v28  ;;  %v4362_v28 = vld [vmem:[%s5424_s11 + $0x8] sm:$0xff]  }
 0x3a6   :  { %3990 = vmatpush3.bf16.msra.mxu0 %v4323_v49  ;;  %4012 = vmatpush3.bf16.msra.mxu1 %v4339_v30  ;;  %v4363_v30 = vld [vmem:[%s5424_s11] sm:$0xff]  }
 0x3a7   :  { %3991 = vmatprep.subr.bf16.mxu0 %v4324_v50  ;;  %4013 = vmatprep.subr.bf16.mxu1 %v4340_v32  ;;  %v4364_v32 = vld [vmem:[%s5425_s24 + $0x8] sm:$0xff]  }
 0x3aa   :  { %3992 = vmatpush3.bf16.msra.mxu0 %v4325_v51  ;;  %4014 = vmatpush3.bf16.msra.mxu1 %v4341_v33 }
 0x3ab   :  { %3993 = vmatprep.subr.bf16.mxu0 %v4326_v53  ;;  %4015 = vmatprep.subr.bf16.mxu1 %v4342_v44 }
 0x3ae   :  { %3994 = vmatpush3.bf16.msra.mxu0 %v4327_v56  ;;  %4016 = vmatpush3.bf16.msra.mxu1 %v4343_v45  ;;  %v4344_v56 = vld [vmem:[%s5428_s15 + $0x8] sm:$0xff]  }
 0x3af   :  { %4118 = vmatprep.subr.bf16.mxu0 %v4803_v52  ;;  %1495 = vmatprep.subr.bf16.mxu1 %v5162_v58 }
 0x451   :  { %v5125_v61 = vpop.f32.mrf.mxu0  ;;  %v1002_v62 = vpop.f32.mrf.mxu1 }
 0x452   :  { %v1003_v63 = vadd.f32 %v1002_v62, %v941_v59  ;;  %v5164_v59 = vld [vmem:[#allocation15 + $0x10] ss:$8 sps:$4 sm:$0xff]   ;;  %v5170_v62 = vld [vmem:[#allocation15 + $0x4] ss:$8 sps:$4 sm:$0xff]  }
 0x453   :  { %v4116_v1 = vpop.f32.mrf.mxu0  ;;  %v1004_v3 = vpop.f32.mrf.mxu1 }
 0x454   :  { %v1005_v4 = vadd.f32 %v1004_v3, %v945_v60  ;;  %v1009_v5 = vmax.f32 %v1003_v63, 0.0  ;;  %v4348_v60 = vld [vmem:[%s5428_s15] sm:$0xff]   ;;  %v5172_v63 = vld [vmem:[#allocation15] ss:$8 sps:$4 sm:$0xff]  }
 0x455   :  { %v929_v6 = vpop.f32.mrf.mxu0  ;;  %v1006_v7 = vpop.f32.mrf.mxu1  ;;  %v5179_v1 = vld [vmem:[%s5429_s18] sm:$0x3] }
 0x456   :  { %v1010_v8 = vmax.f32 %v1005_v4, 0.0  ;;  %v1011_v12 = vpack.c.bf16 %v1009_v5, %v1009_v5  ;;  %1530 = vperm.xlu1 %4229, %v5179_v1   ;;  %v5182_v4 = vld [vmem:[#allocation12] ss:$0 sm:$0xff] }
 0x457   :  { %v4117_v9 = vpop.f32.mrf.mxu0  ;;  %v1007_v10 = vpop.f32.mrf.mxu1 }
 0x458   :  { %v1012_v11 = vpack.c.bf16 %v1010_v8, %v1010_v8 }
 0x45a   :  { %1180 = vmatprep.mubr.bf16.mxu0 %v1012_v11  ;;  %v4352_v11 = vld [vmem:[%s5430_s0 + $0x18] sm:$0xff]  }
 0x45b   :  { %1181 = vmatmul.mubr.bf16.vlgmr.msra.gmra.mxu0 %v1011_v12 }
 0x45c   :  { %4122 = vmatprep.mubr.msk.bf16.mxu0 %vm4804_vm0, %v4803_v52  ;;  %4119 = vmatpush3.bf16.msra.mxu0 %v4344_v56 }
 0x45d   :  { %4120 = vmatprep.subr.bf16.mxu0 %v4803_v52 }
 0x460   :  { %4121 = vmatpush3.bf16.msra.mxu0 %v4348_v60 }
 0x461   :  { %4126 = vmatprep.subr.bf16.mxu0 %v4803_v52 }
 0x51b   :  { %v3995_v34 = vpop.f32.mrf.mxu0 }
 0x51d   :  { %v3996_v36 = vpop.f32.mrf.mxu0 }
 0x51e   :  { %v3997_v37 = vadd.f32 %v3996_v36, %v3995_v34 }
 0x51f   :  { %v3998_v38 = vpop.f32.mrf.mxu0 }
 0x520   :  { %v1183_v39 = vadd.f32 %v3997_v37, %v5143_v35 }
 0x521   :  { %v3999_v40 = vpop.f32.mrf.mxu0 }
 0x522   :  { %v3718_v41 = vmul.f32 -1.442695, %v1183_v39 }
 0x524   :  { %4400 = vpow2.f32 %v3718_v41 }
 0x531   :  { %v4401_v42 = vpop.eup %4400 }
 0x532   :  { %v1191_v43 = vadd.f32 1.0, %v4401_v42 }
 0x534   :  { %4402 = vrcp.f32 %v1191_v43 }
 0x541   :  { %v5148_v46 = vpop.eup %4402 }
 0x542   :  { %1195 = vrot.lane.b32.xlu0 %v5148_v46, %s4806_s16  ;;  %v1550_v21 = vpack.c.bf16 %v5148_v46, %v5148_v46 }
 0x5b4   :  { %v1196_v47 = vpop.permute.xlu0 %1195 }
 0x5b5   :  { %v5154_v48 = vsel %vm1198_vm2, %v5148_v46, %v1196_v47 }
 0x5b6   :  { %v1200_v49 = vmul.f32 %v5154_v48, %v5054_v0  ;;  %v1201_v50 = vmul.f32 %v5154_v48, %v5056_v2 }
 0x5b8   :  { %v1202_v51 = vpack.c.bf16 %v1200_v49, %v1200_v49  ;;  %v1203_v53 = vpack.c.bf16 %v1201_v50, %v1201_v50 }
 0x5ba   :  { %1371 = vmatprep.mubr.bf16.mxu1 %v1203_v53  ;;  %v4807_v53 = vmov 1  }
 0x5bb   :  { %1372 = vmatmul.mubr.bf16.vlgmr.msra.gmra.mxu1 %v1202_v51  ;;  %v4365_v51 = vld [vmem:[%s5425_s24] sm:$0xff]   ;;  %4230 = vset.pattern.permute.xlu1 %v4807_v53 }
 0x5bc   :  { %1515 = vmatprep.mubr.bf16.mxu1 %v4805_v29  ;;  %1496 = vmatpush1.bf16.msra.mxu1 %v5164_v59 }
 0x5bd   :  { %1497 = vmatprep.subr.bf16.mxu1 %v5170_v62  ;;  %4231 = vset.pattern.permute.xlu0 %v4807_v53  ;;  %v4384_v53 = vld [vmem:[%s5427_s17 + $0x70] sm:$0xff]  }
 0x5be   :  { %2404 = vperm.xlu1 %4230, %v5179_v1   ;;  %v4368_v1 = vld [vmem:[%s5426_s14 + $0x70] sm:$0xff]  }
 0x5c0   :  { %1498 = vmatpush1.bf16.msra.mxu1 %v5172_v63 }
 0x5c1   :  { %4138 = vmatprep.subr.bf16.mxu1 %v4803_v52 }
 0x67b   :  { %v4017_v3 = vpop.f32.mrf.mxu1 }
 0x67d   :  { %v4018_v5 = vpop.f32.mrf.mxu1 }
 0x67e   :  { %v4019_v6 = vadd.f32 %v4018_v5, %v4017_v3 }
 0x67f   :  { %v4020_v7 = vpop.f32.mrf.mxu1 }
 0x680   :  { %v1374_v8 = vadd.f32 %v4019_v6, %v5182_v4 }
 0x681   :  { %v4021_v9 = vpop.f32.mrf.mxu1 }
 0x682   :  { %v1379_v10 = vmax.f32 %v1374_v8, 0.0  ;;  %v4369_v8 = vld [vmem:[%s5426_s14 + $0x30] sm:$0xff]   ;;  %v4372_v9 = vld [vmem:[%s5426_s14 + $0x60] sm:$0xff]  }
 0x684   :  { %v1380_v12 = vpack.c.bf16 %v1379_v10, %v1379_v10  ;;  %v4374_v10 = vld [vmem:[%s5426_s14 + $0x58] sm:$0xff]  }
 0x686   :  { %4123 = vmatmul.mubr.msk.bf16.vlgmr.msra.gmra.mxu0 %vm888_vm1, %v1380_v12  ;;  %3744 = vmatmul.mubr.msk.bf16.vlgmr.msra.gmra.mxu1 %vm888_vm1, %v1380_v12  ;;  %v4376_v12 = vld [vmem:[%s5426_s14 + $0x50] sm:$0xff]  }
 0x687   :  { %4127 = vmatpush3.bf16.msra.mxu0 %v4352_v11  ;;  %4134 = vmatprep.mubr.msk.bf16.mxu0 %vm4804_vm0, %v4803_v52  ;;  %v4375_v11 = vld [vmem:[%s5426_s14 + $0x18] sm:$0xff]  }
 0x688   :  { %4128 = vmatprep.subr.bf16.mxu0 %v4803_v52  ;;  %4139 = vmatpush3.bf16.msra.mxu1 %v4356_v13  ;;  %v4377_v13 = vld [vmem:[%s5426_s14 + $0x10] sm:$0xff]  }
 0x689   :  { %4140 = vmatprep.subr.bf16.mxu1 %v4803_v52  ;;  %4154 = vmatprep.mubr.msk.bf16.mxu1 %vm4804_vm0, %v4803_v52 }
 0x68b   :  { %4129 = vmatpush3.bf16.msra.mxu0 %v4353_v15  ;;  %v4378_v15 = vld [vmem:[%s5426_s14 + $0x48] sm:$0xff]  }
 0x68c   :  { %4130 = vmatprep.subr.bf16.mxu0 %v4803_v52  ;;  %4141 = vmatpush3.bf16.msra.mxu1 %v4357_v16  ;;  %v4379_v16 = vld [vmem:[%s5426_s14 + $0x8] sm:$0xff]  }
 0x68d   :  { %4142 = vmatprep.subr.bf16.mxu1 %v4803_v52 }
 0x68f   :  { %4131 = vmatpush3.bf16.msra.mxu0 %v4354_v17  ;;  %v4380_v17 = vld [vmem:[%s5426_s14 + $0x40] sm:$0xff]  }
 0x690   :  { %4132 = vmatprep.subr.bf16.mxu0 %v4803_v52  ;;  %4143 = vmatpush3.bf16.msra.mxu1 %v4358_v18  ;;  %v4381_v18 = vld [vmem:[%s5426_s14] sm:$0xff]  }
 0x691   :  { %4144 = vmatprep.subr.bf16.mxu1 %v4803_v52 }
 0x693   :  { %4133 = vmatpush3.bf16.msra.mxu0 %v4355_v19  ;;  %v5256_v19 = vld [vmem:[%s5431_s12] ss:$0 sm:$0xff] }
 0x694   :  { %4158 = vmatprep.subr.bf16.mxu0 %v4803_v52  ;;  %4145 = vmatpush3.bf16.msra.mxu1 %v4359_v22 }
 0x695   :  { %4146 = vmatprep.subr.bf16.mxu1 %v4803_v52 }
 0x696   :  { %4135 = vmatmul.mubr.msk.bf16.vlgmr.msra.gmra.mxu0 %vm1198_vm2, %v1550_v21 }
 0x697   :  { %4162 = vmatprep.mubr.msk.bf16.mxu0 %vm4804_vm0, %v4803_v52  ;;  %4159 = vmatpush3.bf16.msra.mxu0 %v4364_v32 }
 0x698   :  { %4147 = vmatpush3.bf16.msra.mxu1 %v4360_v24  ;;  %4160 = vmatprep.subr.bf16.mxu0 %v4803_v52 }
 0x699   :  { %4148 = vmatprep.subr.bf16.mxu1 %v4803_v52 }
 0x69b   :  { %4161 = vmatpush3.bf16.msra.mxu0 %v4365_v51  ;;  %v4383_v51 = vld [vmem:[%s5427_s17 + $0x38] sm:$0xff]  }
 0x69c   :  { %4149 = vmatpush3.bf16.msra.mxu1 %v4361_v25  ;;  %1856 = vmatprep.subr.bf16.mxu0 %v5081_v14  ;;  %v4366_v14 = vld [vmem:[%s5426_s14 + $0x78] sm:$0xff]   ;;  %v1812_v25 = vld [vmem:[#allocation9] sm:$0x3] }
 0x69d   :  { %4150 = vmatprep.subr.bf16.mxu1 %v4803_v52 }
 0x6a0   :  { %4151 = vmatpush3.bf16.msra.mxu1 %v4362_v28 }
 0x6a1   :  { %4152 = vmatprep.subr.bf16.mxu1 %v4803_v52 }
 0x6a4   :  { %4153 = vmatpush3.bf16.msra.mxu1 %v4363_v30  ;;  %v1817_v30 = vrot.slane %v1812_v25, %v5047_v55 }
 0x746   :  { %v5221_v33 = vpop.f32.mrf.mxu0  ;;  %v5223_v34 = vpop.f32.mrf.mxu1 }
 0x748   :  { %v4124_v36 = vpop.f32.mrf.mxu0  ;;  %v5225_v37 = vpop.f32.mrf.mxu1 }
 0x749   :  { %v1821_v36 = vrot.slane %v1812_v25, %v5050_v57  ;;  %v5296_v25 = vld [vmem:[#allocation13] ss:$0 sm:$0xff] }
 0x74a   :  { %v1444_v38 = vpop.f32.mrf.mxu0  ;;  %v1521_v39 = vpop.f32.mrf.mxu1 }
 0x74c   :  { %v4125_v40 = vpop.f32.mrf.mxu0  ;;  %v1522_v41 = vpop.f32.mrf.mxu1 }
 0x756   :  { %v1620_v42 = vpop.f32.mrf.mxu0 }
 0x757   :  { %v1626_v43 = vadd.f32 %v1620_v42, %v5084_v20 }
 0x758   :  { %v4136_v44 = vpop.f32.mrf.mxu0 }
 0x759   :  { %v1627_v45 = vmax.f32 %v1626_v43, 0.0 }
 0x75a   :  { %v1623_v47 = vpop.f32.mrf.mxu0 }
 0x75b   :  { %v1628_v49 = vpack.c.bf16 %v1627_v45, %v1627_v45 }
 0x75c   :  { %v4137_v50 = vpop.f32.mrf.mxu0 }
 0x75d   :  { %4155 = vmatmul.mubr.bf16.vlgmr.msra.gmra.mxu1 %v1628_v49  ;;  %v4382_v50 = vld [vmem:[%s5427_s17 + $0x78] sm:$0xff]  }
 0x75e   :  { %4065 = vmatprep.subr.bf16.mxu1 %v4382_v50  ;;  %v2477_v50 = vld [vmem:[#allocation18 + $0x1a0] sm:$0xff] }
 0x75f   :  { %4066 = vmatpush3.bf16.msra.mxu1 %v4383_v51  ;;  %v2474_v51 = vld [vmem:[#allocation18 + $0x188] sm:$0xff] }
 0x760   :  { %4067 = vmatprep.subr.bf16.mxu1 %v4384_v53  ;;  %v2478_v53 = vld [vmem:[#allocation18 + $0x1a8] sm:$0xff] }
 0x81d   :  { %v1734_v56 = vpop.f32.mrf.mxu1 }
 0x81e   :  { %v1735_v20 = vadd.f32 %v5102_v31, %v1734_v56  ;;  %v4367_v31 = vld [vmem:[%s5426_s14 + $0x38] sm:$0xff]   ;;  %v4385_v56 = vld [vmem:[%s5427_s17 + $0x30] sm:$0xff]  }
 0x81f   :  { %v4156_v60 = vpop.f32.mrf.mxu1  ;;  %4068 = vmatpush3.bf16.msra.mxu1 %v4385_v56 }
 0x820   :  { %v1740_v3 = vmax.f32 %v1735_v20, 0.0  ;;  %v4386_v20 = vld [vmem:[%s5427_s17 + $0x68] sm:$0xff]  }
 0x821   :  { %v1737_v5 = vpop.f32.mrf.mxu1  ;;  %v4387_v60 = vld [vmem:[%s5427_s17 + $0x28] sm:$0xff]   ;;  %4069 = vmatprep.subr.bf16.mxu1 %v4386_v20 }
 0x822   :  { %v1741_v6 = vpack.c.bf16 %v1740_v3, %v1740_v3  ;;  %v4388_v3 = vld [vmem:[%s5427_s17 + $0x60] sm:$0xff]  }
 0x823   :  { %v4157_v7 = vpop.f32.mrf.mxu1  ;;  %4070 = vmatpush3.bf16.msra.mxu1 %v4387_v60  ;;  %v4389_v5 = vld [vmem:[%s5427_s17 + $0x20] sm:$0xff]  }
 0x824   :  { %4163 = vmatmul.mubr.msk.bf16.vlgmr.msra.gmra.mxu0 %vm888_vm1, %v1741_v6  ;;  %4071 = vmatprep.subr.bf16.mxu1 %v4388_v3  ;;  %v4391_v7 = vld [vmem:[%s5427_s17 + $0x18] sm:$0xff]   ;;  %v3864_v3 = vcombine.high %v2474_v51, %v2478_v53 }
 0x825   :  { %1857 = vmatpush1.bf16.msra.mxu0 %v5087_v23  ;;  %1876 = vmatprep.mubr.bf16.mxu0 %v4805_v29  ;;  %v4370_v23 = vld [vmem:[%s5426_s14 + $0x68] sm:$0xff]  }
 0x826   :  { %1858 = vmatprep.subr.bf16.mxu0 %v5091_v26  ;;  %v4371_v26 = vld [vmem:[%s5426_s14 + $0x28] sm:$0xff]  }
 0x827   :  { %4072 = vmatpush3.bf16.msra.mxu1 %v4389_v5  ;;  %v2465_v5 = vld [vmem:[#allocation18 + $0x140] sm:$0xff] }
 0x829   :  { %1859 = vmatpush1.bf16.msra.mxu0 %v5094_v27  ;;  %v4373_v27 = vld [vmem:[%s5426_s14 + $0x20] sm:$0xff]  }
 0x82a   :  { %4043 = vmatprep.subr.bf16.mxu0 %v4366_v14  ;;  %v4392_v14 = vld [vmem:[%s5427_s17 + $0x50] sm:$0xff]  }
 0x82c   :  { %3767 = vmatmul.mubr.msk.bf16.vlgmr.msra.gmra.mxu0 %vm888_vm1, %v1741_v6  ;;  %v4390_v6 = vld [vmem:[%s5427_s17 + $0x58] sm:$0xff]  }
 0x82d   :  { %4044 = vmatpush3.bf16.msra.mxu0 %v4367_v31  ;;  %4073 = vmatprep.subr.bf16.mxu1 %v4390_v6  ;;  %v4393_v31 = vld [vmem:[%s5427_s17 + $0x10] sm:$0xff]  }
 0x82e   :  { %4045 = vmatprep.subr.bf16.mxu0 %v4368_v1  ;;  %4074 = vmatpush3.bf16.msra.mxu1 %v4391_v7  ;;  %v4394_v1 = vld [vmem:[%s5427_s17 + $0x48] sm:$0xff]   ;;  %v2469_v6 = vld [vmem:[#allocation18 + $0x160] sm:$0xff]  ;;  %v2466_v7 = vld [vmem:[#allocation18 + $0x148] sm:$0xff] }
 0x82f   :  { %4075 = vmatprep.subr.bf16.mxu1 %v4392_v14  ;;  %v2470_v14 = vld [vmem:[#allocation18 + $0x168] sm:$0xff] }
 0x831   :  { %4046 = vmatpush3.bf16.msra.mxu0 %v4369_v8  ;;  %v4395_v8 = vld [vmem:[%s5427_s17 + $0x8] sm:$0xff]  }
 0x832   :  { %4047 = vmatprep.subr.bf16.mxu0 %v4370_v23  ;;  %4076 = vmatpush3.bf16.msra.mxu1 %v4393_v31  ;;  %v3863_v31 = vcombine.low %v2474_v51, %v2478_v53  ;;  %v2546_v51 = vld [vmem:[#allocation18 + $0x3c8] sm:$0xff] }
 0x833   :  { %4077 = vmatprep.subr.bf16.mxu1 %v4394_v1  ;;  %v3854_v1 = vcombine.high %v2465_v5, %v2469_v6  ;;  %v2550_v53 = vld [vmem:[#allocation18 + $0x3e8] sm:$0xff] }
 0x835   :  { %4048 = vmatpush3.bf16.msra.mxu0 %v4371_v26 }
 0x836   :  { %4049 = vmatprep.subr.bf16.mxu0 %v4372_v9  ;;  %4078 = vmatpush3.bf16.msra.mxu1 %v4395_v8  ;;  %v3856_v8 = vcombine.high %v2466_v7, %v2470_v14 }
 0x839   :  { %4050 = vmatpush3.bf16.msra.mxu0 %v4373_v27 }
 0x83a   :  { %4051 = vmatprep.subr.bf16.mxu0 %v4374_v10 }
 0x83d   :  { %4052 = vmatpush3.bf16.msra.mxu0 %v4375_v11 }
 0x83e   :  { %4053 = vmatprep.subr.bf16.mxu0 %v4376_v12 }
 0x841   :  { %4054 = vmatpush3.bf16.msra.mxu0 %v4377_v13 }
 0x842   :  { %4055 = vmatprep.subr.bf16.mxu0 %v4378_v15 }
 0x845   :  { %4056 = vmatpush3.bf16.msra.mxu0 %v4379_v16  ;;  %v4396_v16 = vld [vmem:[%s5427_s17 + $0x40] sm:$0xff]  }
 0x846   :  { %4057 = vmatprep.subr.bf16.mxu0 %v4380_v17  ;;  %v4397_v17 = vld [vmem:[%s5427_s17] sm:$0xff]   ;;  %4079 = vmatprep.subr.bf16.mxu1 %v4396_v16  ;;  %v2453_v16 = vld [vmem:[#allocation18 + $0xe0] sm:$0xff] }
 0x847   :  { %4080 = vmatpush3.bf16.msra.mxu1 %v4397_v17  ;;  %v2450_v17 = vld [vmem:[#allocation18 + $0xc8] sm:$0xff] }
 0x848   :  { %2370 = vmatprep.subr.bf16.mxu1 %v5162_v58 }
 0x849   :  { %4058 = vmatpush3.bf16.msra.mxu0 %v4381_v18 }
 0x84a   :  { %4166 = vmatprep.subr.bf16.mxu0 %v4803_v52 }
 0x8e4   :  { %v1802_v21 = vpop.f32.mrf.mxu0 }
 0x8e5   :  { %v1803_v22 = vadd.f32 %v5256_v19, %v1802_v21 }
 0x8e6   :  { %v4164_v24 = vpop.f32.mrf.mxu0 }
 0x8e7   :  { %2412 = vrot.lane.b32.xlu1 %v1803_v22, %s4808_s8 }
 0x8e8   :  { %v1805_v28 = vpop.f32.mrf.mxu0 }
 0x8ea   :  { %v4165_v32 = vpop.f32.mrf.mxu0 }
 0x8ec   :  { %v1878_v38 = vpop.f32.mrf.mxu0 }
 0x8ed   :  { %v1879_v39 = vadd.f32 %v1878_v38, %v1817_v30  ;;  %v2481_v38 = vld [vmem:[#allocation18 + $0x1c0] sm:$0xff] }
 0x8ee   :  { %v1880_v40 = vpop.f32.mrf.mxu0 }
 0x8ef   :  { %v1881_v41 = vadd.f32 %v1880_v40, %v1821_v36  ;;  %v1885_v42 = vmax.f32 %v1879_v39, 0.0  ;;  %v4399_v36 = vld [vmem:[%s5428_s15] sm:$0xff]   ;;  %v2485_v39 = vld [vmem:[#allocation18 + $0x1e0] sm:$0xff] }
 0x8f0   :  { %v1882_v43 = vpop.f32.mrf.mxu0  ;;  %v3869_v40 = vcombine.low %v2481_v38, %v2485_v39 }
 0x8f1   :  { %v1886_v44 = vmax.f32 %v1881_v41, 0.0  ;;  %v1887_v49 = vpack.c.bf16 %v1885_v42, %v1885_v42  ;;  %v2486_v41 = vld [vmem:[#allocation18 + $0x1e8] sm:$0xff] }
 0x8f2   :  { %v1883_v45 = vpop.f32.mrf.mxu0 }
 0x8f3   :  { %v1888_v47 = vpack.c.bf16 %v1886_v44, %v1886_v44 }
 0x8f5   :  { %2056 = vmatprep.mubr.bf16.mxu0 %v1888_v47 }
 0x8f6   :  { %2057 = vmatmul.mubr.bf16.vlgmr.msra.gmra.mxu0 %v1887_v49  ;;  %v2473_v49 = vld [vmem:[#allocation18 + $0x180] sm:$0xff] }
 0x8f7   :  { %4170 = vmatprep.mubr.msk.bf16.mxu0 %vm4804_vm0, %v4803_v52  ;;  %v3862_v60 = vcombine.high %v2473_v49, %v2477_v50 }
 0x9b6   :  { %v4059_v23 = vpop.f32.mrf.mxu0 }
 0x9b8   :  { %v4060_v26 = vpop.f32.mrf.mxu0 }
 0x9b9   :  { %v4061_v9 = vadd.f32 %v4060_v26, %v4059_v23  ;;  %v2457_v23 = vld [vmem:[#allocation18 + $0x100] sm:$0xff] }
 0x9ba   :  { %v4062_v27 = vpop.f32.mrf.mxu0  ;;  %v2461_v26 = vld [vmem:[#allocation18 + $0x120] sm:$0xff] }
 0x9bb   :  { %v2059_v10 = vadd.f32 %v4061_v9, %v5143_v35  ;;  %v927_v35 = vadd.f32 %v5256_v19, %v5125_v61  ;;  %v2458_v9 = vld [vmem:[#allocation18 + $0x108] sm:$0xff] }
 0x9bc   :  { %v4063_v11 = vpop.f32.mrf.mxu0  ;;  %v2462_v27 = vld [vmem:[#allocation18 + $0x128] sm:$0xff] }
 0x9bd   :  { %v3785_v12 = vmul.f32 -1.442695, %v2059_v10  ;;  %v3853_v10 = vcombine.low %v2465_v5, %v2469_v6  ;;  %v3855_v11 = vcombine.low %v2466_v7, %v2470_v14  ;;  %v2537_v5 = vld [vmem:[#allocation18 + $0x380] sm:$0xff]  ;;  %v2538_v7 = vld [vmem:[#allocation18 + $0x388] sm:$0xff] }
 0x9be   :  { %v2541_v6 = vld [vmem:[#allocation18 + $0x3a0] sm:$0xff]  ;;  %v2542_v14 = vld [vmem:[#allocation18 + $0x3a8] sm:$0xff] }
 0x9bf   :  { %4404 = vpow2.f32 %v3785_v12  ;;  %v3846_v12 = vcombine.high %v2457_v23, %v2461_v26 }
 0x9cc   :  { %v4405_v13 = vpop.eup %4404 }
 0x9cd   :  { %v2067_v15 = vadd.f32 1.0, %v4405_v13  ;;  %v3848_v13 = vcombine.high %v2458_v9, %v2462_v27 }
 0x9cf   :  { %4406 = vrcp.f32 %v2067_v15  ;;  %v2449_v15 = vld [vmem:[#allocation18 + $0xc0] sm:$0xff] }
 0x9dc   :  { %v4407_v18 = vpop.eup %4406 }
 0x9dd   :  { %2415 = vrot.lane.b32.xlu1 %v4407_v18, %s4799_s28  ;;  %2071 = vrot.lane.b32.xlu0 %v4407_v18, %s4806_s16 }
 0x9e1   :  { %1538 = vrot.lane.b32.xlu0 %v927_v35, %s4808_s8  ;;  %v3845_v35 = vcombine.low %v2457_v23, %v2461_v26  ;;  %v2529_v23 = vld [vmem:[#allocation18 + $0x340] sm:$0xff] }
 0x9e2   :  { %v2533_v26 = vld [vmem:[#allocation18 + $0x360] sm:$0xff] }
 0x9e5   :  { %1541 = vrot.lane.b32.xlu0 %v5148_v46, %s4799_s28  ;;  %v1442_v46 = vadd.f32 %v5296_v25, %v5221_v33  ;;  %v4398_v33 = vld [vmem:[%s5428_s15 + $0x8] sm:$0xff]  }
 0x9e6   :  { %4167 = vmatpush3.bf16.msra.mxu0 %v4398_v33  ;;  %v2433_v33 = vld [vmem:[#allocation18 + $0x40] sm:$0xff] }
 0x9e7   :  { %4168 = vmatprep.subr.bf16.mxu0 %v4803_v52 }
 0x9ea   :  { %4169 = vmatpush3.bf16.msra.mxu0 %v4399_v36  ;;  %v2437_v36 = vld [vmem:[#allocation18 + $0x60] sm:$0xff] }
 0xa4f   :  { %v2072_v21 = vpop.permute.xlu0 %2071 }
 0xa50   :  { %v5290_v22 = vsel %vm1198_vm2, %v4407_v18, %v2072_v21  ;;  %v2454_v18 = vld [vmem:[#allocation18 + $0xe8] sm:$0xff]  ;;  %v3847_v21 = vcombine.low %v2458_v9, %v2462_v27 }
 0xa51   :  { %v2075_v58 = vmul.f32 %v5290_v22, %v5054_v0  ;;  %v2076_v24 = vmul.f32 %v5290_v22, %v5056_v2  ;;  %v2530_v9 = vld [vmem:[#allocation18 + $0x348] sm:$0xff] }
 0xa52   :  { %v2534_v27 = vld [vmem:[#allocation18 + $0x368] sm:$0xff] }
 0xa53   :  { %v2077_v28 = vpack.c.bf16 %v2075_v58, %v2075_v58  ;;  %v1539_v61 = vpop.permute.xlu0 %1538  ;;  %v2078_v19 = vpack.c.bf16 %v2076_v24, %v2076_v24  ;;  %v3838_v58 = vcombine.high %v2449_v15, %v2453_v16  ;;  %v3840_v24 = vcombine.high %v2450_v17, %v2454_v18 }
 0xa54   :  { %v1545_v0 = vsel %vm1544_vm3, %v1442_v46, %v1539_v61  ;;  %v2445_v61 = vld [vmem:[#allocation18 + $0xa0] sm:$0xff]  ;;  %v2446_v46 = vld [vmem:[#allocation18 + $0xa8] sm:$0xff] }
 0xa55   :  { %2246 = vmatprep.mubr.bf16.mxu1 %v2078_v19  ;;  %v2442_v19 = vld [vmem:[#allocation18 + $0x88] sm:$0xff] }
 0xa56   :  { %2247 = vmatmul.mubr.bf16.vlgmr.msra.gmra.mxu1 %v2077_v28  ;;  %v2441_v28 = vld [vmem:[#allocation18 + $0x80] sm:$0xff] }
 0xa57   :  { %v1542_v30 = vpop.permute.xlu0 %1541  ;;  %2371 = vmatpush1.bf16.msra.mxu1 %v5164_v59  ;;  %2390 = vmatprep.mubr.bf16.mxu1 %v4805_v29  ;;  %v2482_v59 = vld [vmem:[#allocation18 + $0x1c8] sm:$0xff]  ;;  %v3870_v29 = vcombine.high %v2481_v38, %v2485_v39 }
 0xa58   :  { %v1546_v2 = vsel %vm888_vm1, %v1545_v0, %v1542_v30  ;;  %2372 = vmatprep.subr.bf16.mxu1 %v5170_v62  ;;  %v3871_v42 = vcombine.low %v2482_v59, %v2486_v41  ;;  %v3872_v43 = vcombine.high %v2482_v59, %v2486_v41  ;;  %v3837_v0 = vcombine.low %v2449_v15, %v2453_v16  ;;  %v2434_v38 = vld [vmem:[#allocation18 + $0x48] sm:$0xff]  ;;  %v2521_v15 = vld [vmem:[#allocation18 + $0x300] sm:$0xff] }
 0xa59   :  { %v1548_v32 = vsel %vm1547_vm4, %v1546_v2, 0.0  ;;  %3235 = vmatprep.subr.bf16.mxu0 %v3870_v29  ;;  %v3839_v30 = vcombine.low %v2450_v17, %v2454_v18  ;;  %v3830_v2 = vcombine.high %v2441_v28, %v2445_v61  ;;  %v2438_v39 = vld [vmem:[#allocation18 + $0x68] sm:$0xff]  ;;  %v3829_v59 = vcombine.low %v2441_v28, %v2445_v61  ;;  %v2525_v16 = vld [vmem:[#allocation18 + $0x320] sm:$0xff] }
 0xa5a   :  { %1549 = vst [vmem:[%s4952_s5] sm:$0x3] %v1548_v32  ;;  %v3832_v32 = vcombine.high %v2442_v19, %v2446_v46  ;;  %v3822_v29 = vcombine.high %v2433_v33, %v2437_v36  ;;  %v3824_v41 = vcombine.high %v2434_v38, %v2438_v39  ;;  %v2522_v17 = vld [vmem:[#allocation18 + $0x308] sm:$0xff]  ;;  %v2513_v28 = vld [vmem:[#allocation18 + $0x2c0] sm:$0xff] }
 0xa5b   :  { %2373 = vmatpush1.bf16.msra.mxu1 %v5172_v63  ;;  %v2526_v18 = vld [vmem:[#allocation18 + $0x328] sm:$0xff]  ;;  %v2517_v61 = vld [vmem:[#allocation18 + $0x2e0] sm:$0xff] }
 0xa5c   :  { %3276 = vmatprep.subr.bf16.mxu1 %v3872_v43  ;;  %v2429_v43 = vld [vmem:[#allocation18 + $0x20] sm:$0xff] }
 0xb16   :  { %v4081_v62 = vpop.f32.mrf.mxu1 }
 0xb18   :  { %v4082_v44 = vpop.f32.mrf.mxu1 }
 0xb19   :  { %v4083_v45 = vadd.f32 %v4082_v44, %v4081_v62  ;;  %v2426_v62 = vld [vmem:[#allocation18 + $0x8] sm:$0xff] }
 0xb1a   :  { %v4084_v63 = vpop.f32.mrf.mxu1  ;;  %v2430_v44 = vld [vmem:[#allocation18 + $0x28] sm:$0xff] }
 0xb1b   :  { %v2249_v47 = vadd.f32 %v4083_v45, %v5182_v4  ;;  %v3861_v4 = vcombine.low %v2473_v49, %v2477_v50  ;;  %v3821_v45 = vcombine.low %v2433_v33, %v2437_v36  ;;  %v3823_v63 = vcombine.low %v2434_v38, %v2438_v39  ;;  %v2549_v50 = vld [vmem:[#allocation18 + $0x3e0] sm:$0xff] }
 0xb1c   :  { %v4085_v52 = vpop.f32.mrf.mxu1  ;;  %v3816_v49 = vcombine.high %v2426_v62, %v2430_v44  ;;  %v3901_v33 = vcombine.low %v2513_v28, %v2517_v61  ;;  %v2505_v38 = vld [vmem:[#allocation18 + $0x280] sm:$0xff] }
 0xb1d   :  { %v2254_v56 = vmax.f32 %v2249_v47, 0.0  ;;  %v2545_v52 = vld [vmem:[#allocation18 + $0x3c0] sm:$0xff] }
 0xb1e   :  { %v2509_v39 = vld [vmem:[#allocation18 + $0x2a0] sm:$0xff] }
 0xb1f   :  { %v2255_v20 = vpack.c.bf16 %v2254_v56, %v2254_v56 }
 0xb21   :  { %4171 = vmatmul.mubr.msk.bf16.vlgmr.msra.gmra.mxu0 %vm888_vm1, %v2255_v20  ;;  %3811 = vmatmul.mubr.msk.bf16.vlgmr.msra.gmra.mxu1 %vm888_vm1, %v2255_v20  ;;  %v3815_v20 = vcombine.low %v2426_v62, %v2430_v44  ;;  %v2497_v62 = vld [vmem:[#allocation18 + $0x240] sm:$0xff] }
 0xb22   :  { %3236 = vmatpush1.bf16.msra.mxu0 %v3869_v40  ;;  %3277 = vmatpush1.bf16.msra.mxu1 %v3871_v42  ;;  %v3831_v40 = vcombine.low %v2442_v19, %v2446_v46  ;;  %v2425_v42 = vld [vmem:[#allocation18] sm:$0xff]  ;;  %v2514_v19 = vld [vmem:[#allocation18 + $0x2c8] sm:$0xff] }
 0xb23   :  { %3237 = vmatprep.subr.bf16.mxu0 %v3862_v60  ;;  %3278 = vmatprep.subr.bf16.mxu1 %v3864_v3  ;;  %v3814_v47 = vcombine.high %v2425_v42, %v2429_v43  ;;  %v3813_v56 = vcombine.low %v2425_v42, %v2429_v43  ;;  %v3934_v60 = vcombine.high %v2545_v52, %v2549_v50  ;;  %v2518_v46 = vld [vmem:[#allocation18 + $0x2e8] sm:$0xff]  ;;  %v2501_v44 = vld [vmem:[#allocation18 + $0x260] sm:$0xff] }
 0xb24   :  { %v3936_v3 = vcombine.high %v2546_v51, %v2550_v53  ;;  %v3903_v36 = vcombine.low %v2514_v19, %v2518_v46 }
 0xb26   :  { %3238 = vmatpush1.bf16.msra.mxu0 %v3861_v4  ;;  %3279 = vmatpush1.bf16.msra.mxu1 %v3863_v31  ;;  %v3933_v4 = vcombine.low %v2545_v52, %v2549_v50  ;;  %v3935_v31 = vcombine.low %v2546_v51, %v2550_v53  ;;  %v2489_v51 = vld [vmem:[#allocation18 + $0x200] sm:$0xff] }
 0xb27   :  { %3239 = vmatprep.subr.bf16.mxu0 %v3854_v1  ;;  %3280 = vmatprep.subr.bf16.mxu1 %v3856_v8  ;;  %v3926_v1 = vcombine.high %v2537_v5, %v2541_v6  ;;  %v3928_v8 = vcombine.high %v2538_v7, %v2542_v14  ;;  %v2493_v53 = vld [vmem:[#allocation18 + $0x220] sm:$0xff] }
 0xb2a   :  { %3240 = vmatpush1.bf16.msra.mxu0 %v3853_v10  ;;  %3281 = vmatpush1.bf16.msra.mxu1 %v3855_v11  ;;  %v3925_v10 = vcombine.low %v2537_v5, %v2541_v6  ;;  %v3927_v11 = vcombine.low %v2538_v7, %v2542_v14  ;;  %v5314_v7 = vld [vmem:[#allocation18 + $0x1d0] sm:$0xff] }
 0xb2b   :  { %3241 = vmatprep.subr.bf16.mxu0 %v3846_v12  ;;  %3282 = vmatprep.subr.bf16.mxu1 %v3848_v13  ;;  %v3918_v12 = vcombine.high %v2529_v23, %v2533_v26  ;;  %v3920_v13 = vcombine.high %v2530_v9, %v2534_v27  ;;  %v5316_v14 = vld [vmem:[#allocation18 + $0x1f0] sm:$0xff] }
 0xb2e   :  { %3242 = vmatpush1.bf16.msra.mxu0 %v3845_v35  ;;  %3283 = vmatpush1.bf16.msra.mxu1 %v3847_v21  ;;  %v3917_v35 = vcombine.low %v2529_v23, %v2533_v26  ;;  %v3919_v21 = vcombine.low %v2530_v9, %v2534_v27  ;;  %v1451_v9 = vld [vmem:[#allocation16] sm:$0x3]  ;;  %v1531_v27 = vpop.permute.xlu1 %1530 }
 0xb2f   :  { %3243 = vmatprep.subr.bf16.mxu0 %v3838_v58  ;;  %3284 = vmatprep.subr.bf16.mxu1 %v3840_v24  ;;  %v3910_v58 = vcombine.high %v2521_v15, %v2525_v16  ;;  %v3912_v24 = vcombine.high %v2522_v17, %v2526_v18 }
 0xb32   :  { %3244 = vmatpush1.bf16.msra.mxu0 %v3837_v0  ;;  %3285 = vmatpush1.bf16.msra.mxu1 %v3839_v30  ;;  %v3909_v0 = vcombine.low %v2521_v15, %v2525_v16  ;;  %v3911_v30 = vcombine.low %v2522_v17, %v2526_v18 }
 0xb33   :  { %3245 = vmatprep.subr.bf16.mxu0 %v3830_v2  ;;  %3286 = vmatprep.subr.bf16.mxu1 %v3832_v32  ;;  %v3902_v2 = vcombine.high %v2513_v28, %v2517_v61  ;;  %v3904_v32 = vcombine.high %v2514_v19, %v2518_v46 }
 0xb36   :  { %3246 = vmatpush1.bf16.msra.mxu0 %v3829_v59  ;;  %3287 = vmatpush1.bf16.msra.mxu1 %v3831_v40  ;;  %v2506_v59 = vld [vmem:[#allocation18 + $0x288] sm:$0xff]  ;;  %v3894_v40 = vcombine.high %v2505_v38, %v2509_v39 }
 0xb37   :  { %3247 = vmatprep.subr.bf16.mxu0 %v3822_v29  ;;  %3288 = vmatprep.subr.bf16.mxu1 %v3824_v41  ;;  %v2510_v29 = vld [vmem:[#allocation18 + $0x2a8] sm:$0xff]  ;;  %v3893_v41 = vcombine.low %v2505_v38, %v2509_v39 }
 0xb38   :  { %v3895_v42 = vcombine.low %v2506_v59, %v2510_v29  ;;  %v3896_v43 = vcombine.high %v2506_v59, %v2510_v29 }
 0xb3a   :  { %3248 = vmatpush1.bf16.msra.mxu0 %v3821_v45  ;;  %3289 = vmatpush1.bf16.msra.mxu1 %v3823_v63  ;;  %v2498_v45 = vld [vmem:[#allocation18 + $0x248] sm:$0xff]  ;;  %v3886_v63 = vcombine.high %v2497_v62, %v2501_v44 }
 0xb3b   :  { %3249 = vmatprep.subr.bf16.mxu0 %v3814_v47  ;;  %3290 = vmatprep.subr.bf16.mxu1 %v3816_v49  ;;  %v2502_v47 = vld [vmem:[#allocation18 + $0x268] sm:$0xff]  ;;  %v3885_v49 = vcombine.low %v2497_v62, %v2501_v44 }
 0xb3c   :  { %v3887_v52 = vcombine.low %v2498_v45, %v2502_v47  ;;  %v3888_v50 = vcombine.high %v2498_v45, %v2502_v47 }
 0xb3e   :  { %3250 = vmatpush1.bf16.msra.mxu0 %v3813_v56  ;;  %3291 = vmatpush1.bf16.msra.mxu1 %v3815_v20  ;;  %v2490_v56 = vld [vmem:[#allocation18 + $0x208] sm:$0xff]  ;;  %v3878_v20 = vcombine.high %v2489_v51, %v2493_v53 }
 0xb3f   :  { %3251 = vmatprep.subr.bf16.mxu0 %v3934_v60  ;;  %3292 = vmatprep.subr.bf16.mxu1 %v3936_v3  ;;  %v2494_v60 = vld [vmem:[#allocation18 + $0x228] sm:$0xff]  ;;  %v3877_v3 = vcombine.low %v2489_v51, %v2493_v53 }
 0xb40   :  { %v3879_v5 = vcombine.low %v2490_v56, %v2494_v60  ;;  %v3880_v6 = vcombine.high %v2490_v56, %v2494_v60  ;;  %v2467_v56 = vld [vmem:[#allocation18 + $0x150] sm:$0xff] }
 0xb42   :  { %3252 = vmatpush2.bf16.msra.mxu0 %v3933_v4  ;;  %3293 = vmatpush2.bf16.msra.mxu1 %v3935_v31  ;;  %v5318_v4 = vld [vmem:[#allocation18 + $0x1d8] sm:$0xff]  ;;  %v3874_v31 = vcombine.high %v5314_v7, %v5316_v14 }
 0xb43   :  { %3253 = vmatprep.subr.bf16.mxu0 %v3926_v1  ;;  %3294 = vmatprep.subr.bf16.mxu1 %v3928_v8  ;;  %v5322_v1 = vld [vmem:[#allocation18 + $0x1f8] sm:$0xff]  ;;  %v3873_v8 = vcombine.low %v5314_v7, %v5316_v14 }
 0xb44   :  { %v3875_v23 = vcombine.low %v5318_v4, %v5322_v1  ;;  %v3876_v26 = vcombine.high %v5318_v4, %v5322_v1  ;;  %v2463_v1 = vld [vmem:[#allocation18 + $0x130] sm:$0xff] }
 0xb46   :  { %3254 = vmatpush2.bf16.msra.mxu0 %v3925_v10  ;;  %3295 = vmatpush2.bf16.msra.mxu1 %v3927_v11  ;;  %v1456_v10 = vrot.slane %v1451_v9, %v5047_v55  ;;  %v1460_v11 = vrot.slane %v1451_v9, %v5050_v57  ;;  %v2464_v9 = vld [vmem:[#allocation18 + $0x138] sm:$0xff] }
 0xb47   :  { %3255 = vmatprep.subr.bf16.mxu0 %v3918_v12  ;;  %3296 = vmatprep.subr.bf16.mxu1 %v3920_v13  ;;  %v2405_v12 = vpop.permute.xlu1 %2404  ;;  %v2326_v13 = vld [vmem:[#allocation16] sm:$0x3] }
 0xb48   :  { %v1518_v15 = vadd.f32 %v5223_v34, %v1456_v10  ;;  %v1520_v16 = vadd.f32 %v5225_v37, %v1460_v11  ;;  %v2331_v17 = vrot.slane %v2326_v13, %v5047_v55  ;;  %v2451_v11 = vld [vmem:[#allocation18 + $0xd0] sm:$0xff] }
 0xb4a   :  { %3256 = vmatpush2.bf16.msra.mxu0 %v3917_v35  ;;  %3297 = vmatpush2.bf16.msra.mxu1 %v3919_v21  ;;  %v2335_v35 = vrot.slane %v2326_v13, %v5050_v57  ;;  %v1524_v21 = vmax.f32 %v1518_v15, 0.0  ;;  %v1525_v28 = vmax.f32 %v1520_v16, 0.0  ;;  %v2452_v13 = vld [vmem:[#allocation18 + $0xd8] sm:$0xff] }
 0xb4b   :  { %3257 = vmatprep.subr.bf16.mxu0 %v3910_v58  ;;  %3298 = vmatprep.subr.bf16.mxu1 %v3912_v24  ;;  %v2413_v18 = vpop.permute.xlu1 %2412  ;;  %v2456_v15 = vld [vmem:[#allocation18 + $0xf8] sm:$0xff] }
 0xb4c   :  { %v1527_v39 = vmul.f32 %v1525_v28, %v5154_v48  ;;  %v2448_v28 = vld [vmem:[#allocation18 + $0xb8] sm:$0xff] }
 0xb4e   :  { %3258 = vmatpush2.bf16.msra.mxu0 %v3909_v0  ;;  %3299 = vmatpush2.bf16.msra.mxu1 %v3911_v30  ;;  %v1534_v44 = vmul.f32 %v1531_v27, %v1527_v39  ;;  %v2427_v39 = vld [vmem:[#allocation18 + $0x10] sm:$0xff] }
 0xb4f   :  { %3259 = vmatprep.subr.bf16.mxu0 %v3902_v2  ;;  %3300 = vmatprep.subr.bf16.mxu1 %v3904_v32  ;;  %v2416_v30 = vpop.permute.xlu1 %2415  ;;  %v1526_v32 = vmul.f32 %v1524_v21, %v5154_v48  ;;  %v2480_v48 = vld [vmem:[#allocation18 + $0x1b8] sm:$0xff]  ;;  %v2443_v21 = vld [vmem:[#allocation18 + $0x90] sm:$0xff] }
 0xb51   :  { %v1533_v62 = vmul.f32 %v1531_v27, %v1526_v32 }
 0xb52   :  { %3260 = vmatpush2.bf16.msra.mxu0 %v3901_v33  ;;  %3301 = vmatpush2.bf16.msra.mxu1 %v3903_v36 }
 0xb53   :  { %3261 = vmatprep.subr.bf16.mxu0 %v3894_v40  ;;  %3302 = vmatprep.subr.bf16.mxu1 %v3896_v43 }
 0xb56   :  { %3262 = vmatpush2.bf16.msra.mxu0 %v3893_v41  ;;  %3303 = vmatpush2.bf16.msra.mxu1 %v3895_v42 }
 0xb57   :  { %3263 = vmatprep.subr.bf16.mxu0 %v3886_v63  ;;  %3304 = vmatprep.subr.bf16.mxu1 %v3888_v50  ;;  %v2476_v50 = vld [vmem:[#allocation18 + $0x198] sm:$0xff] }
 0xb58   :  { %v3868_v60 = vcombine.high %v2476_v50, %v2480_v48  ;;  %v3867_v7 = vcombine.low %v2476_v50, %v2480_v48  ;;  %v2539_v48 = vld [vmem:[#allocation18 + $0x390] sm:$0xff] }
 0xb5a   :  { %3264 = vmatpush2.bf16.msra.mxu0 %v3885_v49  ;;  %3305 = vmatpush2.bf16.msra.mxu1 %v3887_v52  ;;  %v2475_v49 = vld [vmem:[#allocation18 + $0x190] sm:$0xff] }
 0xb5b   :  { %3265 = vmatprep.subr.bf16.mxu0 %v3878_v20  ;;  %3306 = vmatprep.subr.bf16.mxu1 %v3880_v6  ;;  %v2479_v52 = vld [vmem:[#allocation18 + $0x1b0] sm:$0xff] }
 0xb5c   :  { %v3866_v20 = vcombine.high %v2475_v49, %v2479_v52  ;;  %v3865_v6 = vcombine.low %v2475_v49, %v2479_v52 }
 0xb5e   :  { %3266 = vmatpush2.bf16.msra.mxu0 %v3877_v3  ;;  %3307 = vmatpush2.bf16.msra.mxu1 %v3879_v5  ;;  %v2471_v3 = vld [vmem:[#allocation18 + $0x170] sm:$0xff]  ;;  %v2468_v5 = vld [vmem:[#allocation18 + $0x158] sm:$0xff] }
 0xb5f   :  { %3317 = vmatprep.subr.bf16.mxu0 %v3874_v31  ;;  %3358 = vmatprep.subr.bf16.mxu1 %v3876_v26  ;;  %v3858_v14 = vcombine.high %v2467_v56, %v2471_v3  ;;  %v2459_v31 = vld [vmem:[#allocation18 + $0x110] sm:$0xff]  ;;  %v2460_v26 = vld [vmem:[#allocation18 + $0x118] sm:$0xff]  ;;  %v3857_v27 = vcombine.low %v2467_v56, %v2471_v3 }
 0xb60   :  { %v3849_v16 = vcombine.low %v2459_v31, %v2463_v1  ;;  %v2540_v56 = vld [vmem:[#allocation18 + $0x398] sm:$0xff] }
 0xbe1   :  { %v2316_v58 = vpop.f32.mrf.mxu0  ;;  %v2392_v24 = vpop.f32.mrf.mxu1 }
 0xbe2   :  { %v2317_v61 = vadd.f32 %v5296_v25, %v2316_v58  ;;  %v2393_v19 = vadd.f32 %v2392_v24, %v2331_v17  ;;  %v3851_v17 = vcombine.low %v2460_v26, %v2464_v9  ;;  %v2447_v58 = vld [vmem:[#allocation18 + $0xb0] sm:$0xff]  ;;  %v2444_v24 = vld [vmem:[#allocation18 + $0x98] sm:$0xff] }
 0xbe3   :  { %v4172_v46 = vpop.f32.mrf.mxu0  ;;  %v2394_v0 = vpop.f32.mrf.mxu1  ;;  %v3833_v32 = vcombine.low %v2443_v21, %v2447_v58 }
 0xbe4   :  { %v2418_v34 = vsel %vm1544_vm3, %v2317_v61, %v2413_v18  ;;  %v2399_v2 = vmax.f32 %v2393_v19, 0.0  ;;  %v2395_v37 = vadd.f32 %v2394_v0, %v2335_v35  ;;  %v3844_v35 = vcombine.high %v2452_v13, %v2456_v15 }
 0xbe5   :  { %v2419_v33 = vsel %vm888_vm1, %v2418_v34, %v2416_v30  ;;  %v2319_v36 = vpop.f32.mrf.mxu0  ;;  %v2396_v38 = vpop.f32.mrf.mxu1  ;;  %v3843_v19 = vcombine.low %v2452_v13, %v2456_v15  ;;  %v3834_v46 = vcombine.high %v2443_v21, %v2447_v58  ;;  %v3836_v0 = vcombine.high %v2444_v24, %v2448_v28  ;;  %v2435_v30 = vld [vmem:[#allocation18 + $0x50] sm:$0xff] }
 0xbe6   :  { %v2420_v59 = vsel %vm1547_vm4, %v2419_v33, 0.0  ;;  %v2401_v25 = vmul.f32 %v2399_v2, %v5290_v22  ;;  %v2400_v40 = vmax.f32 %v2395_v37, 0.0  ;;  %v2439_v34 = vld [vmem:[#allocation18 + $0x70] sm:$0xff]  ;;  %v2436_v2 = vld [vmem:[#allocation18 + $0x58] sm:$0xff]  ;;  %v3835_v33 = vcombine.low %v2444_v24, %v2448_v28 }
 0xbe7   :  { %3812 = vst [vmem:[%s4952_s5 + $0x2] sm:$0x3] %v2420_v59  ;;  %v4173_v29 = vpop.f32.mrf.mxu0  ;;  %v2397_v41 = vpop.f32.mrf.mxu1  ;;  %v2440_v37 = vld [vmem:[#allocation18 + $0x78] sm:$0xff]  ;;  %v3826_v36 = vcombine.high %v2435_v30, %v2439_v34  ;;  %v2431_v59 = vld [vmem:[#allocation18 + $0x30] sm:$0xff] }
 0xbe8   :  { %v2407_v42 = vmul.f32 %v2405_v12, %v2401_v25  ;;  %v2402_v43 = vmul.f32 %v2400_v40, %v5290_v22  ;;  %v2472_v22 = vld [vmem:[#allocation18 + $0x178] sm:$0xff]  ;;  %v3828_v38 = vcombine.high %v2436_v2, %v2440_v37  ;;  %v3825_v29 = vcombine.low %v2435_v30, %v2439_v34 }
 0xbe9   :  { %v3860_v4 = vcombine.high %v2468_v5, %v2472_v22  ;;  %v3859_v10 = vcombine.low %v2468_v5, %v2472_v22  ;;  %v2428_v25 = vld [vmem:[#allocation18 + $0x18] sm:$0xff]  ;;  %v3827_v41 = vcombine.low %v2436_v2, %v2440_v37 }
 0xbea   :  { %v2408_v45 = vmul.f32 %v2405_v12, %v2402_v43  ;;  %v2409_v63 = vadd.f32 %v2407_v42, %v1533_v62  ;;  %v2455_v12 = vld [vmem:[#allocation18 + $0xf0] sm:$0xff]  ;;  %v2432_v40 = vld [vmem:[#allocation18 + $0x38] sm:$0xff]  ;;  %v3818_v42 = vcombine.high %v2427_v39, %v2431_v59 }
 0xbeb   :  { %v3842_v18 = vcombine.high %v2451_v11, %v2455_v12  ;;  %v3841_v61 = vcombine.low %v2451_v11, %v2455_v12  ;;  %v3820_v43 = vcombine.high %v2428_v25, %v2432_v40  ;;  %v2547_v62 = vld [vmem:[#allocation18 + $0x3d0] sm:$0xff]  ;;  %v3819_v49 = vcombine.low %v2428_v25, %v2432_v40 }
 0xbec   :  { %v2410_v47 = vadd.f32 %v2408_v45, %v1534_v44  ;;  %v5345_v53 = vpack.c.bf16 %v2409_v63, %v2409_v63  ;;  %v2551_v44 = vld [vmem:[#allocation18 + $0x3f0] sm:$0xff]  ;;  %v2548_v45 = vld [vmem:[#allocation18 + $0x3d8] sm:$0xff] }
 0xbed   :  { %v2552_v63 = vld [vmem:[#allocation18 + $0x3f8] sm:$0xff]  ;;  %v3938_v52 = vcombine.high %v2547_v62, %v2551_v44 }
 0xbee   :  { %v2424_v51 = vpack.c.bf16 %v2410_v47, %v2410_v47  ;;  %v3817_v47 = vcombine.low %v2427_v39, %v2431_v59  ;;  %v3940_v50 = vcombine.high %v2548_v45, %v2552_v63  ;;  %v3939_v3 = vcombine.low %v2548_v45, %v2552_v63 }
 0xbf0   :  { %3267 = vmatprep.mubr.bf16.mxu0 %v2424_v51  ;;  %3308 = vmatprep.mubr.bf16.mxu1 %v2424_v51 }
 0xbf1   :  { %3268 = vmatmul.mubr.bf16.vlgmr.msra.gmra.mxu0 %v5345_v53  ;;  %3309 = vmatmul.mubr.bf16.vlgmr.msra.gmra.mxu1 %v5345_v53 }
 0xbf2   :  { %3318 = vmatpush1.bf16.msra.mxu0 %v3873_v8  ;;  %3359 = vmatpush1.bf16.msra.mxu1 %v3875_v23  ;;  %v3850_v8 = vcombine.high %v2459_v31, %v2463_v1  ;;  %v3852_v23 = vcombine.high %v2460_v26, %v2464_v9 }
 0xbf3   :  { %3349 = vmatprep.mubr.bf16.mxu0 %v2424_v51  ;;  %3390 = vmatprep.mubr.bf16.mxu1 %v2424_v51  ;;  %v2543_v51 = vld [vmem:[#allocation18 + $0x3b0] sm:$0xff] }
 0xbf4   :  { %3319 = vmatprep.subr.bf16.mxu0 %v3866_v20  ;;  %3360 = vmatprep.subr.bf16.mxu1 %v3868_v60  ;;  %v2544_v20 = vld [vmem:[#allocation18 + $0x3b8] sm:$0xff]  ;;  %v3937_v60 = vcombine.low %v2547_v62, %v2551_v44  ;;  %v3930_v5 = vcombine.high %v2539_v48, %v2543_v51  ;;  %v3929_v31 = vcombine.low %v2539_v48, %v2543_v51  ;;  %v5356_v51 = vld [vmem:[#allocation21] sm:$0xff] }
 0xbf5   :  { %v3932_v22 = vcombine.high %v2540_v56, %v2544_v20  ;;  %v3931_v1 = vcombine.low %v2540_v56, %v2544_v20  ;;  %v5358_v56 = vld [vmem:[#allocation22] sm:$0xff] }
 0xbf6   :  { %3320 = vmatpush1.bf16.msra.mxu0 %v3865_v6  ;;  %3361 = vmatpush1.bf16.msra.mxu1 %v3867_v7  ;;  %v2531_v6 = vld [vmem:[#allocation18 + $0x350] sm:$0xff] }
 0xbf7   :  { %3321 = vmatprep.subr.bf16.mxu0 %v3858_v14  ;;  %3362 = vmatprep.subr.bf16.mxu1 %v3860_v4  ;;  %v2535_v7 = vld [vmem:[#allocation18 + $0x370] sm:$0xff]  ;;  %v2532_v14 = vld [vmem:[#allocation18 + $0x358] sm:$0xff] }
 0xbf8   :  { %v2536_v4 = vld [vmem:[#allocation18 + $0x378] sm:$0xff]  ;;  %v3922_v26 = vcombine.high %v2531_v6, %v2535_v7  ;;  %v3921_v11 = vcombine.low %v2531_v6, %v2535_v7 }
 0xbf9   :  { %v3924_v9 = vcombine.high %v2532_v14, %v2536_v4  ;;  %v3923_v12 = vcombine.low %v2532_v14, %v2536_v4 }
 0xbfa   :  { %3322 = vmatpush1.bf16.msra.mxu0 %v3857_v27  ;;  %3363 = vmatpush1.bf16.msra.mxu1 %v3859_v10  ;;  %v2523_v27 = vld [vmem:[#allocation18 + $0x310] sm:$0xff] }
 0xbfb   :  { %3323 = vmatprep.subr.bf16.mxu0 %v3850_v8  ;;  %3364 = vmatprep.subr.bf16.mxu1 %v3852_v23  ;;  %v2527_v10 = vld [vmem:[#allocation18 + $0x330] sm:$0xff]  ;;  %v2524_v8 = vld [vmem:[#allocation18 + $0x318] sm:$0xff] }
 0xbfc   :  { %v2528_v23 = vld [vmem:[#allocation18 + $0x338] sm:$0xff]  ;;  %v3914_v13 = vcombine.high %v2523_v27, %v2527_v10  ;;  %v3913_v21 = vcombine.low %v2523_v27, %v2527_v10 }
 0xbfd   :  { %v3916_v15 = vcombine.high %v2524_v8, %v2528_v23  ;;  %v3915_v58 = vcombine.low %v2524_v8, %v2528_v23 }
 0xbfe   :  { %3324 = vmatpush1.bf16.msra.mxu0 %v3849_v16  ;;  %3365 = vmatpush1.bf16.msra.mxu1 %v3851_v17  ;;  %v2515_v16 = vld [vmem:[#allocation18 + $0x2d0] sm:$0xff] }
 0xbff   :  { %3325 = vmatprep.subr.bf16.mxu0 %v3842_v18  ;;  %3366 = vmatprep.subr.bf16.mxu1 %v3844_v35  ;;  %v2519_v17 = vld [vmem:[#allocation18 + $0x2f0] sm:$0xff]  ;;  %v2516_v18 = vld [vmem:[#allocation18 + $0x2d8] sm:$0xff] }
 0xc00   :  { %v2520_v35 = vld [vmem:[#allocation18 + $0x2f8] sm:$0xff]  ;;  %v3906_v24 = vcombine.high %v2515_v16, %v2519_v17  ;;  %v3905_v30 = vcombine.low %v2515_v16, %v2519_v17  ;;  %v2569_v17 = vsub.s32 3, %v5044_v54 }
 0xc01   :  { %v3908_v28 = vcombine.high %v2516_v18, %v2520_v35  ;;  %v3907_v34 = vcombine.low %v2516_v18, %v2520_v35 }
 0xc02   :  { %3326 = vmatpush1.bf16.msra.mxu0 %v3841_v61  ;;  %3367 = vmatpush1.bf16.msra.mxu1 %v3843_v19  ;;  %v2507_v61 = vld [vmem:[#allocation18 + $0x290] sm:$0xff] }
 0xc03   :  { %3327 = vmatprep.subr.bf16.mxu0 %v3834_v46  ;;  %3368 = vmatprep.subr.bf16.mxu1 %v3836_v0  ;;  %v2511_v19 = vld [vmem:[#allocation18 + $0x2b0] sm:$0xff]  ;;  %v2508_v46 = vld [vmem:[#allocation18 + $0x298] sm:$0xff] }
 0xc04   :  { %v2512_v0 = vld [vmem:[#allocation18 + $0x2b8] sm:$0xff]  ;;  %v3898_v2 = vcombine.high %v2507_v61, %v2511_v19  ;;  %v3897_v39 = vcombine.low %v2507_v61, %v2511_v19  ;;  %v2577_v61 = vsub.s32 5, %v5044_v54  ;;  %v2585_v19 = vsub.s32 7, %v5044_v54 }
 0xc05   :  { %v3900_v37 = vcombine.high %v2508_v46, %v2512_v0  ;;  %v3899_v59 = vcombine.low %v2508_v46, %v2512_v0 }
 0xc06   :  { %3328 = vmatpush1.bf16.msra.mxu0 %v3833_v32  ;;  %3369 = vmatpush1.bf16.msra.mxu1 %v3835_v33  ;;  %v2499_v32 = vld [vmem:[#allocation18 + $0x250] sm:$0xff] }
 0xc07   :  { %3329 = vmatprep.subr.bf16.mxu0 %v3826_v36  ;;  %3370 = vmatprep.subr.bf16.mxu1 %v3828_v38  ;;  %v2503_v33 = vld [vmem:[#allocation18 + $0x270] sm:$0xff]  ;;  %v2500_v36 = vld [vmem:[#allocation18 + $0x258] sm:$0xff] }
 0xc08   :  { %v2504_v38 = vld [vmem:[#allocation18 + $0x278] sm:$0xff]  ;;  %v3890_v25 = vcombine.high %v2499_v32, %v2503_v33  ;;  %v3889_v62 = vcombine.low %v2499_v32, %v2503_v33 }
 0xc09   :  { %v3892_v40 = vcombine.high %v2500_v36, %v2504_v38  ;;  %v3891_v44 = vcombine.low %v2500_v36, %v2504_v38  ;;  %v3466_v36 = vrot.slane %v5358_v56, %v5050_v57 }
 0xc0a   :  { %3330 = vmatpush1.bf16.msra.mxu0 %v3825_v29  ;;  %3371 = vmatpush1.bf16.msra.mxu1 %v3827_v41  ;;  %v2491_v29 = vld [vmem:[#allocation18 + $0x210] sm:$0xff] }
 0xc0b   :  { %3331 = vmatprep.subr.bf16.mxu0 %v3818_v42  ;;  %3372 = vmatprep.subr.bf16.mxu1 %v3820_v43  ;;  %v2495_v41 = vld [vmem:[#allocation18 + $0x230] sm:$0xff]  ;;  %v2492_v42 = vld [vmem:[#allocation18 + $0x218] sm:$0xff] }
 0xc0c   :  { %v2496_v43 = vld [vmem:[#allocation18 + $0x238] sm:$0xff]  ;;  %v3882_v45 = vcombine.high %v2491_v29, %v2495_v41 }
 0xc0d   :  { %v3884_v63 = vcombine.high %v2492_v42, %v2496_v43 }
 0xc0e   :  { %3332 = vmatpush1.bf16.msra.mxu0 %v3817_v47  ;;  %3373 = vmatpush1.bf16.msra.mxu1 %v3819_v49  ;;  %v3881_v47 = vcombine.low %v2491_v29, %v2495_v41  ;;  %v3883_v49 = vcombine.low %v2492_v42, %v2496_v43 }
 0xc0f   :  { %3333 = vmatprep.subr.bf16.mxu0 %v3938_v52  ;;  %3374 = vmatprep.subr.bf16.mxu1 %v3940_v50  ;;  %v2565_v52 = vsub.s32 2, %v5044_v54  ;;  %v5352_v50 = vld [vmem:[#allocation19] sm:$0xff] }
 0xc10   :  { %v2558_v48 = vrot.slane %v5352_v50, %v5047_v55  ;;  %v2562_v18 = vrot.slane %v5352_v50, %v5050_v57  ;;  %v2570_v35 = vrot.slane %v5352_v50, %v2569_v17  ;;  %v2578_v32 = vrot.slane %v5352_v50, %v2577_v61 }
 0xc11   :  { %v2566_v20 = vrot.slane %v5352_v50, %v2565_v52  ;;  %v3420_v7 = vrot.slane %v5356_v51, %v2565_v52  ;;  %v3470_v14 = vrot.slane %v5358_v56, %v2565_v52  ;;  %v2586_v33 = vrot.slane %v5352_v50, %v2585_v19  ;;  %v3533_v52 = vld [vmem:[#allocation25] sm:$0x3] }
 0xc12   :  { %3334 = vmatpush2.bf16.msra.mxu0 %v3937_v60  ;;  %3375 = vmatpush2.bf16.msra.mxu1 %v3939_v3  ;;  %v3412_v3 = vrot.slane %v5356_v51, %v5047_v55 }
 0xc13   :  { %3335 = vmatprep.subr.bf16.mxu0 %v3930_v5  ;;  %3376 = vmatprep.subr.bf16.mxu1 %v3932_v22 }
 0xc16   :  { %3336 = vmatpush2.bf16.msra.mxu0 %v3929_v31  ;;  %3377 = vmatpush2.bf16.msra.mxu1 %v3931_v1 }
 0xc17   :  { %3337 = vmatprep.subr.bf16.mxu0 %v3922_v26  ;;  %3378 = vmatprep.subr.bf16.mxu1 %v3924_v9 }
 0xc1a   :  { %3338 = vmatpush2.bf16.msra.mxu0 %v3921_v11  ;;  %3379 = vmatpush2.bf16.msra.mxu1 %v3923_v12 }
 0xc1b   :  { %3339 = vmatprep.subr.bf16.mxu0 %v3914_v13  ;;  %3380 = vmatprep.subr.bf16.mxu1 %v3916_v15 }
 0xc1e   :  { %3340 = vmatpush2.bf16.msra.mxu0 %v3913_v21  ;;  %3381 = vmatpush2.bf16.msra.mxu1 %v3915_v58  ;;  %v2573_v21 = vsub.s32 4, %v5044_v54  ;;  %v2581_v58 = vsub.s32 6, %v5044_v54  ;;  %v3474_v54 = vrot.slane %v5358_v56, %v2569_v17 }
 0xc1f   :  { %3341 = vmatprep.subr.bf16.mxu0 %v3906_v24  ;;  %3382 = vmatprep.subr.bf16.mxu1 %v3908_v28 }
 0xc20   :  { %v2574_v46 = vrot.slane %v5352_v50, %v2573_v21  ;;  %v2582_v0 = vrot.slane %v5352_v50, %v2581_v58  ;;  %v3436_v43 = vrot.slane %v5356_v51, %v2581_v58 }
 0xc22   :  { %3342 = vmatpush2.bf16.msra.mxu0 %v3905_v30  ;;  %3383 = vmatpush2.bf16.msra.mxu1 %v3907_v34  ;;  %v3416_v34 = vrot.slane %v5356_v51, %v5050_v57 }
 0xc23   :  { %3343 = vmatprep.subr.bf16.mxu0 %v3898_v2  ;;  %3384 = vmatprep.subr.bf16.mxu1 %v3900_v37  ;;  %v3424_v37 = vrot.slane %v5356_v51, %v2569_v17 }
 0xc26   :  { %3344 = vmatpush2.bf16.msra.mxu0 %v3897_v39  ;;  %3385 = vmatpush2.bf16.msra.mxu1 %v3899_v59 }
 0xc27   :  { %3345 = vmatprep.subr.bf16.mxu0 %v3890_v25  ;;  %3386 = vmatprep.subr.bf16.mxu1 %v3892_v40  ;;  %v3428_v25 = vrot.slane %v5356_v51, %v2573_v21  ;;  %v3478_v40 = vrot.slane %v5358_v56, %v2573_v21 }
 0xc2a   :  { %3346 = vmatpush2.bf16.msra.mxu0 %v3889_v62  ;;  %3387 = vmatpush2.bf16.msra.mxu1 %v3891_v44  ;;  %v3486_v62 = vrot.slane %v5358_v56, %v2581_v58  ;;  %v3542_v58 = vrot.slane %v3533_v52, %v5050_v57 }
 0xc2b   :  { %3347 = vmatprep.subr.bf16.mxu0 %v3882_v45  ;;  %3388 = vmatprep.subr.bf16.mxu1 %v3884_v63 }
 0xc2e   :  { %3348 = vmatpush2.bf16.msra.mxu0 %v3881_v47  ;;  %3389 = vmatpush2.bf16.msra.mxu1 %v3883_v49  ;;  %v3513_v49 = vld [vmem:[#allocation24] sm:$0x3] }
 0xc31   :  { %3350 = vmatmul.mubr.bf16.vlgmr.msra.gmra.mxu0 %v5345_v53  ;;  %3391 = vmatmul.mubr.bf16.vlgmr.msra.gmra.mxu1 %v5345_v53  ;;  %v3462_v53 = vrot.slane %v5358_v56, %v5047_v55 }
 0xcb1   :  { %v3269_v60 = vpop.f32.mrf.mxu0  ;;  %v3310_v5 = vpop.f32.mrf.mxu1 }
 0xcb2   :  { %v3270_v22 = vadd.f32 %v3269_v60, %v2558_v48  ;;  %v3311_v6 = vadd.f32 %v3310_v5, %v2566_v20 }
 0xcb3   :  { %v3271_v4 = vpop.f32.mrf.mxu0  ;;  %v3312_v31 = vpop.f32.mrf.mxu1 }
 0xcb4   :  { %v3399_v1 = vmax.f32 %v3270_v22, 0.0  ;;  %v3401_v26 = vmax.f32 %v3311_v6, 0.0  ;;  %v3272_v24 = vadd.f32 %v3271_v4, %v2562_v18  ;;  %v3313_v28 = vadd.f32 %v3312_v31, %v2570_v35 }
 0xcb5   :  { %v3273_v9 = vpop.f32.mrf.mxu0  ;;  %v3314_v27 = vpop.f32.mrf.mxu1  ;;  %v3490_v4 = vrot.slane %v5358_v56, %v2585_v19  ;;  %v3518_v31 = vrot.slane %v3513_v49, %v5047_v55 }
 0xcb6   :  { %v3449_v10 = vmul.f32 %v3412_v3, %v3399_v1  ;;  %v3499_v8 = vmul.f32 %v3462_v53, %v3399_v1  ;;  %v3451_v23 = vmul.f32 %v3420_v7, %v3401_v26  ;;  %v3501_v11 = vmul.f32 %v3470_v14, %v3401_v26 }
 0xcb7   :  { %v3274_v12 = vpop.f32.mrf.mxu0  ;;  %v3315_v13 = vpop.f32.mrf.mxu1  ;;  %v3400_v30 = vmax.f32 %v3272_v24, 0.0  ;;  %v3402_v2 = vmax.f32 %v3313_v28, 0.0  ;;  %v3432_v3 = vrot.slane %v5356_v51, %v2577_v61  ;;  %v3482_v53 = vrot.slane %v5358_v56, %v2577_v61 }
 0xcb8   :  { %v3507_v15 = vadd.f32 %v3451_v23, %v3449_v10  ;;  %v3527_v16 = vadd.f32 %v3501_v11, %v3499_v8  ;;  %v3440_v14 = vrot.slane %v5356_v51, %v2585_v19  ;;  %v3538_v1 = vrot.slane %v3533_v52, %v5047_v55 }
 0xcb9   :  { %v3450_v41 = vmul.f32 %v3416_v34, %v3400_v30  ;;  %v3452_v42 = vmul.f32 %v3424_v37, %v3402_v2  ;;  %v3500_v20 = vmul.f32 %v3466_v36, %v3400_v30  ;;  %v3502_v60 = vmul.f32 %v3474_v54, %v3402_v2 }
 0xcba   :  { %v3522_v56 = vrot.slane %v3513_v49, %v5050_v57 }
 0xcbb   :  { %v3508_v8 = vadd.f32 %v3452_v42, %v3450_v41  ;;  %v3528_v13 = vadd.f32 %v3502_v60, %v3500_v20 }
 0xcf1   :  { %v3351_v38 = vpop.f32.mrf.mxu0  ;;  %v3392_v39 = vpop.f32.mrf.mxu1 }
 0xcf2   :  { %v3352_v59 = vadd.f32 %v3351_v38, %v2574_v46  ;;  %v3393_v29 = vadd.f32 %v3392_v39, %v2582_v0 }
 0xcf3   :  { %v3353_v44 = vpop.f32.mrf.mxu0  ;;  %v3394_v45 = vpop.f32.mrf.mxu1 }
 0xcf4   :  { %v3403_v63 = vmax.f32 %v3352_v59, 0.0  ;;  %v3405_v47 = vmax.f32 %v3393_v29, 0.0  ;;  %v3354_v50 = vadd.f32 %v3353_v44, %v2578_v32  ;;  %v3395_v48 = vadd.f32 %v3394_v45, %v2586_v33 }
 0xcf5   :  { %v3355_v5 = vpop.f32.mrf.mxu0  ;;  %v3396_v22 = vpop.f32.mrf.mxu1 }
 0xcf6   :  { %v3453_v6 = vmul.f32 %v3428_v25, %v3403_v63  ;;  %v3503_v7 = vmul.f32 %v3478_v40, %v3403_v63  ;;  %v3404_v26 = vmax.f32 %v3354_v50, 0.0  ;;  %v3406_v9 = vmax.f32 %v3395_v48, 0.0 }
 0xcf7   :  { %v3356_v27 = vpop.f32.mrf.mxu0  ;;  %v3397_v10 = vpop.f32.mrf.mxu1  ;;  %v3455_v12 = vmul.f32 %v3436_v43, %v3405_v47  ;;  %v3505_v17 = vmul.f32 %v3486_v62, %v3405_v47 }
 0xcf8   :  { %v3509_v23 = vadd.f32 %v3507_v15, %v3453_v6  ;;  %v3529_v11 = vadd.f32 %v3527_v16, %v3503_v7  ;;  %v3454_v18 = vmul.f32 %v3432_v3, %v3404_v26  ;;  %v3504_v35 = vmul.f32 %v3482_v53, %v3404_v26 }
 0xcf9   :  { %v3456_v51 = vmul.f32 %v3440_v14, %v3406_v9  ;;  %v3506_v61 = vmul.f32 %v3490_v4, %v3406_v9 }
 0xcfa   :  { %v3511_v21 = vadd.f32 %v3509_v23, %v3455_v12  ;;  %v3531_v55 = vadd.f32 %v3529_v11, %v3505_v17  ;;  %v3510_v24 = vadd.f32 %v3508_v8, %v3454_v18  ;;  %v3530_v28 = vadd.f32 %v3528_v13, %v3504_v35 }
 0xcfc   :  { %v3525_v19 = vadd.f32 %v3518_v31, %v3511_v21  ;;  %v3512_v46 = vadd.f32 %v3510_v24, %v3456_v51  ;;  %v3532_v15 = vadd.f32 %v3530_v28, %v3506_v61  ;;  %v3545_v0 = vadd.f32 %v3538_v1, %v3531_v55 }
 0xcfe   :  { %v3941_v16 = vmul.f32 -1.442695, %v3525_v19  ;;  %v3526_v30 = vadd.f32 %v3522_v56, %v3512_v46  ;;  %v3546_v34 = vadd.f32 %v3542_v58, %v3532_v15 }
 0xd00   :  { %4408 = vpow2.f32 %v3941_v16  ;;  %v3942_v2 = vmul.f32 -1.442695, %v3526_v30  ;;  %v3573_v37 = vcombine.low %v3545_v0, %v3546_v34 }
 0xd02   :  { %4410 = vpow2.f32 %v3942_v2  ;;  %3944 = vst.sshfl [vmem:[%s4962_s3] sm:$0x33 pattern:$0x76325410] %v3573_v37 }
 0xd0d   :  { %v4409_v32 = vpop.eup %4408 }
 0xd0e   :  { %v3553_v57 = vadd.f32 1.0, %v4409_v32 }
 0xd0f   :  { %v4411_v33 = vpop.eup %4410 }
 0xd10   :  { %v3554_v36 = vadd.f32 1.0, %v4411_v33  ;;  %4412 = vrcp.f32 %v3553_v57 }
 0xd12   :  { %4414 = vrcp.f32 %v3554_v36 }
 0xd1d   :  { %v4413_v54 = vpop.eup %4412 }
 0xd1f   :  { %v4415_v38 = vpop.eup %4414 }
 0xd20   :  { %v3561_v39 = vcombine.low %v4413_v54, %v4415_v38 }
 0xd22   :  { %3943 = vst.sshfl [vmem:[%s4957_s13] sm:$0x33 pattern:$0x76325410] %v3561_v39 }
 0xd23   :  { %3595 = vsyncpa [#allocation3], 1 }
 0xd24   :  { %3596 = vsyncpa [#allocation5], 1 }
 0xd25   :  { %3597 = vsyncpa [#allocation8], 1 }
 0xd26   :  { %3598 = vsyncpa [#allocation11], 1 }
 0xd27   :  { %3599 = vsyncpa [#allocation14], 1 }
 0xd28   :  { %3600 = vsyncpa [#allocation17], 1 }
 0xd29   :  { %3601 = vsyncpa [#allocation20], 1 }
 0xd2a   :  { %3602 = vsyncpa [#allocation23], 1 }
 0xd2b   :  { %3603 = vsyncpa [#allocation26], 1 }

</bundles_post_ra>
